<compile_context>
chip_gen: v7x
topology: tpu7x:2x2x1
jax: 0.10.0
libtpu: 0.0.40
codegen_flags: <defaults>
</compile_context>

<pallas_src>
import jax
import jax.numpy as jnp
from jax.experimental import pallas as pl
from jax.experimental.pallas import tpu as pltpu


def _gnn_vn_kernel(eps_ref,
                   h0_ref, eemb_ref, gsrc_ref, sdst_ref, bvec_ref, psum_ref, pmean_ref,
                   w1_ref, b1_ref, w2_ref, b2_ref,
                   wv1_ref, bv1_ref, wv2_ref, bv2_ref,
                   wp_ref, bp_ref,
                   out_ref,
                   h_sc, vn_sc):
    f32, bf16 = jnp.float32, jnp.bfloat16
    l = pl.program_id(1)
    n_layers = pl.num_programs(1)

    @pl.when(l == 0)
    def _init():
        h_sc[...] = h0_ref[...].astype(f32)          # h0 streamed as bf16, carried as f32
        vn_sc[...] = jnp.zeros_like(vn_sc)           # OGB virtual node init = 0

    vn = vn_sc[...]                                  # [GB, DP] f32
    # virtual-node broadcast to each graph's nodes: h += bvec @ vn  (bvec is one-hot)
    h = h_sc[...] + jnp.dot(bvec_ref[...], vn.astype(bf16), preferred_element_type=f32)
    hb = h.astype(bf16)                              # [GN, DP]

    # --- GINConv (OGB): agg_i = sum_{e: dst(e)=i} relu(h[src(e)] + edge_emb[e]) ---
    x_src = jnp.dot(gsrc_ref[...], hb, preferred_element_type=f32)               # [GE, DP]
    msg = jnp.maximum(x_src + eemb_ref[...].astype(f32), 0.0)                    # [GE, DP]
    agg = jnp.dot(sdst_ref[...], msg.astype(bf16), preferred_element_type=f32)   # [GN, DP]

    eps = eps_ref[l]                                 # scalar from SMEM
    z = (1.0 + eps) * h + agg
    # GIN MLP with eval-BN folded into the linears: Linear(D,2D) -> ReLU -> Linear(2D,D)
    z = jnp.dot(z.astype(bf16), w1_ref[l], preferred_element_type=f32) + b1_ref[l]
    z = jnp.maximum(z, 0.0)
    z = jnp.dot(z.astype(bf16), w2_ref[l], preferred_element_type=f32) + b2_ref[l]
    # outer per-layer BN folded into w2/b2; ReLU except on last layer; dropout = identity (eval)
    hn = jnp.where(l < n_layers - 1, jnp.maximum(z, 0.0), z)
    h_sc[...] = hn

    # --- virtual-node update (all but last layer) ---
    @pl.when(l < n_layers - 1)
    def _vn():
        vtmp = jnp.dot(psum_ref[...], hb, preferred_element_type=f32) + vn       # add-pool + vn
        v = jnp.dot(vtmp.astype(bf16), wv1_ref[l], preferred_element_type=f32) + bv1_ref[l]
        v = jnp.maximum(v, 0.0)
        v = jnp.dot(v.astype(bf16), wv2_ref[l], preferred_element_type=f32) + bv2_ref[l]
        vn_sc[...] = jnp.maximum(v, 0.0)             # dropout = identity (eval)

    # --- JK='last': mean pooling + prediction head at the last layer ---
    @pl.when(l == n_layers - 1)
    def _head():
        hg = jnp.dot(pmean_ref[...], hn.astype(bf16), preferred_element_type=f32)  # [GB, DP]
        out_ref[...] = (jnp.dot(hg.astype(bf16), wp_ref[...], preferred_element_type=f32)
                        + bp_ref[...])


def gnn_vn_forward(inputs, params, num_layers, num_tasks):
    NB, GN, DP = inputs["h0"].shape          # graph blocks, nodes/block, padded feature dim
    GE = inputs["gsrc"].shape[1]             # edges/block
    GB = inputs["psum"].shape[1]             # graphs/block
    L, _, DP2 = params["w1"].shape
    TP = params["wp"].shape[1]

    in_specs = [
        pl.BlockSpec(memory_space=pltpu.MemorySpace.SMEM),                 # eps [L]
        pl.BlockSpec((None, GN, DP), lambda g, l: (g, 0, 0)),              # h0 (per block)
        pl.BlockSpec((None, None, GE, DP), lambda g, l: (g, l, 0, 0)),     # eemb (block, layer)
        pl.BlockSpec((None, GE, GN), lambda g, l: (g, 0, 0)),              # gsrc  (block-diag)
        pl.BlockSpec((None, GN, GE), lambda g, l: (g, 0, 0)),              # sdst  (block-diag)
        pl.BlockSpec((None, GN, GB), lambda g, l: (g, 0, 0)),              # bvec  (node->graph)
        pl.BlockSpec((None, GB, GN), lambda g, l: (g, 0, 0)),              # psum  (add-pool)
        pl.BlockSpec((None, GB, GN), lambda g, l: (g, 0, 0)),              # pmean (mean-pool)
        # per-layer weights: full-L blocks, constant index -> resident in VMEM for the
        # whole kernel; indexed in-kernel with w_ref[l]
        pl.BlockSpec((L, DP, DP2), lambda g, l: (0, 0, 0)),                # w1
        pl.BlockSpec((L, 1, DP2), lambda g, l: (0, 0, 0)),                 # b1
        pl.BlockSpec((L, DP2, DP), lambda g, l: (0, 0, 0)),                # w2
        pl.BlockSpec((L, 1, DP), lambda g, l: (0, 0, 0)),                  # b2
        pl.BlockSpec((L, DP, DP2), lambda g, l: (0, 0, 0)),                # wv1
        pl.BlockSpec((L, 1, DP2), lambda g, l: (0, 0, 0)),                 # bv1
        pl.BlockSpec((L, DP2, DP), lambda g, l: (0, 0, 0)),                # wv2
        pl.BlockSpec((L, 1, DP), lambda g, l: (0, 0, 0)),                  # bv2
        pl.BlockSpec((DP, TP), lambda g, l: (0, 0)),                       # wp
        pl.BlockSpec((1, TP), lambda g, l: (0, 0)),                        # bp
    ]
    out_specs = pl.BlockSpec((None, GB, TP), lambda g, l: (g, 0, 0))

    out = pl.pallas_call(
        _gnn_vn_kernel,
        out_shape=jax.ShapeDtypeStruct((NB, GB, TP), jnp.float32),
        grid_spec=pltpu.PrefetchScalarGridSpec(
            num_scalar_prefetch=0,
            grid=(NB, num_layers),
            in_specs=in_specs,
            out_specs=out_specs,
            scratch_shapes=[pltpu.VMEM((GN, DP), jnp.float32),   # node features (layer-carried)
                            pltpu.VMEM((GB, DP), jnp.float32)],  # virtual-node embeddings
        ),
        compiler_params=pltpu.CompilerParams(
            dimension_semantics=("parallel", "arbitrary"),
        ),
    )(params["eps"], inputs["h0"], inputs["eemb"], inputs["gsrc"], inputs["sdst"],
      inputs["bvec"], inputs["psum"], inputs["pmean"],
      params["w1"], params["b1"], params["w2"], params["b2"],
      params["wv1"], params["bv1"], params["wv2"], params["bv2"],
      params["wp"], params["bp"])
    return out.reshape(NB * GB, TP)[:, :num_tasks]


def _pad_axis(x, axis, target):
    axis = axis % x.ndim
    pads = [(0, 0)] * x.ndim
    pads[axis] = (0, target - x.shape[axis])
    return jnp.pad(x, pads)


def _fold_bn(w, b, bn, eps_bn=1e-5):
    # bn: [L, 4, C] rows = (gamma, beta, mean, var); fold eval-mode BN into preceding Linear.
    gamma, beta, mean, var = bn[:, 0:1, :], bn[:, 1:2, :], bn[:, 2:3, :], bn[:, 3:4, :]
    scale = gamma * jax.lax.rsqrt(var + eps_bn)
    return w * scale, (b - mean) * scale + beta


if __name__ == "__main__":
    key = jax.random.PRNGKey(0)

    # config (small, consistent with args.num_layers / args.emb_dim / num_tasks)
    L = 3            # num_layers (must be >= 2)
    D = 32           # emb_dim
    T = 4            # num_tasks
    G = 32           # graphs in the batch
    GB = 16          # graphs packed per grid step (GB*N_PER = 128 node rows; use 32 on v6e/v7x)
    NB = G // GB     # graph blocks (>=2 so v7x's 2 TCs both get work)
    N_PER = 8        # nodes per graph
    E_PER = 12       # edges per graph
    NUM_ATOM_FEATS, ATOM_VOCAB = 2, 10
    NUM_BOND_FEATS, BOND_VOCAB = 2, 5

    # padded sizes (lane-dense feature/task dims, sublane-aligned edge dim)
    DP, DP2, TP, EP = 128, 256, 128, 16
    GN, GE = GB * N_PER, GB * EP     # nodes / edges per block (128 / 256)

    ks = jax.random.split(key, 24)

    # --- synthetic batched graph (PyG-style, graph-blocked with graph-local indices) ---
    src = jax.random.randint(ks[0], (G, E_PER), 0, N_PER)
    dst = jax.random.randint(ks[1], (G, E_PER), 0, N_PER)
    x_atoms = jax.random.randint(ks[2], (G, N_PER, NUM_ATOM_FEATS), 0, ATOM_VOCAB)
    edge_attr = jax.random.randint(ks[3], (G, E_PER, NUM_BOND_FEATS), 0, BOND_VOCAB)

    # --- Atom/Bond encoders: embedding gathers are host-side glue ---
    atom_tables = 0.1 * jax.random.normal(ks[4], (NUM_ATOM_FEATS, ATOM_VOCAB, D), jnp.float32)
    h0 = sum(jnp.take(atom_tables[f], x_atoms[..., f], axis=0)
             for f in range(NUM_ATOM_FEATS))                                  # [G, N_PER, D]
    bond_tables = 0.1 * jax.random.normal(ks[5], (L, NUM_BOND_FEATS, BOND_VOCAB, D), jnp.float32)
    eemb = jnp.stack([
        sum(jnp.take(bond_tables[l, f], edge_attr[..., f], axis=0)
            for f in range(NUM_BOND_FEATS))
        for l in range(L)], axis=1)                                           # [G, L, E_PER, D]

    # --- per-graph incidence, then block-diagonal packing (GB graphs per block) ---
    gsrc_g = _pad_axis(jax.nn.one_hot(src, N_PER, dtype=jnp.float32), 1, EP)            # [G,EP,N]
    sdst_g = _pad_axis(jnp.swapaxes(jax.nn.one_hot(dst, N_PER, dtype=jnp.float32), 1, 2),
                       2, EP)                                                            # [G,N,EP]
    eye_gb = jnp.eye(GB, dtype=jnp.float32)
    gsrc_bd = (gsrc_g.reshape(NB, GB, EP, N_PER)[:, :, :, None, :]
               * eye_gb[None, :, None, :, None]).reshape(NB, GE, GN)          # [NB, GE, GN]
    sdst_bd = (sdst_g.reshape(NB, GB, N_PER, EP)[:, :, :, None, :]
               * eye_gb[None, :, None, :, None]).reshape(NB, GN, GE)          # [NB, GN, GE]

    # pooling / membership matrices per block
    psum_row = jnp.repeat(eye_gb, N_PER, axis=1)                              # [GB, GN]
    psum = jnp.broadcast_to(psum_row[None], (NB, GB, GN))                     # global_add_pool
    pmean = psum / float(N_PER)                                               # mean pool = 1/|V_g|
    bvec = jnp.swapaxes(psum, 1, 2)                                           # node -> graph one-hot

    # node features / edge embeddings stacked to match the block-diagonal row ordering
    h0_p = _pad_axis(h0.reshape(NB, GN, D), -1, DP)                           # [NB, GN, DP]
    eemb_p = _pad_axis(
        _pad_axis(eemb, -2, EP).reshape(NB, GB, L, EP, D)
        .transpose(0, 2, 1, 3, 4).reshape(NB, L, GE, D), -1, DP)              # [NB, L, GE, DP]

    inputs = dict(
        h0=h0_p.astype(jnp.bfloat16),
        eemb=eemb_p.astype(jnp.bfloat16),
        gsrc=gsrc_bd.astype(jnp.bfloat16),
        sdst=sdst_bd.astype(jnp.bfloat16),
        bvec=bvec.astype(jnp.bfloat16),
        psum=psum.astype(jnp.bfloat16),
        pmean=pmean.astype(jnp.bfloat16),
    )

    # --- deterministic parameters (PyTorch layout), then fold eval-BN + pad + cast on host ---
    def bn_params(k, L_, C):
        k1, k2, k3, k4 = jax.random.split(k, 4)
        gamma = 1.0 + 0.1 * jax.random.normal(k1, (L_, 1, C))
        beta = 0.1 * jax.random.normal(k2, (L_, 1, C))
        mean = 0.1 * jax.random.normal(k3, (L_, 1, C))
        var = 1.0 + 0.1 * jnp.abs(jax.random.normal(k4, (L_, 1, C)))
        return jnp.concatenate([gamma, beta, mean, var], axis=1).astype(jnp.float32)

    w1 = 0.1 * jax.random.normal(ks[6], (L, D, 2 * D), jnp.float32)
    b1 = 0.1 * jax.random.normal(ks[7], (L, 1, 2 * D), jnp.float32)
    bn1 = bn_params(ks[8], L, 2 * D)
    w2 = 0.1 * jax.random.normal(ks[9], (L, 2 * D, D), jnp.float32)
    b2 = 0.1 * jax.random.normal(ks[10], (L, 1, D), jnp.float32)
    bn2 = bn_params(ks[11], L, D)
    wv1 = 0.1 * jax.random.normal(ks[12], (L - 1, D, 2 * D), jnp.float32)
    bv1 = 0.1 * jax.random.normal(ks[13], (L - 1, 1, 2 * D), jnp.float32)
    bnv1 = bn_params(ks[14], L - 1, 2 * D)
    wv2 = 0.1 * jax.random.normal(ks[15], (L - 1, 2 * D, D), jnp.float32)
    bv2 = 0.1 * jax.random.normal(ks[16], (L - 1, 1, D), jnp.float32)
    bnv2 = bn_params(ks[17], L - 1, D)
    wp = 0.1 * jax.random.normal(ks[18], (D, T), jnp.float32)
    bp = 0.1 * jax.random.normal(ks[19], (1, T), jnp.float32)

    w1f, b1f = _fold_bn(w1, b1, bn1)        # GIN MLP Linear1 + BN(2D)
    w2f, b2f = _fold_bn(w2, b2, bn2)        # GIN MLP Linear2 + outer per-layer BN(D)
    wv1f, bv1f = _fold_bn(wv1, bv1, bnv1)   # virtual-node MLP Linear1 + BN(2D)
    wv2f, bv2f = _fold_bn(wv2, bv2, bnv2)   # virtual-node MLP Linear2 + BN(D)

    def pad_feat(x, d_in, d_out):
        return _pad_axis(_pad_axis(x, -2, d_in), -1, d_out)

    params = dict(
        eps=jnp.zeros((L,), jnp.float32),                    # GINConv eps init = 0 (SMEM)
        w1=pad_feat(w1f, DP, DP2).astype(jnp.bfloat16),
        b1=_pad_axis(b1f, -1, DP2).astype(jnp.float32),
        w2=pad_feat(w2f, DP2, DP).astype(jnp.bfloat16),
        b2=_pad_axis(b2f, -1, DP).astype(jnp.float32),
        # virtual-node stacks padded from L-1 to L layers with zeros (layer L-1 unused)
        wv1=_pad_axis(pad_feat(wv1f, DP, DP2), 0, L).astype(jnp.bfloat16),
        bv1=_pad_axis(_pad_axis(bv1f, -1, DP2), 0, L).astype(jnp.float32),
        wv2=_pad_axis(pad_feat(wv2f, DP2, DP), 0, L).astype(jnp.bfloat16),
        bv2=_pad_axis(_pad_axis(bv2f, -1, DP), 0, L).astype(jnp.float32),
        wp=pad_feat(wp, DP, TP).astype(jnp.bfloat16),
        bp=_pad_axis(bp, -1, TP).astype(jnp.float32),
    )

    out = gnn_vn_forward(inputs, params, L, T)
    jax.block_until_ready(out)
    assert out.shape == (G, T) and out.dtype == jnp.float32
    assert bool(jnp.all(jnp.isfinite(out)))
    print("KERNEL_OK")
</pallas_src>

<mosaic_0001>
module attributes {stable_mosaic.version = 11 : i64} {
  func.func @_gnn_vn_kernel(%arg0: i32, %arg1: i32, %arg2: memref<3xf32, #tpu.memory_space<smem>>, %arg3: memref<1x128x128xbf16, #tpu.memory_space<vmem>>, %arg4: memref<1x1x256x128xbf16, #tpu.memory_space<vmem>>, %arg5: memref<1x256x128xbf16, #tpu.memory_space<vmem>>, %arg6: memref<1x128x256xbf16, #tpu.memory_space<vmem>>, %arg7: memref<1x128x16xbf16, #tpu.memory_space<vmem>>, %arg8: memref<1x16x128xbf16, #tpu.memory_space<vmem>>, %arg9: memref<1x16x128xbf16, #tpu.memory_space<vmem>>, %arg10: memref<3x128x256xbf16, #tpu.memory_space<vmem>>, %arg11: memref<3x1x256xf32, #tpu.memory_space<vmem>>, %arg12: memref<3x256x128xbf16, #tpu.memory_space<vmem>>, %arg13: memref<3x1x128xf32, #tpu.memory_space<vmem>>, %arg14: memref<3x128x256xbf16, #tpu.memory_space<vmem>>, %arg15: memref<3x1x256xf32, #tpu.memory_space<vmem>>, %arg16: memref<3x256x128xbf16, #tpu.memory_space<vmem>>, %arg17: memref<3x1x128xf32, #tpu.memory_space<vmem>>, %arg18: memref<128x128xbf16, #tpu.memory_space<vmem>>, %arg19: memref<1x128xf32, #tpu.memory_space<vmem>>, %arg20: memref<1x16x128xf32, #tpu.memory_space<vmem>>, %arg21: memref<128x128xf32, #tpu.memory_space<vmem>>, %arg22: memref<16x128xf32, #tpu.memory_space<vmem>>) attributes {dimension_semantics = [#tpu.dimension_semantics<parallel>, #tpu.dimension_semantics<arbitrary>], iteration_bounds = array<i64: 2, 3>, scalar_prefetch = 0 : i64, scratch_operands = 2 : i64, tpu.core_type = #tpu.core_type<tc>, window_params = [{transform_indices = @transform_0, window_bounds = array<i64: 3>}, {transform_indices = @transform_1, window_bounds = array<i64: 1, 128, 128>}, {transform_indices = @transform_2, window_bounds = array<i64: 1, 1, 256, 128>}, {transform_indices = @transform_3, window_bounds = array<i64: 1, 256, 128>}, {transform_indices = @transform_4, window_bounds = array<i64: 1, 128, 256>}, {transform_indices = @transform_5, window_bounds = array<i64: 1, 128, 16>}, {transform_indices = @transform_6, window_bounds = array<i64: 1, 16, 128>}, {transform_indices = @transform_7, window_bounds = array<i64: 1, 16, 128>}, {pipeline_mode = #tpu.pipeline_mode<synchronous>, transform_indices = @transform_8, window_bounds = array<i64: 3, 128, 256>}, {pipeline_mode = #tpu.pipeline_mode<synchronous>, transform_indices = @transform_9, window_bounds = array<i64: 3, 1, 256>}, {pipeline_mode = #tpu.pipeline_mode<synchronous>, transform_indices = @transform_10, window_bounds = array<i64: 3, 256, 128>}, {pipeline_mode = #tpu.pipeline_mode<synchronous>, transform_indices = @transform_11, window_bounds = array<i64: 3, 1, 128>}, {pipeline_mode = #tpu.pipeline_mode<synchronous>, transform_indices = @transform_12, window_bounds = array<i64: 3, 128, 256>}, {pipeline_mode = #tpu.pipeline_mode<synchronous>, transform_indices = @transform_13, window_bounds = array<i64: 3, 1, 256>}, {pipeline_mode = #tpu.pipeline_mode<synchronous>, transform_indices = @transform_14, window_bounds = array<i64: 3, 256, 128>}, {pipeline_mode = #tpu.pipeline_mode<synchronous>, transform_indices = @transform_15, window_bounds = array<i64: 3, 1, 128>}, {pipeline_mode = #tpu.pipeline_mode<synchronous>, transform_indices = @transform_16, window_bounds = array<i64: 128, 128>}, {pipeline_mode = #tpu.pipeline_mode<synchronous>, transform_indices = @transform_17, window_bounds = array<i64: 1, 128>}, {transform_indices = @transform_18, window_bounds = array<i64: 1, 16, 128>}]} {
    %c0_i32 = arith.constant 0 : i32
    %0 = arith.cmpi eq, %arg1, %c0_i32 : i32
    %1 = arith.extui %0 : i1 to i32
    %c0_i32_0 = arith.constant 0 : i32
    %2 = arith.cmpi ne, %1, %c0_i32_0 : i32
    scf.if %2 {
      %c0_39 = arith.constant 0 : index
      %c0_40 = arith.constant 0 : index
      %c0_41 = arith.constant 0 : index
      %63 = vector.load %arg3[%c0_39, %c0_40, %c0_41] : memref<1x128x128xbf16, #tpu.memory_space<vmem>>, vector<1x128x128xbf16>
      %64 = vector.shape_cast %63 : vector<1x128x128xbf16> to vector<128x128xbf16>
      %65 = arith.extf %64 : vector<128x128xbf16> to vector<128x128xf32>
      %c0_42 = arith.constant 0 : index
      %c0_43 = arith.constant 0 : index
      %66 = vector.load %arg21[%c0_42, %c0_43] : memref<128x128xf32, #tpu.memory_space<vmem>>, vector<128x128xf32>
      tpu.vector_store %arg21[%c0_42, %c0_43], %65 {strides = array<i32>} : memref<128x128xf32, #tpu.memory_space<vmem>>, vector<128x128xf32>,
      %cst_44 = arith.constant 0.000000e+00 : f32
      %67 = vector.broadcast %cst_44 : f32 to vector<16x128xf32>
      %c0_45 = arith.constant 0 : index
      %c0_46 = arith.constant 0 : index
      %68 = vector.load %arg22[%c0_45, %c0_46] : memref<16x128xf32, #tpu.memory_space<vmem>>, vector<16x128xf32>
      tpu.vector_store %arg22[%c0_45, %c0_46], %67 {strides = array<i32>} : memref<16x128xf32, #tpu.memory_space<vmem>>, vector<16x128xf32>,
    } else {
    }
    %c0 = arith.constant 0 : index
    %c0_1 = arith.constant 0 : index
    %3 = vector.load %arg22[%c0, %c0_1] : memref<16x128xf32, #tpu.memory_space<vmem>>, vector<16x128xf32>
    %c0_2 = arith.constant 0 : index
    %c0_3 = arith.constant 0 : index
    %4 = vector.load %arg21[%c0_2, %c0_3] : memref<128x128xf32, #tpu.memory_space<vmem>>, vector<128x128xf32>
    %c0_4 = arith.constant 0 : index
    %c0_5 = arith.constant 0 : index
    %c0_6 = arith.constant 0 : index
    %5 = vector.load %arg7[%c0_4, %c0_5, %c0_6] : memref<1x128x16xbf16, #tpu.memory_space<vmem>>, vector<1x128x16xbf16>
    %6 = vector.shape_cast %5 : vector<1x128x16xbf16> to vector<128x16xbf16>
    %7 = arith.truncf %3 : vector<16x128xf32> to vector<16x128xbf16>
    %cst = arith.constant dense<0.000000e+00> : vector<128x128xf32>
    %8 = tpu.matmul %6, %7, %cst {dimension_numbers = #tpu.dot_dimension_numbers<[1], [0], [0], [1], [0, 0, 1, 1], [], []>} : vector<128x16xbf16>, vector<16x128xbf16>, vector<128x128xf32> -> vector<128x128xf32>
    %9 = arith.addf %4, %8 : vector<128x128xf32>
    %10 = arith.truncf %9 : vector<128x128xf32> to vector<128x128xbf16>
    %c0_7 = arith.constant 0 : index
    %c0_8 = arith.constant 0 : index
    %c0_9 = arith.constant 0 : index
    %11 = vector.load %arg5[%c0_7, %c0_8, %c0_9] : memref<1x256x128xbf16, #tpu.memory_space<vmem>>, vector<1x256x128xbf16>
    %12 = vector.shape_cast %11 : vector<1x256x128xbf16> to vector<256x128xbf16>
    %cst_10 = arith.constant dense<0.000000e+00> : vector<256x128xf32>
    %13 = tpu.matmul %12, %10, %cst_10 {dimension_numbers = #tpu.dot_dimension_numbers<[1], [0], [0], [1], [0, 0, 1, 1], [], []>} : vector<256x128xbf16>, vector<128x128xbf16>, vector<256x128xf32> -> vector<256x128xf32>
    %c0_11 = arith.constant 0 : index
    %c0_12 = arith.constant 0 : index
    %c0_13 = arith.constant 0 : index
    %c0_14 = arith.constant 0 : index
    %14 = vector.load %arg4[%c0_11, %c0_12, %c0_13, %c0_14] : memref<1x1x256x128xbf16, #tpu.memory_space<vmem>>, vector<1x1x256x128xbf16>
    %15 = vector.shape_cast %14 : vector<1x1x256x128xbf16> to vector<256x128xbf16>
    %16 = arith.extf %15 : vector<256x128xbf16> to vector<256x128xf32>
    %17 = arith.addf %13, %16 : vector<256x128xf32>
    %cst_15 = arith.constant 0.000000e+00 : f32
    %18 = vector.broadcast %cst_15 : f32 to vector<256x128xf32>
    %19 = arith.maximumf %17, %18 : vector<256x128xf32>
    %c0_16 = arith.constant 0 : index
    %c0_17 = arith.constant 0 : index
    %c0_18 = arith.constant 0 : index
    %20 = vector.load %arg6[%c0_16, %c0_17, %c0_18] : memref<1x128x256xbf16, #tpu.memory_space<vmem>>, vector<1x128x256xbf16>
    %21 = vector.shape_cast %20 : vector<1x128x256xbf16> to vector<128x256xbf16>
    %22 = arith.truncf %19 : vector<256x128xf32> to vector<256x128xbf16>
    %cst_19 = arith.constant dense<0.000000e+00> : vector<128x128xf32>
    %23 = tpu.matmul %21, %22, %cst_19 {dimension_numbers = #tpu.dot_dimension_numbers<[1], [0], [0], [1], [0, 0, 1, 1], [], []>} : vector<128x256xbf16>, vector<256x128xbf16>, vector<128x128xf32> -> vector<128x128xf32>
    %24 = arith.index_cast %arg1 : i32 to index
    %25 = memref.load %arg2[%24] : memref<3xf32, #tpu.memory_space<smem>>
    %cst_20 = arith.constant 1.000000e+00 : f32
    %26 = arith.addf %cst_20, %25 : f32
    %27 = vector.broadcast %26 : f32 to vector<128x128xf32>
    %28 = arith.mulf %27, %9 : vector<128x128xf32>
    %29 = arith.addf %28, %23 : vector<128x128xf32>
    %30 = arith.truncf %29 : vector<128x128xf32> to vector<128x128xbf16>
    %31 = arith.index_cast %arg1 : i32 to index
    %c0_21 = arith.constant 0 : index
    %c0_22 = arith.constant 0 : index
    %32 = vector.load %arg10[%31, %c0_21, %c0_22] : memref<3x128x256xbf16, #tpu.memory_space<vmem>>, vector<1x128x256xbf16>
    %33 = vector.shape_cast %32 : vector<1x128x256xbf16> to vector<128x256xbf16>
    %cst_23 = arith.constant dense<0.000000e+00> : vector<128x256xf32>
    %34 = tpu.matmul %30, %33, %cst_23 {dimension_numbers = #tpu.dot_dimension_numbers<[1], [0], [0], [1], [0, 0, 1, 1], [], []>} : vector<128x128xbf16>, vector<128x256xbf16>, vector<128x256xf32> -> vector<128x256xf32>
    %35 = arith.index_cast %arg1 : i32 to index
    %c0_24 = arith.constant 0 : index
    %c0_25 = arith.constant 0 : index
    %36 = vector.load %arg11[%35, %c0_24, %c0_25] : memref<3x1x256xf32, #tpu.memory_space<vmem>>, vector<1x1x256xf32>
    %37 = vector.shape_cast %36 : vector<1x1x256xf32> to vector<1x256xf32>
    %38 = vector.broadcast %37 : vector<1x256xf32> to vector<128x256xf32>
    %39 = arith.addf %34, %38 : vector<128x256xf32>
    %cst_26 = arith.constant 0.000000e+00 : f32
    %40 = vector.broadcast %cst_26 : f32 to vector<128x256xf32>
    %41 = arith.maximumf %39, %40 : vector<128x256xf32>
    %42 = arith.truncf %41 : vector<128x256xf32> to vector<128x256xbf16>
    %43 = arith.index_cast %arg1 : i32 to index
    %c0_27 = arith.constant 0 : index
    %c0_28 = arith.constant 0 : index
    %44 = vector.load %arg12[%43, %c0_27, %c0_28] : memref<3x256x128xbf16, #tpu.memory_space<vmem>>, vector<1x256x128xbf16>
    %45 = vector.shape_cast %44 : vector<1x256x128xbf16> to vector<256x128xbf16>
    %cst_29 = arith.constant dense<0.000000e+00> : vector<128x128xf32>
    %46 = tpu.matmul %42, %45, %cst_29 {dimension_numbers = #tpu.dot_dimension_numbers<[1], [0], [0], [1], [0, 0, 1, 1], [], []>} : vector<128x256xbf16>, vector<256x128xbf16>, vector<128x128xf32> -> vector<128x128xf32>
    %47 = arith.index_cast %arg1 : i32 to index
    %c0_30 = arith.constant 0 : index
    %c0_31 = arith.constant 0 : index
    %48 = vector.load %arg13[%47, %c0_30, %c0_31] : memref<3x1x128xf32, #tpu.memory_space<vmem>>, vector<1x1x128xf32>
    %49 = vector.shape_cast %48 : vector<1x1x128xf32> to vector<1x128xf32>
    %50 = vector.broadcast %49 : vector<1x128xf32> to vector<128x128xf32>
    %51 = arith.addf %46, %50 : vector<128x128xf32>
    %c2_i32 = arith.constant 2 : i32
    %52 = arith.cmpi slt, %arg1, %c2_i32 : i32
    %cst_32 = arith.constant 0.000000e+00 : f32
    %53 = vector.broadcast %cst_32 : f32 to vector<128x128xf32>
    %54 = arith.maximumf %51, %53 : vector<128x128xf32>
    %55 = arith.select %52, %54, %51 : vector<128x128xf32>
    %c0_33 = arith.constant 0 : index
    %c0_34 = arith.constant 0 : index
    %56 = vector.load %arg21[%c0_33, %c0_34] : memref<128x128xf32, #tpu.memory_space<vmem>>, vector<128x128xf32>
    tpu.vector_store %arg21[%c0_33, %c0_34], %55 {strides = array<i32>} : memref<128x128xf32, #tpu.memory_space<vmem>>, vector<128x128xf32>,
    %c2_i32_35 = arith.constant 2 : i32
    %57 = arith.cmpi slt, %arg1, %c2_i32_35 : i32
    %58 = arith.extui %57 : i1 to i32
    %c0_i32_36 = arith.constant 0 : i32
    %59 = arith.cmpi ne, %58, %c0_i32_36 : i32
    scf.if %59 {
      %c0_39 = arith.constant 0 : index
      %c0_40 = arith.constant 0 : index
      %c0_41 = arith.constant 0 : index
      %63 = vector.load %arg8[%c0_39, %c0_40, %c0_41] : memref<1x16x128xbf16, #tpu.memory_space<vmem>>, vector<1x16x128xbf16>
      %64 = vector.shape_cast %63 : vector<1x16x128xbf16> to vector<16x128xbf16>
      %cst_42 = arith.constant dense<0.000000e+00> : vector<16x128xf32>
      %65 = tpu.matmul %64, %10, %cst_42 {dimension_numbers = #tpu.dot_dimension_numbers<[1], [0], [0], [1], [0, 0, 1, 1], [], []>} : vector<16x128xbf16>, vector<128x128xbf16>, vector<16x128xf32> -> vector<16x128xf32>
      %66 = arith.addf %65, %3 : vector<16x128xf32>
      %67 = arith.truncf %66 : vector<16x128xf32> to vector<16x128xbf16>
      %68 = arith.index_cast %arg1 : i32 to index
      %c0_43 = arith.constant 0 : index
      %c0_44 = arith.constant 0 : index
      %69 = vector.load %arg14[%68, %c0_43, %c0_44] : memref<3x128x256xbf16, #tpu.memory_space<vmem>>, vector<1x128x256xbf16>
      %70 = vector.shape_cast %69 : vector<1x128x256xbf16> to vector<128x256xbf16>
      %cst_45 = arith.constant dense<0.000000e+00> : vector<16x256xf32>
      %71 = tpu.matmul %67, %70, %cst_45 {dimension_numbers = #tpu.dot_dimension_numbers<[1], [0], [0], [1], [0, 0, 1, 1], [], []>} : vector<16x128xbf16>, vector<128x256xbf16>, vector<16x256xf32> -> vector<16x256xf32>
      %72 = arith.index_cast %arg1 : i32 to index
      %c0_46 = arith.constant 0 : index
      %c0_47 = arith.constant 0 : index
      %73 = vector.load %arg15[%72, %c0_46, %c0_47] : memref<3x1x256xf32, #tpu.memory_space<vmem>>, vector<1x1x256xf32>
      %74 = vector.shape_cast %73 : vector<1x1x256xf32> to vector<1x256xf32>
      %75 = vector.broadcast %74 : vector<1x256xf32> to vector<16x256xf32>
      %76 = arith.addf %71, %75 : vector<16x256xf32>
      %cst_48 = arith.constant 0.000000e+00 : f32
      %77 = vector.broadcast %cst_48 : f32 to vector<16x256xf32>
      %78 = arith.maximumf %76, %77 : vector<16x256xf32>
      %79 = arith.truncf %78 : vector<16x256xf32> to vector<16x256xbf16>
      %80 = arith.index_cast %arg1 : i32 to index
      %c0_49 = arith.constant 0 : index
      %c0_50 = arith.constant 0 : index
      %81 = vector.load %arg16[%80, %c0_49, %c0_50] : memref<3x256x128xbf16, #tpu.memory_space<vmem>>, vector<1x256x128xbf16>
      %82 = vector.shape_cast %81 : vector<1x256x128xbf16> to vector<256x128xbf16>
      %cst_51 = arith.constant dense<0.000000e+00> : vector<16x128xf32>
      %83 = tpu.matmul %79, %82, %cst_51 {dimension_numbers = #tpu.dot_dimension_numbers<[1], [0], [0], [1], [0, 0, 1, 1], [], []>} : vector<16x256xbf16>, vector<256x128xbf16>, vector<16x128xf32> -> vector<16x128xf32>
      %84 = arith.index_cast %arg1 : i32 to index
      %c0_52 = arith.constant 0 : index
      %c0_53 = arith.constant 0 : index
      %85 = vector.load %arg17[%84, %c0_52, %c0_53] : memref<3x1x128xf32, #tpu.memory_space<vmem>>, vector<1x1x128xf32>
      %86 = vector.shape_cast %85 : vector<1x1x128xf32> to vector<1x128xf32>
      %87 = vector.broadcast %86 : vector<1x128xf32> to vector<16x128xf32>
      %88 = arith.addf %83, %87 : vector<16x128xf32>
      %cst_54 = arith.constant 0.000000e+00 : f32
      %89 = vector.broadcast %cst_54 : f32 to vector<16x128xf32>
      %90 = arith.maximumf %88, %89 : vector<16x128xf32>
      %c0_55 = arith.constant 0 : index
      %c0_56 = arith.constant 0 : index
      %91 = vector.load %arg22[%c0_55, %c0_56] : memref<16x128xf32, #tpu.memory_space<vmem>>, vector<16x128xf32>
      tpu.vector_store %arg22[%c0_55, %c0_56], %90 {strides = array<i32>} : memref<16x128xf32, #tpu.memory_space<vmem>>, vector<16x128xf32>,
    } else {
    }
    %c2_i32_37 = arith.constant 2 : i32
    %60 = arith.cmpi eq, %arg1, %c2_i32_37 : i32
    %61 = arith.extui %60 : i1 to i32
    %c0_i32_38 = arith.constant 0 : i32
    %62 = arith.cmpi ne, %61, %c0_i32_38 : i32
    scf.if %62 {
      %c0_39 = arith.constant 0 : index
      %c0_40 = arith.constant 0 : index
      %c0_41 = arith.constant 0 : index
      %63 = vector.load %arg9[%c0_39, %c0_40, %c0_41] : memref<1x16x128xbf16, #tpu.memory_space<vmem>>, vector<1x16x128xbf16>
      %64 = vector.shape_cast %63 : vector<1x16x128xbf16> to vector<16x128xbf16>
      %65 = arith.truncf %55 : vector<128x128xf32> to vector<128x128xbf16>
      %cst_42 = arith.constant dense<0.000000e+00> : vector<16x128xf32>
      %66 = tpu.matmul %64, %65, %cst_42 {dimension_numbers = #tpu.dot_dimension_numbers<[1], [0], [0], [1], [0, 0, 1, 1], [], []>} : vector<16x128xbf16>, vector<128x128xbf16>, vector<16x128xf32> -> vector<16x128xf32>
      %67 = arith.truncf %66 : vector<16x128xf32> to vector<16x128xbf16>
      %c0_43 = arith.constant 0 : index
      %c0_44 = arith.constant 0 : index
      %68 = vector.load %arg18[%c0_43, %c0_44] : memref<128x128xbf16, #tpu.memory_space<vmem>>, vector<128x128xbf16>
      %cst_45 = arith.constant dense<0.000000e+00> : vector<16x128xf32>
      %69 = tpu.matmul %67, %68, %cst_45 {dimension_numbers = #tpu.dot_dimension_numbers<[1], [0], [0], [1], [0, 0, 1, 1], [], []>} : vector<16x128xbf16>, vector<128x128xbf16>, vector<16x128xf32> -> vector<16x128xf32>
      %c0_46 = arith.constant 0 : index
      %c0_47 = arith.constant 0 : index
      %70 = vector.load %arg19[%c0_46, %c0_47] : memref<1x128xf32, #tpu.memory_space<vmem>>, vector<1x128xf32>
      %71 = vector.broadcast %70 : vector<1x128xf32> to vector<16x128xf32>
      %72 = arith.addf %69, %71 : vector<16x128xf32>
      %c0_48 = arith.constant 0 : index
      %c0_49 = arith.constant 0 : index
      %c0_50 = arith.constant 0 : index
      %73 = vector.load %arg20[%c0_48, %c0_49, %c0_50] : memref<1x16x128xf32, #tpu.memory_space<vmem>>, vector<1x16x128xf32>
      %74 = vector.shape_cast %73 : vector<1x16x128xf32> to vector<16x128xf32>
      %75 = vector.shape_cast %72 : vector<16x128xf32> to vector<1x16x128xf32>
      tpu.vector_store %arg20[%c0_48, %c0_49, %c0_50], %75 {strides = array<i32>} : memref<1x16x128xf32, #tpu.memory_space<vmem>>, vector<1x16x128xf32>,
    } else {
    }
    return
  }
  func.func @transform_0(%arg0: i32, %arg1: i32) -> i32 {
    %c0_i32 = arith.constant 0 : i32
    %c0_i32_0 = arith.constant 0 : i32
    return %c0_i32 : i32
  }
  func.func @transform_1(%arg0: i32, %arg1: i32) -> (i32, i32, i32) {
    %c0_i32 = arith.constant 0 : i32
    %c0_i32_0 = arith.constant 0 : i32
    %c0_i32_1 = arith.constant 0 : i32
    return %arg0, %c0_i32, %c0_i32_0 : i32, i32, i32
  }
  func.func @transform_2(%arg0: i32, %arg1: i32) -> (i32, i32, i32, i32) {
    %c0_i32 = arith.constant 0 : i32
    %c0_i32_0 = arith.constant 0 : i32
    %c0_i32_1 = arith.constant 0 : i32
    return %arg0, %arg1, %c0_i32, %c0_i32_0 : i32, i32, i32, i32
  }
  func.func @transform_3(%arg0: i32, %arg1: i32) -> (i32, i32, i32) {
    %c0_i32 = arith.constant 0 : i32
    %c0_i32_0 = arith.constant 0 : i32
    %c0_i32_1 = arith.constant 0 : i32
    return %arg0, %c0_i32, %c0_i32_0 : i32, i32, i32
  }
  func.func @transform_4(%arg0: i32, %arg1: i32) -> (i32, i32, i32) {
    %c0_i32 = arith.constant 0 : i32
    %c0_i32_0 = arith.constant 0 : i32
    %c0_i32_1 = arith.constant 0 : i32
    return %arg0, %c0_i32, %c0_i32_0 : i32, i32, i32
  }
  func.func @transform_5(%arg0: i32, %arg1: i32) -> (i32, i32, i32) {
    %c0_i32 = arith.constant 0 : i32
    %c0_i32_0 = arith.constant 0 : i32
    %c0_i32_1 = arith.constant 0 : i32
    return %arg0, %c0_i32, %c0_i32_0 : i32, i32, i32
  }
  func.func @transform_6(%arg0: i32, %arg1: i32) -> (i32, i32, i32) {
    %c0_i32 = arith.constant 0 : i32
    %c0_i32_0 = arith.constant 0 : i32
    %c0_i32_1 = arith.constant 0 : i32
    return %arg0, %c0_i32, %c0_i32_0 : i32, i32, i32
  }
  func.func @transform_7(%arg0: i32, %arg1: i32) -> (i32, i32, i32) {
    %c0_i32 = arith.constant 0 : i32
    %c0_i32_0 = arith.constant 0 : i32
    %c0_i32_1 = arith.constant 0 : i32
    return %arg0, %c0_i32, %c0_i32_0 : i32, i32, i32
  }
  func.func @transform_8(%arg0: i32, %arg1: i32) -> (i32, i32, i32) {
    %c0_i32 = arith.constant 0 : i32
    %c0_i32_0 = arith.constant 0 : i32
    %c0_i32_1 = arith.constant 0 : i32
    %c0_i32_2 = arith.constant 0 : i32
    return %c0_i32, %c0_i32_0, %c0_i32_1 : i32, i32, i32
  }
  func.func @transform_9(%arg0: i32, %arg1: i32) -> (i32, i32, i32) {
    %c0_i32 = arith.constant 0 : i32
    %c0_i32_0 = arith.constant 0 : i32
    %c0_i32_1 = arith.constant 0 : i32
    %c0_i32_2 = arith.constant 0 : i32
    return %c0_i32, %c0_i32_0, %c0_i32_1 : i32, i32, i32
  }
  func.func @transform_10(%arg0: i32, %arg1: i32) -> (i32, i32, i32) {
    %c0_i32 = arith.constant 0 : i32
    %c0_i32_0 = arith.constant 0 : i32
    %c0_i32_1 = arith.constant 0 : i32
    %c0_i32_2 = arith.constant 0 : i32
    return %c0_i32, %c0_i32_0, %c0_i32_1 : i32, i32, i32
  }
  func.func @transform_11(%arg0: i32, %arg1: i32) -> (i32, i32, i32) {
    %c0_i32 = arith.constant 0 : i32
    %c0_i32_0 = arith.constant 0 : i32
    %c0_i32_1 = arith.constant 0 : i32
    %c0_i32_2 = arith.constant 0 : i32
    return %c0_i32, %c0_i32_0, %c0_i32_1 : i32, i32, i32
  }
  func.func @transform_12(%arg0: i32, %arg1: i32) -> (i32, i32, i32) {
    %c0_i32 = arith.constant 0 : i32
    %c0_i32_0 = arith.constant 0 : i32
    %c0_i32_1 = arith.constant 0 : i32
    %c0_i32_2 = arith.constant 0 : i32
    return %c0_i32, %c0_i32_0, %c0_i32_1 : i32, i32, i32
  }
  func.func @transform_13(%arg0: i32, %arg1: i32) -> (i32, i32, i32) {
    %c0_i32 = arith.constant 0 : i32
    %c0_i32_0 = arith.constant 0 : i32
    %c0_i32_1 = arith.constant 0 : i32
    %c0_i32_2 = arith.constant 0 : i32
    return %c0_i32, %c0_i32_0, %c0_i32_1 : i32, i32, i32
  }
  func.func @transform_14(%arg0: i32, %arg1: i32) -> (i32, i32, i32) {
    %c0_i32 = arith.constant 0 : i32
    %c0_i32_0 = arith.constant 0 : i32
    %c0_i32_1 = arith.constant 0 : i32
    %c0_i32_2 = arith.constant 0 : i32
    return %c0_i32, %c0_i32_0, %c0_i32_1 : i32, i32, i32
  }
  func.func @transform_15(%arg0: i32, %arg1: i32) -> (i32, i32, i32) {
    %c0_i32 = arith.constant 0 : i32
    %c0_i32_0 = arith.constant 0 : i32
    %c0_i32_1 = arith.constant 0 : i32
    %c0_i32_2 = arith.constant 0 : i32
    return %c0_i32, %c0_i32_0, %c0_i32_1 : i32, i32, i32
  }
  func.func @transform_16(%arg0: i32, %arg1: i32) -> (i32, i32) {
    %c0_i32 = arith.constant 0 : i32
    %c0_i32_0 = arith.constant 0 : i32
    %c0_i32_1 = arith.constant 0 : i32
    return %c0_i32, %c0_i32_0 : i32, i32
  }
  func.func @transform_17(%arg0: i32, %arg1: i32) -> (i32, i32) {
    %c0_i32 = arith.constant 0 : i32
    %c0_i32_0 = arith.constant 0 : i32
    %c0_i32_1 = arith.constant 0 : i32
    return %c0_i32, %c0_i32_0 : i32, i32
  }
  func.func @transform_18(%arg0: i32, %arg1: i32) -> (i32, i32, i32) {
    %c0_i32 = arith.constant 0 : i32
    %c0_i32_0 = arith.constant 0 : i32
    %c0_i32_1 = arith.constant 0 : i32
    return %arg0, %c0_i32, %c0_i32_0 : i32, i32, i32
  }
}

</mosaic_0001>

<bundles_post_ra>
// kernel: tpu_custom_call.1
= control target key start
LH: loop header
LB: loop body
LE: loop exit
PB: predicated region body
PF: predicated region fallthrough
CT: control target
= control target key end

     0   :  { %s6105_s0 = inlined_call_operand.vmem [shape: f32[3], index: 0, kind: input, shape index: {}]   ;;  %s6106_s1 = inlined_call_operand.vmem [shape: bf16[2,128,128], index: 1, kind: input, shape index: {}]   ;;  %s6107_s2 = inlined_call_operand.hbm [shape: bf16[2,3,256,128], index: 2, kind: input, shape index: {}]   ;;  %s6108_s3 = inlined_call_operand.hbm [shape: bf16[2,256,128], index: 3, kind: input, shape index: {}]   ;;  %s6109_s4 = inlined_call_operand.hbm [shape: bf16[2,128,256], index: 4, kind: input, shape index: {}]   ;;  %s6110_s5 = inlined_call_operand.vmem [shape: bf16[2,128,16], index: 5, kind: input, shape index: {}]   ;;  %s6111_s6 = inlined_call_operand.hbm [shape: bf16[2,16,128], index: 6, kind: input, shape index: {}]   ;;  %s6112_s7 = inlined_call_operand.hbm [shape: bf16[2,16,128], index: 7, kind: input, shape index: {}]   ;;  %s6113_s8 = inlined_call_operand.hbm [shape: bf16[3,128,256], index: 8, kind: input, shape index: {}]   ;;  %s6114_s9 = inlined_call_operand.hbm [shape: f32[3,1,256], index: 9, kind: input, shape index: {}]   ;;  %s6115_s10 = inlined_call_operand.hbm [shape: bf16[3,256,128], index: 10, kind: input, shape index: {}]   ;;  %s6116_s11 = inlined_call_operand.hbm [shape: f32[3,1,128], index: 11, kind: input, shape index: {}]   ;;  %s6117_s12 = inlined_call_operand.hbm [shape: bf16[3,128,256], index: 12, kind: input, shape index: {}]   ;;  %s6118_s13 = inlined_call_operand.hbm [shape: f32[3,1,256], index: 13, kind: input, shape index: {}]   ;;  %s6119_s14 = inlined_call_operand.hbm [shape: bf16[3,256,128], index: 14, kind: input, shape index: {}]   ;;  %s6120_s15 = inlined_call_operand.vmem [shape: f32[3,1,128], index: 15, kind: input, shape index: {}]   ;;  %s6121_s16 = inlined_call_operand.vmem [shape: bf16[128,128], index: 16, kind: input, shape index: {}]   ;;  %s6122_s17 = inlined_call_operand.vmem [shape: f32[1,128], index: 17, kind: input, shape index: {}]   ;;  %s6123_s18 = inlined_call_operand.hbm [shape: f32[2,16,128], index: 18, kind: output, shape index: {}]  }
   0x1   :  { %6181 = sst [smem:[#allocation54_spill]] %s6105_s0 }
   0x2   :  { %6182 = sst [smem:[#allocation55_spill]] %s6106_s1 }
   0x3   :  { %6183 = sst [smem:[#allocation56_spill]] %s6107_s2 }
   0x4   :  { %6184 = sst [smem:[#allocation57_spill]] %s6108_s3 }
   0x5   :  { %6185 = sst [smem:[#allocation58_spill]] %s6110_s5 }
   0x6   :  { %6186 = sst [smem:[#allocation59_spill]] %s6111_s6 }
   0x7   :  { %6187 = sst [smem:[#allocation60_spill]] %s6113_s8 }
   0x8   :  { %6188 = sst [smem:[#allocation61_spill]] %s6114_s9 }
   0x9   :  { %6189 = sst [smem:[#allocation62_spill]] %s6115_s10 }
   0xa   :  { %6190 = sst [smem:[#allocation63_spill]] %s6116_s11 }
   0xb   :  { %6191 = sst [smem:[#allocation64_spill]] %s6117_s12 }
   0xc   :  { %6192 = sst [smem:[#allocation65_spill]] %s6118_s13 }
   0xd   :  { %6193 = sst [smem:[#allocation66_spill]] %s6119_s14 }
   0xe   :  { %6194 = sst [smem:[#allocation67_spill]] %s6120_s15 }
   0xf   :  { %6195 = sst [smem:[#allocation68_spill]] %s6121_s16 }
  0x10   :  { %6196 = sst [smem:[#allocation69_spill]] %s6122_s17 }
  0x11   :  { %6197 = sst [smem:[#allocation70_spill]] %s6123_s18 }
  0x12   :  { %23 = vsyncpa [#allocation7], 0 }
  0x13   :  { %24 = vsyncpa [#allocation5], 0 }
  0x14   :  { %26 = vsyncpa [#allocation5 + $0x1], 0 }
  0x15   :  { %27 = vsyncpa [#allocation10], 0 }
  0x16   :  { %29 = vsyncpa [#allocation10 + $0x1], 0 }
  0x17   :  { %30 = vsyncpa [#allocation13], 0 }
  0x18   :  { %32 = vsyncpa [#allocation13 + $0x1], 0 }
  0x19   :  { %33 = vsyncpa [#allocation16], 0 }
  0x1a   :  { %34 = vsyncpa [#allocation19], 0 }
  0x1b   :  { %35 = vsyncpa [#allocation22], 0 }
  0x1c   :  { %36 = vsyncpa [#allocation25], 0 }
  0x1d   :  { %37 = vsyncpa [#allocation6], 0 }
  0x1e   :  { %39 = vsyncpa [#allocation6 + $0x1], 0  ;;  %s4918_s27 = smov 0   ;;  %s4920_s28 = smov 0  }
  0x1f   :  { %s4922_s29 = smov 0   ;;  %s4924_s30 = smov 0  }
  0x20   :  { %s4926_s0 = smov 0   ;;  %s4928_s19 = smov 0  }
  0x21   :  { %s4930_s1 = smov 0   ;;  %s4932_s20 = smov 0  }
  0x22   :  { %s4934_s21 = smov 0   ;;  %s4936_s22 = smov 0  }
  0x23   :  { %s4938_s2 = smov 0  }
  0x24 LB: > { %6198 = sst [smem:[#allocation36_spill]] %s4750_s27  ;;  %s4792_s23 = smov [#allocation15]   ;;  %s4790_s2 = sphi %s4938_s2, %s45_s2   ;;  %s4786_s22 = sphi %s4936_s22, %s6316_s22   ;;  %s4782_s21 = sphi %s4934_s21, %s6310_s21   ;;  %s4778_s20 = sphi %s4932_s20, %s6315_s20   ;;  %s4774_s1 = sphi %s4930_s1, %s6309_s1   ;;  %s4770_s19 = sphi %s4928_s19, %s6314_s19   ;;  %s4766_s0 = sphi %s4926_s0, %s6308_s0   ;;  %s4762_s30 = sphi %s4924_s30, %s6307_s30   ;;  %s4758_s29 = sphi %s4922_s29, %s6313_s29   ;;  %s4754_s28 = sphi %s4920_s28, %s6312_s28   ;;  %s4750_s27 = sphi %s4918_s27, %s6306_s27  }
  0x25   : > { %6199 = sst [smem:[#allocation37_spill]] %s4754_s28  ;;  %s526_s24 = sshll.u32 %s4792_s23, 4  ;;  %s4979_s24 = int_to_ptr.vmem [resolvable:$true] %s526_s24 }
  0x26   : > { %6200 = sst [smem:[#allocation38_spill]] %s4762_s30  ;;  %s4974_s25 = sadd.s32 4294967295, %s4790_s2  }
  0x27   : > { %6201 = sst [smem:[#allocation39_spill]] %s4766_s0  ;;  %p3272_p0 = scmp.ge.s32.totalorder %s4790_s2, 1 }
  0x28   : > { %6202 = sst [smem:[#allocation40_spill]] %s4770_s19  ;;  %p6138_p1 = scmp.eq.s32.totalorder %s4974_s25, 0 }
  0x29   : > { %6203 = sst [smem:[#allocation41_spill]] %s4774_s1  ;;  %p503_p2 = scmp.lt.s32.totalorder %s4790_s2, 7 }
  0x2a   : > { %6204 = sst [smem:[#allocation42_spill]] %s4778_s20  ;;  %s4793_s18 = smov [#allocation18]  }
  0x2b   : > { %6205 = sst [smem:[#allocation43_spill]] %s4782_s21  ;;  %p4981_p3 = pnand %p3272_p0, %p503_p2 }
  0x2c   : > { %6206 = sst [smem:[#allocation44_spill]] %s4974_s25  ;;  %s552_s17 = sshll.u32 %s4793_s18, 4  ;;  %s4993_s17 = int_to_ptr.vmem [resolvable:$true] %s552_s17 }
  0x2d   : > { %s6207_s26 = scalar_select %p4981_p3, 1, 0 }
  0x2e   : > { %p3965_p4 = pneg %p4981_p3  ;;  %s4794_s16 = smov [#allocation21]  }
  0x2f   : > { %6208 = sst [smem:[#allocation45_spill]] %s6207_s26  ;;  %s4995_s15 = sshll.u32 %s4794_s16, 4  ;;  %s579_s15 = int_to_ptr.vmem [resolvable:$true] %s4995_s15 }
  0x30   : > { %p4989_p5 = pnand %p3965_p4, %p6138_p1  ;;  %s6210_s8 = sld [smem:[#allocation60_spill]] }
  0x32   : > { %s6209_s23 = scalar_select %p4989_p5, 1, 0 }
  0x33   : > { %p5005_p7 = pneg %p4989_p5 }
  0x35   : > { %s6211_s18 = scalar_select %p5005_p7, 1, 0 }
  0x36   : > { %s4279_s20 = scalar_lea.hbm %s6210_s8, 6144 }
  0x37   : > { %p4280_p6 = scmp.ne.s32.totalorder %s6210_s8, %s4279_s20  ;;  %p4286_p10 = scmp.lt.u32.totalorder %s4279_s20, %s6210_s8 }
  0x39   : > { %p4282_p8 = pnand %p5005_p7, %p4280_p6 }
  0x3b   : > { %p4283_p9 = pneg %p4282_p8 }
  0x3d   : > { %p4288_p11 = pnand %p4286_p10, %p4283_p9 }
  0x3f   : > { %4291 = shalt.err (!%p4288_p11)
}
  0x40   : > { %s4292_s5 = scalar_lea.vmem %s4979_s24, 6144  ;;  %p4300_p2 = scmp.lt.s32.totalorder %s4979_s24, %s4979_s24 }
  0x41   : > { %p4293_p12 = scmp.ne.s32.totalorder %s4979_s24, %s4292_s5  ;;  %p4301_p4 = scmp.lt.s32.totalorder %s4292_s5, %s4292_s5 }
  0x43   : > { %p4295_p13 = pnand %p4293_p12, %p5005_p7  ;;  %p4302_p6 = por %p4301_p4, %p4300_p2 }
  0x45   : > { %p4296_p0 = pneg %p4295_p13 }
  0x47   : > { %p4303_p8 = pnand %p4302_p6, %p4296_p0 }
  0x49   : > { %4306 = shalt.err (!%p4303_p8)
}
  0x4a   : > { %s6136_s30 = smov 128   ;;  %s6140_s0 = smov 8  }
  0x4b   : > { %3971 = dma.hbm_to_vmem [thread:$0]  (!%p4989_p5), %s6210_s8, 6144, %s4979_s24, [#allocation16], %s6136_s30, %s6136_s30, %s6140_s0  }
  0x4c   : > { %s6212_s10 = sld [smem:[#allocation62_spill]] }
  0x52   : > { %s4307_s5 = scalar_lea.hbm %s6212_s10, 6144 }
  0x53   : > { %p4308_p9 = scmp.ne.s32.totalorder %s6212_s10, %s4307_s5  ;;  %p4314_p12 = scmp.lt.u32.totalorder %s4307_s5, %s6212_s10 }
  0x55   : > { %p4310_p10 = pnand %p4308_p9, %p5005_p7 }
  0x57   : > { %p4311_p11 = pneg %p4310_p10 }
  0x59   : > { %p4316_p13 = pnand %p4314_p12, %p4311_p11 }
  0x5b   : > { %4319 = shalt.err (!%p4316_p13)
}
  0x5c   : > { %s4320_s24 = scalar_lea.vmem %s4993_s17, 6144  ;;  %p4328_p6 = scmp.lt.s32.totalorder %s4993_s17, %s4993_s17 }
  0x5d   : > { %p4321_p0 = scmp.ne.s32.totalorder %s4993_s17, %s4320_s24  ;;  %p4329_p8 = scmp.lt.s32.totalorder %s4320_s24, %s4320_s24 }
  0x5f   : > { %p4323_p2 = pnand %p4321_p0, %p5005_p7  ;;  %p4330_p9 = por %p4329_p8, %p4328_p6 }
  0x61   : > { %p4324_p4 = pneg %p4323_p2 }
  0x63   : > { %p4331_p10 = pnand %p4330_p9, %p4324_p4 }
  0x65   : > { %4334 = shalt.err (!%p4331_p10)
}
  0x66   : > { %s6141_s19 = smov 64   ;;  %s6143_s13 = smov 4  }
  0x67   : > { %3977 = dma.hbm_to_vmem [thread:$0]  (!%p4989_p5), %s6212_s10, 6144, %s4993_s17, [#allocation19], %s6141_s19, %s6141_s19, %s6143_s13  }
  0x68   : > { %s6213_s12 = sld [smem:[#allocation64_spill]] }
  0x6e   : > { %s4335_s26 = scalar_lea.hbm %s6213_s12, 6144 }
  0x6f   : > { %p4336_p11 = scmp.ne.s32.totalorder %s6213_s12, %s4335_s26  ;;  %p4342_p0 = scmp.lt.u32.totalorder %s4335_s26, %s6213_s12 }
  0x71   : > { %p4338_p12 = pnand %p4336_p11, %p5005_p7 }
  0x73   : > { %p4339_p13 = pneg %p4338_p12 }
  0x75   : > { %p4344_p2 = pnand %p4342_p0, %p4339_p13 }
  0x77   : > { %4347 = shalt.err (!%p4344_p2)
}
  0x78   : > { %s4348_s14 = scalar_lea.vmem %s579_s15, 6144  ;;  %p4356_p9 = scmp.lt.s32.totalorder %s579_s15, %s579_s15 }
  0x79   : > { %p4349_p4 = scmp.ne.s32.totalorder %s579_s15, %s4348_s14  ;;  %p4357_p10 = scmp.lt.s32.totalorder %s4348_s14, %s4348_s14 }
  0x7b   : > { %p4351_p6 = pnand %p4349_p4, %p5005_p7  ;;  %p4358_p1 = por %p4357_p10, %p4356_p9 }
  0x7d   : > { %p4352_p8 = pneg %p4351_p6 }
  0x7f   : > { %p4359_p3 = pnand %p4358_p1, %p4352_p8 }
  0x81   : > { %4362 = shalt.err (!%p4359_p3)
}
  0x82   : > { %s6214_s17 = smov 128   ;;  %s3271_s1 = sadd.s32 4294967294, %s4790_s2  }
  0x83   : > { %3983 = dma.hbm_to_vmem [thread:$0]  (!%p4989_p5), %s6213_s12, 6144, %s579_s15, [#allocation22], %s6214_s17, %s6214_s17, %s6140_s0  }
  0x84   : > { %p6148_p1 = scmp.eq.s32.totalorder %s4790_s2, 0  ;;  %p146_p3 = scmp.ne.s32.totalorder %s4758_s29, %s4754_s28 }
  0x85   : > { %p152_p11 = scmp.ne.s32.totalorder %s4754_s28, %s4750_s27  ;;  %p490_p12 = scmp.eq.s32.totalorder %s4974_s25, 5 }
  0x86   : > { %p496_p13 = scmp.eq.s32.totalorder %s3271_s1, 5  ;;  %p148_p0 = por %p146_p3, %p6148_p1 }
  0x87   : > { %p6215_p2 = scmp.eq.s32.totalorder %s4974_s25, 0  ;;  %p5093_p6 = por %p490_p12, %p146_p3 }
  0x88   : > { %p5097_p8 = por %p496_p13, %p152_p11  ;;  %p6147_p9 = scmp.lt.s32.totalorder %s4790_s2, 6 }
  0x89   : > { %p5089_p4 = por %p152_p11, %p6215_p2  ;;  %s6145_s24 = sand.u32 1, %s4758_s29  }
  0x8a   : > { %s6218_s16 = scalar_select %p5093_p6, 1, 0 }
  0x8b   : > { %s6216_s26 = scalar_select %p5089_p4, 1, 0 }
  0x8c   : > { %6219 = sst [smem:[#allocation47_spill]] %s6218_s16  ;;  %s5106_s14 = sshll.u32 %s6145_s24, 7 }
  0x8d   : > { %6217 = sst [smem:[#allocation46_spill]] %s6216_s26  ;;  %s3455_s30 = sshll.u32 %s4786_s22, 11 }
  0x8e   : > { %s6220_s15 = scalar_select %p5097_p8, 1, 0 }
  0x8f   : > { %s6222_s3 = sld [smem:[#allocation57_spill]]  ;;  %s662_s20 = scalar_lea.vmem [#allocation9], %s5106_s14 }
  0x90   : > { %6221 = sst [smem:[#allocation48_spill]] %s6220_s15  ;;  %s669_s19 = sshll.u32 %s662_s20, 4  ;;  %s5121_s19 = int_to_ptr.vmem [resolvable:$true] %s669_s19 }
  0x91   : > { %p5117_p10 = pnand %p6147_p9, %p148_p0  ;;  %s5126_s21 = scalar_lea.hbm %s6109_s4, %s3455_s30 }
  0x92   : > { %s6224_s1 = sand.u32 1, %s4790_s2  }
  0x93   : > { %s6223_s13 = scalar_select %p5117_p10, 1, 0 }
  0x94   : > { %s5130_s8 = scalar_lea.sflag [#allocation10], %s6224_s1  ;;  %p5136_p11 = pneg %p5117_p10 }
  0x95   : > { %s5112_s0 = scalar_lea.hbm %s6222_s3, %s3455_s30  ;;  %6225 = sst [smem:[#allocation49_spill]] %s5130_s8 }
  0x96   : > { %s4363_s10 = scalar_lea.hbm %s5112_s0, 2048  ;;  %s4368_s5 = scalar_lea.hbm %s6222_s3, 4096 }
  0x97   : > { %p4364_p3 = scmp.ne.s32.totalorder %s5112_s0, %s4363_s10  ;;  %p4369_p0 = scmp.lt.u32.totalorder %s5112_s0, %s6222_s3 }
  0x98   : > { %s6226_s20 = scalar_select %p5136_p11, 1, 0 }
  0x99   : > { %p4366_p12 = pnand %p5136_p11, %p4364_p3  ;;  %p4370_p2 = scmp.lt.u32.totalorder %s4368_s5, %s4363_s10 }
  0x9a   : > { %p4372_p1 = scmp.lt.u32.totalorder %s4363_s10, %s5112_s0 }
  0x9b   : > { %p4367_p13 = pneg %p4366_p12  ;;  %p4371_p9 = por %p4370_p2, %p4369_p0 }
  0x9d   : > { %p4373_p8 = por %p4372_p1, %p4371_p9 }
  0x9f   : > { %p4374_p6 = pnand %p4373_p8, %p4367_p13 }
  0xa1   : > { %4377 = shalt.err (!%p4374_p6)
}
  0xa2   : > { %s4378_s1 = scalar_lea.vmem %s5121_s19, 2048  ;;  %s4799_s12 = smov [#allocation9]  }
  0xa3   : > { %p4379_p3 = scmp.ne.s32.totalorder %s5121_s19, %s4378_s1  ;;  %s4383_s15 = sshll.u32 %s4799_s12, 4  ;;  %s4384_s15 = int_to_ptr.vmem [resolvable:$false] %s4383_s15 }
  0xa4   : > { %s4385_s24 = scalar_lea.vmem %s4384_s15, 4096  ;;  %p4386_p5 = scmp.lt.s32.totalorder %s5121_s19, %s4384_s15 }
  0xa5   : > { %p4381_p12 = pnand %p4379_p3, %p5136_p11  ;;  %p4387_p7 = scmp.lt.s32.totalorder %s4385_s24, %s4378_s1 }
  0xa7   : > { %p4382_p4 = pneg %p4381_p12  ;;  %p4388_p0 = por %p4387_p7, %p4386_p5 }
  0xa9   : > { %p4389_p2 = pnand %p4388_p0, %p4382_p4 }
  0xab   : > { %4392 = shalt.err (!%p4389_p2)
}
  0xac   : > { %s6227_s10 = smov 4   ;;  %s6228_s5 = smov 64  }
  0xad   : > { %3996 = dma.hbm_to_vmem [thread:$0]  (!%p5117_p10), %s5112_s0, 2048, %s5121_s19, %s5130_s8, %s6228_s5, %s6228_s5, %s6227_s10  }
  0xae   : > { %s683_s30 = scalar_lea.vmem [#allocation11], %s5106_s14  ;;  %s6229_s12 = sand.u32 1, %s4758_s29  }
  0xaf   : > { %s690_s1 = sshll.u32 %s683_s30, 4  ;;  %s5168_s15 = sshll.u32 %s6229_s12, 3  ;;  %s5164_s1 = int_to_ptr.vmem [resolvable:$true] %s690_s1 }
  0xb0   : > { %s6160_s24 = sshll.u32 %s4786_s22, 7  ;;  %s6230_s6 = sld [smem:[#allocation59_spill]] }
  0xb1   : > { %s712_s0 = scalar_lea.vmem [#allocation12], %s5168_s15  ;;  %s6231_s14 = sand.u32 1, %s4790_s2  }
  0xb2   : > { %s719_s19 = sshll.u32 %s712_s0, 4  ;;  %s5183_s30 = scalar_lea.sflag [#allocation13], %s6231_s14  ;;  %s5179_s19 = int_to_ptr.vmem [resolvable:$true] %s719_s19 }
  0xb3   : > { %6232 = sst [smem:[#allocation50_spill]] %s5183_s30 }
  0xb6   : > { %s5176_s16 = scalar_lea.hbm %s6230_s6, %s6160_s24  ;;  %s4398_s27 = scalar_lea.hbm %s6230_s6, 256 }
  0xb7   : > { %s4393_s12 = scalar_lea.hbm %s5176_s16, 128  ;;  %p4399_p4 = scmp.lt.u32.totalorder %s5176_s16, %s6230_s6 }
  0xb8   : > { %p4394_p5 = scmp.ne.s32.totalorder %s5176_s16, %s4393_s12  ;;  %p4400_p6 = scmp.lt.u32.totalorder %s4398_s27, %s4393_s12 }
  0xb9   : > { %p4402_p9 = scmp.lt.u32.totalorder %s4393_s12, %s5176_s16 }
  0xba   : > { %p4396_p7 = pnand %p4394_p5, %p5136_p11  ;;  %p4401_p8 = por %p4400_p6, %p4399_p4 }
  0xbc   : > { %p4397_p1 = pneg %p4396_p7  ;;  %p4403_p13 = por %p4402_p9, %p4401_p8 }
  0xbe   : > { %p4404_p3 = pnand %p4403_p13, %p4397_p1 }
  0xc0   : > { %4407 = shalt.err (!%p4404_p3)
}
  0xc1   : > { %s4408_s0 = scalar_lea.vmem %s5179_s19, 128  ;;  %s4800_s26 = smov [#allocation12]  }
  0xc2   : > { %p4409_p12 = scmp.ne.s32.totalorder %s5179_s19, %s4408_s0  ;;  %s4413_s14 = sshll.u32 %s4800_s26, 4  ;;  %s4414_s14 = int_to_ptr.vmem [resolvable:$false] %s4413_s14 }
  0xc3   : > { %s4415_s28 = scalar_lea.vmem %s4414_s14, 256  ;;  %p4416_p5 = scmp.lt.s32.totalorder %s5179_s19, %s4414_s14 }
  0xc4   : > { %p4411_p0 = pnand %p4409_p12, %p5136_p11  ;;  %p4417_p7 = scmp.lt.s32.totalorder %s4415_s28, %s4408_s0 }
  0xc6   : > { %p4412_p2 = pneg %p4411_p0  ;;  %p4418_p4 = por %p4417_p7, %p4416_p5 }
  0xc8   : > { %p4419_p6 = pnand %p4418_p4, %p4412_p2 }
  0xca   : > { %4422 = shalt.err (!%p4419_p6)
}
  0xcb   : > { %4002 = dma.hbm_to_vmem [thread:$0]  (!%p5117_p10), %s5176_s16, 128, %s5179_s19, %s5183_s30, %s6228_s5, %s6228_s5, %s6227_s10  }
  0xcc   : > { %s6233_s24 = sshll.u32 %s4786_s22, 7  ;;  %s733_s0 = scalar_lea.vmem [#allocation14], %s5168_s15 }
  0xcd   : > { %s5215_s27 = scalar_lea.hbm %s6112_s7, %s6233_s24  ;;  %s740_s26 = sshll.u32 %s733_s0, 4  ;;  %s5218_s26 = int_to_ptr.vmem [resolvable:$true] %s740_s26 }
  0xce   : > { %6234 = sst [smem:[#allocation51_spill]] %s5218_s26  ;;  %s6235_s6 = sld [smem:[#allocation54_spill]] }
  0xcf   : > { %p6236_p8 = scmp.ne.s32.totalorder %s6211_s18, 0 }
  0xd4   : > { %s516_s8 = sshll.u32 %s6235_s6, 4  ;;  %s517_s8 = int_to_ptr.vmem [resolvable:$true] %s516_s8 }
  0xd5   : > { %s4423_s17 = scalar_lea.vmem %s517_s8, 16  ;;  %p4431_p3 = scmp.lt.s32.totalorder %s517_s8, %s517_s8 }
  0xd6   : > { %p4424_p1 = scmp.ne.s32.totalorder %s517_s8, %s4423_s17  ;;  %p4432_p12 = scmp.lt.s32.totalorder %s4423_s17, %s4423_s17 }
  0xd8   : > { %p4426_p9 = pnand %p4424_p1, %p6236_p8  ;;  %p4433_p0 = por %p4432_p12, %p4431_p3 }
  0xda   : > { %p4427_p13 = pneg %p4426_p9 }
  0xdc   : > { %p4434_p2 = pnand %p4433_p0, %p4427_p13 }
  0xde   : > { %4437 = shalt.err (!%p4434_p2)
}
  0xdf   : > { %s4801_s16 = smov [#allocation4]   ;;  %p6237_p5 = scmp.ne.s32.totalorder %s6209_s23, 0 }
  0xe0   : > { %s4802_s15 = smov [#allocation17]   ;;  %s6238_s9 = sld [smem:[#allocation61_spill]] }
  0xe1   : > { %3968 = dma.vmem_to_smem (!%p6237_p5), %s517_s8, 16, %s4801_s16, [#allocation7]  }
  0xe2   : > { %s539_s19 = sshll.u32 %s4802_s15, 4  ;;  %s540_s19 = int_to_ptr.vmem [resolvable:$true] %s539_s19 }
  0xe6   : > { %s4438_s12 = scalar_lea.hbm %s6238_s9, 96 }
  0xe7   : > { %p4439_p7 = scmp.ne.s32.totalorder %s6238_s9, %s4438_s12  ;;  %p4445_p1 = scmp.lt.u32.totalorder %s4438_s12, %s6238_s9 }
  0xe9   : > { %p4441_p4 = pnand %p4439_p7, %p6236_p8 }
  0xeb   : > { %p4442_p6 = pneg %p4441_p4 }
  0xed   : > { %p4447_p9 = pnand %p4445_p1, %p4442_p6 }
  0xef   : > { %4450 = shalt.err (!%p4447_p9)
}
  0xf0   : > { %s4451_s8 = scalar_lea.vmem %s540_s19, 96  ;;  %p4459_p0 = scmp.lt.s32.totalorder %s540_s19, %s540_s19 }
  0xf1   : > { %p4452_p13 = scmp.ne.s32.totalorder %s540_s19, %s4451_s8  ;;  %p4460_p2 = scmp.lt.s32.totalorder %s4451_s8, %s4451_s8 }
  0xf3   : > { %p4454_p3 = pnand %p4452_p13, %p6236_p8  ;;  %p4461_p10 = por %p4460_p2, %p4459_p0 }
  0xf5   : > { %p4455_p12 = pneg %p4454_p3 }
  0xf7   : > { %p4462_p11 = pnand %p4461_p10, %p4455_p12 }
  0xf9   : > { %4465 = shalt.err (!%p4462_p11)
}
  0xfa   : > { %s6169_s28 = smov 32   ;;  %s6170_s16 = smov 2  }
  0xfb   : > { %3974 = dma.hbm_to_vmem [thread:$0]  (!%p6237_p5), %s6238_s9, 96, %s540_s19, [#allocation16], %s6169_s28, %s6169_s28, %s6170_s16  }
  0xfc   : > { %s4805_s24 = smov [#allocation20]   ;;  %s6239_s11 = sld [smem:[#allocation63_spill]] }
  0xfd   : > { %s565_s12 = sshll.u32 %s4805_s24, 4  ;;  %s566_s12 = int_to_ptr.vmem [resolvable:$true] %s565_s12 }
 0x102   : > { %s4466_s17 = scalar_lea.hbm %s6239_s11, 48 }
 0x103   : > { %p4467_p10 = scmp.ne.s32.totalorder %s6239_s11, %s4466_s17  ;;  %p4473_p4 = scmp.lt.u32.totalorder %s4466_s17, %s6239_s11 }
 0x105   : > { %p4469_p11 = pnand %p4467_p10, %p6236_p8 }
 0x107   : > { %p4470_p7 = pneg %p4469_p11 }
 0x109   : > { %p4475_p6 = pnand %p4473_p4, %p4470_p7 }
 0x10b   : > { %4478 = shalt.err (!%p4475_p6)
}
 0x10c   : > { %s4479_s19 = scalar_lea.vmem %s566_s12, 48  ;;  %s4486_s15 = scalar_lea.vmem %s566_s12, 64 }
 0x10d   : > { %p4480_p1 = scmp.ne.s32.totalorder %s566_s12, %s4479_s19  ;;  %p4487_p3 = scmp.lt.s32.totalorder %s566_s12, %s566_s12 }
 0x10e   : > { %p4488_p12 = scmp.lt.s32.totalorder %s4486_s15, %s4479_s19 }
 0x10f   : > { %p4482_p9 = pnand %p4480_p1, %p6236_p8 }
 0x110   : > { %p4489_p0 = por %p4488_p12, %p4487_p3 }
 0x111   : > { %p4483_p13 = pneg %p4482_p9 }
 0x113   : > { %p4490_p2 = pnand %p4489_p0, %p4483_p13 }
 0x115   : > { %4493 = shalt.err (!%p4490_p2)
}
 0x116   : > { %s4806_s6 = smov 16   ;;  %s4807_s24 = smov 1  }
 0x117   : > { %3980 = dma.hbm_to_vmem [thread:$0]  (!%p6237_p5), %s6239_s11, 48, %s566_s12, [#allocation19], %s4806_s6, %s4806_s6, %s4807_s24  }
 0x118   : > { %s4808_s3 = smov [#allocation23]   ;;  %s4809_s17 = smov [#allocation24]  }
 0x119   : > { %s591_s0 = sshll.u32 %s4808_s3, 4  ;;  %s604_s14 = sshll.u32 %s4809_s17, 4  ;;  %s592_s0 = int_to_ptr.vmem [resolvable:$true] %s591_s0  ;;  %s5266_s14 = int_to_ptr.vmem [resolvable:$true] %s604_s14 }
 0x11a   : > { %s6240_s15 = sld [smem:[#allocation65_spill]] }
 0x120   : > { %s4494_s28 = scalar_lea.hbm %s6240_s15, 96 }
 0x121   : > { %p4495_p10 = scmp.ne.s32.totalorder %s6240_s15, %s4494_s28  ;;  %p4501_p4 = scmp.lt.u32.totalorder %s4494_s28, %s6240_s15 }
 0x123   : > { %p4497_p11 = pnand %p4495_p10, %p6236_p8 }
 0x125   : > { %p4498_p7 = pneg %p4497_p11 }
 0x127   : > { %p4503_p6 = pnand %p4501_p4, %p4498_p7 }
 0x129   : > { %4506 = shalt.err (!%p4503_p6)
}
 0x12a   : > { %s4507_s6 = scalar_lea.vmem %s592_s0, 96  ;;  %p4515_p3 = scmp.lt.s32.totalorder %s592_s0, %s592_s0 }
 0x12b   : > { %p4508_p1 = scmp.ne.s32.totalorder %s592_s0, %s4507_s6  ;;  %p4516_p12 = scmp.lt.s32.totalorder %s4507_s6, %s4507_s6 }
 0x12d   : > { %p4510_p9 = pnand %p4508_p1, %p6236_p8  ;;  %p4517_p0 = por %p4516_p12, %p4515_p3 }
 0x12f   : > { %p4511_p13 = pneg %p4510_p9 }
 0x131   : > { %p4518_p2 = pnand %p4517_p0, %p4511_p13 }
 0x133   : > { %4521 = shalt.err (!%p4518_p2)
}
 0x134   : > { %s6241_s9 = smov 2   ;;  %s6242_s16 = smov 32  }
 0x135   : > { %3986 = dma.hbm_to_vmem [thread:$0]  (!%p6237_p5), %s6240_s15, 96, %s592_s0, [#allocation22], %s6242_s16, %s6242_s16, %s6241_s9  }
 0x136   : > { %s6243_s17 = sld [smem:[#allocation66_spill]] }
 0x13c   : > { %s4522_s8 = scalar_lea.hbm %s6243_s17, 6144 }
 0x13d   : > { %p4523_p10 = scmp.ne.s32.totalorder %s6243_s17, %s4522_s8  ;;  %p4529_p4 = scmp.lt.u32.totalorder %s4522_s8, %s6243_s17 }
 0x13f   : > { %p4525_p11 = pnand %p4523_p10, %p6236_p8 }
 0x141   : > { %p4526_p7 = pneg %p4525_p11 }
 0x143   : > { %p4531_p6 = pnand %p4529_p4, %p4526_p7 }
 0x145   : > { %4534 = shalt.err (!%p4531_p6)
}
 0x146   : > { %s4535_s0 = scalar_lea.vmem %s5266_s14, 6144  ;;  %p4543_p3 = scmp.lt.s32.totalorder %s5266_s14, %s5266_s14 }
 0x147   : > { %p4536_p1 = scmp.ne.s32.totalorder %s5266_s14, %s4535_s0  ;;  %p4544_p12 = scmp.lt.s32.totalorder %s4535_s0, %s4535_s0 }
 0x149   : > { %p4538_p9 = pnand %p4536_p1, %p6236_p8  ;;  %p4545_p0 = por %p4544_p12, %p4543_p3 }
 0x14b   : > { %p4539_p13 = pneg %p4538_p9 }
 0x14d   : > { %p4546_p2 = pnand %p4545_p0, %p4539_p13 }
 0x14f   : > { %4549 = shalt.err (!%p4546_p2)
}
 0x150   : > { %s6244_s24 = sld [smem:[#allocation43_spill]]  ;;  %s6245_s18 = sld [smem:[#allocation40_spill]] }
 0x151   : > { %s6246_s28 = sld [smem:[#allocation39_spill]]  ;;  %s6247_s26 = sld [smem:[#allocation38_spill]] }
 0x152   : > { %3989 = dma.hbm_to_vmem [thread:$0]  (!%p6237_p5), %s6243_s17, 6144, %s5266_s14, [#allocation25], %s6228_s5, %s6228_s5, %s6227_s10  }
 0x153   : > { %s57_s3 = sadd.s32 1, %s4786_s22  ;;  %p6249_p7 = scmp.eq.s32.totalorder %s4790_s2, 0 }
 0x154   : > { %p6251_p6 = scmp.eq.s32.totalorder %s4974_s25, 0  ;;  %s6256_s25 = sld [smem:[#allocation56_spill]] }
 0x155   : > { %p6257_p3 = scmp.lt.s32.totalorder %s4790_s2, 6  ;;  %p6259_p2 = scmp.ne.s32.totalorder %s6226_s20, 0 }
 0x156   : > { %s54_s23 = sadd.s32 1, %s6244_s24  ;;  %s113_s8 = sadd.s32 1, %s6245_s18 }
 0x157   : > { %p55_p8 = scmp.ge.s32.totalorder %s54_s23, 3  ;;  %p120_p10 = scmp.ne.s32.totalorder %s6245_s18, %s6246_s28 }
 0x158   : > { %p126_p11 = scmp.ne.s32.totalorder %s6246_s28, %s6247_s26  ;;  %s6176_s12 = sand.u32 1, %s6245_s18  }
 0x159   : > { %s6318_s23 = smov (%p55_p8, %s54_s23), 0  ;;  %s6320_s3 = smov (!%p55_p8, %s57_s3), %s4786_s22 }
 0x15a   : > { %6248 = sst [smem:[#allocation52_spill]] %s6318_s23  ;;  %s109_s19 = ssub.s32 %s6244_s24, %s6318_s23 }
 0x15b   : > { %p5329_p4 = por %p6249_p7, %p120_p10  ;;  %p59_p5 = scmp.ge.s32.totalorder %s6320_s3, 2 }
 0x15c   : > { %p5335_p1 = por %p6251_p6, %p126_p11  ;;  %s3283_s6 = sshll.u32 %s6244_s24, 5 }
 0x15d   : > { %s6322_s3 = smov (%p59_p5, %s6320_s3), 0  ;;  %s3282_s0 = sshll.u32 %s6176_s12, 7 }
 0x15e   : > { %s6252_s30 = scalar_select %p5335_p1, 1, 0 }
 0x15f   : > { %6254 = sst [smem:[#allocation53_spill]] %s6322_s3  ;;  %s108_s9 = ssub.s32 %s4786_s22, %s6322_s3 }
 0x160   : > { %6253 = sst [smem:[#allocation38_spill]] %s6252_s30  ;;  %s110_s16 = sor.u32 %s109_s19, %s108_s9 }
 0x161   : > { %p137_p9 = scmp.eq.s32.totalorder %s108_s9, 0  ;;  %p111_p13 = scmp.eq.s32.totalorder %s110_s16, 0 }
 0x162   : > { %s3920_s28 = smul.u32 96, %s4786_s22  ;;  %s6255_s26 = sadd.s32 1, %s4758_s29 }
 0x163   : > { %s5351_s11 = scalar_select %p137_p9, %s4758_s29, %s6255_s26  }
 0x164   : > { %s5354_s24 = scalar_select %p111_p13, %s6245_s18, %s113_s8  }
 0x165   : > { %s645_s15 = sadd.s32 %s3920_s28, %s3283_s6  ;;  %s639_s17 = scalar_lea.vmem [#allocation8], %s3282_s0 }
 0x166   : > { %s648_s23 = sshll.u32 %s639_s17, 4  ;;  %s3284_s30 = sshll.u32 %s645_s15, 6  ;;  %s5356_s23 = int_to_ptr.vmem [resolvable:$true] %s648_s23 }
 0x167   : > { %s5361_s19 = scalar_lea.hbm %s6256_s25, %s3284_s30  ;;  %p5367_p12 = pnand %p6257_p3, %p5329_p4 }
 0x168   : > { %s4550_s8 = scalar_lea.hbm %s5126_s21, 2048  ;;  %s4555_s6 = scalar_lea.hbm %s6109_s4, 4096 }
 0x169   : > { %p4551_p0 = scmp.ne.s32.totalorder %s5126_s21, %s4550_s8  ;;  %p4556_p11 = scmp.lt.u32.totalorder %s5126_s21, %s6109_s4 }
 0x16a   : > { %p4557_p7 = scmp.lt.u32.totalorder %s4555_s6, %s4550_s8  ;;  %p4559_p6 = scmp.lt.u32.totalorder %s4550_s8, %s5126_s21 }
 0x16b   : > { %p4553_p8 = pnand %p4551_p0, %p6259_p2 }
 0x16c   : > { %p4558_p5 = por %p4557_p7, %p4556_p11 }
 0x16d   : > { %p4554_p10 = pneg %p4553_p8 }
 0x16e   : > { %p4560_p4 = por %p4559_p6, %p4558_p5 }
 0x170   : > { %p4561_p9 = pnand %p4560_p4, %p4554_p10 }
 0x172   : > { %4564 = shalt.err (!%p4561_p9)
}
 0x173   : > { %s4565_s3 = scalar_lea.vmem %s5164_s1, 2048  ;;  %s4810_s14 = smov [#allocation11]  }
 0x174   : > { %p4566_p13 = scmp.ne.s32.totalorder %s5164_s1, %s4565_s3  ;;  %s4570_s30 = sshll.u32 %s4810_s14, 4  ;;  %s4571_s30 = int_to_ptr.vmem [resolvable:$false] %s4570_s30 }
 0x175   : > { %s4572_s12 = scalar_lea.vmem %s4571_s30, 4096  ;;  %p4573_p8 = scmp.lt.s32.totalorder %s5164_s1, %s4571_s30 }
 0x176   : > { %p4568_p3 = pnand %p4566_p13, %p6259_p2  ;;  %p4574_p1 = scmp.lt.s32.totalorder %s4572_s12, %s4565_s3 }
 0x178   : > { %p4569_p0 = pneg %p4568_p3  ;;  %p4575_p11 = por %p4574_p1, %p4573_p8 }
 0x17a   : > { %p4576_p7 = pnand %p4575_p11, %p4569_p0 }
 0x17c   : > { %4579 = shalt.err (!%p4576_p7)
}
 0x17d   : > { %p6260_p10 = scmp.ne.s32.totalorder %s6223_s13, 0  ;;  %s6261_s28 = smov 8  }
 0x17e   : > { %s6262_s26 = smov 128   ;;  %s6263_s8 = sld [smem:[#allocation49_spill]] }
 0x17f   : > { %s6264_s17 = sand.u32 1, %s6245_s18   ;;  %s4580_s6 = scalar_lea.hbm %s5361_s19, 2048 }
 0x180   : > { %s5398_s15 = scalar_lea.sflag [#allocation5], %s6264_s17  ;;  %p4581_p1 = scmp.ne.s32.totalorder %s5361_s19, %s4580_s6 }
 0x181   : > { %p4582_p5 = pneg %p5367_p12  ;;  %s4585_s3 = scalar_lea.hbm %s6256_s25, 12288 }
 0x182   : > { %p4586_p9 = scmp.lt.u32.totalorder %s5361_s19, %s6256_s25  ;;  %p4587_p13 = scmp.lt.u32.totalorder %s4585_s3, %s4580_s6 }
 0x183   : > { %p4583_p6 = pnand %p4582_p5, %p4581_p1  ;;  %p4589_p0 = scmp.lt.u32.totalorder %s4580_s6, %s5361_s19 }
 0x184   : > { %3999 = dma.hbm_to_vmem [thread:$0]  (!%p6260_p10), %s5126_s21, 2048, %s5164_s1, %s6263_s8, %s6262_s26, %s6262_s26, %s6261_s28  }
 0x185   : > { %p4584_p4 = pneg %p4583_p6  ;;  %p4588_p3 = por %p4587_p13, %p4586_p9 }
 0x187   : > { %p4590_p8 = por %p4589_p0, %p4588_p3 }
 0x189   : > { %p4591_p11 = pnand %p4590_p8, %p4584_p4 }
 0x18b   : > { %4594 = shalt.err (!%p4591_p11)
}
 0x18c   : > { %s4595_s21 = scalar_lea.vmem %s5356_s23, 2048  ;;  %s4811_s1 = smov [#allocation8]  }
 0x18d   : > { %p4596_p7 = scmp.ne.s32.totalorder %s5356_s23, %s4595_s21  ;;  %s4600_s18 = sshll.u32 %s4811_s1, 4  ;;  %s4601_s18 = int_to_ptr.vmem [resolvable:$false] %s4600_s18 }
 0x18e   : > { %s4602_s12 = scalar_lea.vmem %s4601_s18, 4096  ;;  %p4603_p10 = scmp.lt.s32.totalorder %s5356_s23, %s4601_s18 }
 0x18f   : > { %p4598_p1 = pnand %p4596_p7, %p4582_p5  ;;  %p4604_p9 = scmp.lt.s32.totalorder %s4602_s12, %s4595_s21 }
 0x191   : > { %p4599_p6 = pneg %p4598_p1  ;;  %p4605_p13 = por %p4604_p9, %p4603_p10 }
 0x193   : > { %p4606_p3 = pnand %p4605_p13, %p4599_p6 }
 0x195   : > { %4609 = shalt.err (!%p4606_p3)
}
 0x196   : > { %3993 = dma.hbm_to_vmem [thread:$0]  (!%p5367_p12), %s5361_s19, 2048, %s5356_s23, %s5398_s15, %s6228_s5, %s6228_s5, %s6227_s10  }
 0x197   : > { %s4610_s28 = scalar_lea.hbm %s5215_s27, 128  ;;  %s4615_s9 = scalar_lea.hbm %s6112_s7, 256 }
 0x198   : > { %p4611_p5 = scmp.ne.s32.totalorder %s5215_s27, %s4610_s28  ;;  %p4616_p0 = scmp.lt.u32.totalorder %s5215_s27, %s6112_s7 }
 0x199   : > { %p4617_p8 = scmp.lt.u32.totalorder %s4615_s9, %s4610_s28  ;;  %p4619_p7 = scmp.lt.u32.totalorder %s4610_s28, %s5215_s27 }
 0x19a   : > { %p4613_p10 = pnand %p4611_p5, %p6259_p2 }
 0x19b   : > { %p4618_p11 = por %p4617_p8, %p4616_p0 }
 0x19c   : > { %p4614_p4 = pneg %p4613_p10 }
 0x19d   : > { %p4620_p1 = por %p4619_p7, %p4618_p11 }
 0x19f   : > { %p4621_p6 = pnand %p4620_p1, %p4614_p4 }
 0x1a1   : > { %4624 = shalt.err (!%p4621_p6)
}
 0x1a2   : > { %s6265_s23 = sld [smem:[#allocation51_spill]]  ;;  %s4812_s15 = smov [#allocation14]  }
 0x1a3   : > { %s4630_s0 = sshll.u32 %s4812_s15, 4  ;;  %s4631_s0 = int_to_ptr.vmem [resolvable:$false] %s4630_s0 }
 0x1a4   : > { %s4632_s16 = scalar_lea.vmem %s4631_s0, 256 }
 0x1a8   : > { %s4625_s19 = scalar_lea.vmem %s6265_s23, 128  ;;  %p4633_p3 = scmp.lt.s32.totalorder %s6265_s23, %s4631_s0 }
 0x1a9   : > { %p4626_p12 = scmp.ne.s32.totalorder %s6265_s23, %s4625_s19  ;;  %p4634_p5 = scmp.lt.s32.totalorder %s4632_s16, %s4625_s19 }
 0x1ab   : > { %p4628_p9 = pnand %p4626_p12, %p6259_p2  ;;  %p4635_p10 = por %p4634_p5, %p4633_p3 }
 0x1ad   : > { %p4629_p13 = pneg %p4628_p9 }
 0x1af   : > { %p4636_p0 = pnand %p4635_p10, %p4629_p13 }
 0x1b1   : > { %4639 = shalt.err (!%p4636_p0)
}
 0x1b2   : > { %p6266_p4 = scmp.ne.s32.totalorder %s6223_s13, 0  ;;  %s6267_s3 = sld [smem:[#allocation50_spill]] }
 0x1b3   : > { %s6268_s20 = sld [smem:[#allocation45_spill]] }
 0x1b8   : > { %4005 = dma.hbm_to_vmem [thread:$0]  (!%p6266_p4), %s5215_s27, 128, %s6265_s23, %s6267_s3, %s6228_s5, %s6228_s5, %s6227_s10  }
 0x1b9   : > { %p6269_p2 = scmp.ne.s32.totalorder %s6268_s20, 0 }
 0x1ba   : > { %s6270_s14 = sld [smem:[#allocation44_spill]] (!%p6269_p2) }
 0x1bb   : > { %752 = sbr.rel (%p6269_p2) target bundleno = 2944 (0xb80), region = 92 }
 0x1c0   : > { %p6271_p8 = scmp.eq.s32.totalorder (!%p6269_p2), %s6270_s14, 0 }
 0x1c2   : > { %4713 = dma.done.wait (%p6271_p8), [#allocation7], 16   ;;  %p6272_p11 = pmov %p6271_p8 }
 0x1c3   : > { %s6273_s30 = sld [smem:[#allocation39_spill]]  ;;  %s6274_s21 = sld [smem:[#allocation38_spill]] }
 0x1c4   : > { %4715 = vsyncadd (%p6272_p11), [#allocation7], 4294967280 }
 0x1c9   : > { %s758_s1 = sand.u32 1, %s6273_s30   ;;  %p6275_p7 = scmp.ne.s32.totalorder %s6274_s21, 0 }
 0x1ca   : > { %s3299_s13 = sshll.u32 %s758_s1, 7  ;;  %s759_s18 = scalar_lea.sflag [#allocation5], %s758_s1 }
 0x1cb   : > { %s5461_s12 = scalar_lea.vmem [#allocation8], %s3299_s13 }
 0x1cc   : > { %4717 = dma.done.wait (%p6275_p7), %s759_s18, 2048  }
 0x1cd   : > { %4719 = vsyncadd (%p6275_p7), %s759_s18, 4294965248  ;;  %s6276_s10 = sld [smem:[#allocation37_spill]]  ;;  %s6277_s5 = sld [smem:[#allocation46_spill]] }
 0x1ce   : > { %s767_s27 = sand.u32 1, %s6270_s14  }
 0x1cf   : > { %s768_s8 = scalar_lea.sflag [#allocation10], %s767_s27 }
 0x1d3   : > { %s5469_s28 = sand.u32 1, %s6276_s10   ;;  %p6278_p1 = scmp.ne.s32.totalorder %s6277_s5, 0 }
 0x1d4   : > { %s3300_s26 = sshll.u32 %s5469_s28, 7 }
 0x1d5   : > { %s5472_s9 = scalar_lea.vmem [#allocation9], %s3300_s26 }
 0x1d6   : > { %4721 = dma.done.wait (%p6278_p1), %s768_s8, 4096  }
 0x1d7   : > { %4723 = vsyncadd (%p6278_p1), %s768_s8, 4294963200  ;;  %s3302_s17 = sshll.u32 %s5469_s28, 3  ;;  %s5479_s6 = scalar_lea.vmem [#allocation11], %s3300_s26 }
 0x1d8   : > { %s786_s23 = scalar_lea.sflag [#allocation13], %s767_s27  ;;  %s5481_s19 = scalar_lea.vmem [#allocation12], %s3302_s17 }
 0x1d9   : > { %4725 = dma.done.wait (%p6278_p1), %s786_s23, 256  }
 0x1da   : > { %4727 = vsyncadd (%p6278_p1), %s786_s23, 4294967040  ;;  %s5487_s15 = scalar_lea.vmem [#allocation14], %s3302_s17  ;;  %p6279_p6 = pmov %p6271_p8 }
 0x1dc   : > { %4729 = dma.done.wait (%p6279_p6), [#allocation16], 6240   ;;  %p6280_p12 = pmov %p6279_p6 }
 0x1dd   : > { %p6281_p9 = pmov %p6279_p6 }
 0x1de   : > { %4731 = vsyncadd (%p6280_p12), [#allocation16], 4294961056 }
 0x1df   : > { %4733 = dma.done.wait (%p6281_p9), [#allocation19], 6192   ;;  %p6282_p13 = pmov %p6279_p6 }
 0x1e0   : > { %p6283_p3 = pmov %p6279_p6 }
 0x1e1   : > { %4735 = vsyncadd (%p6282_p13), [#allocation19], 4294961104 }
 0x1e2   : > { %4737 = dma.done.wait (%p6283_p3), [#allocation22], 6240   ;;  %p6284_p5 = pmov %p6283_p3 }
 0x1e3   : > { %p6285_p10 = pmov %p6283_p3 }
 0x1e4   : > { %4739 = vsyncadd (%p6284_p5), [#allocation22], 4294961056 }
 0x1e5   : > { %4741 = dma.done.wait (%p6285_p10), [#allocation25], 6144   ;;  %p6286_p0 = pmov %p6283_p3 }
 0x1e7   : > { %4743 = vsyncadd (%p6286_p0), [#allocation25], 4294961152 }
 0x1e8   : > { %831 = sfence }
 0x1e9   : > { %s6287_s0 = sld [smem:[#allocation42_spill]]  ;;  %s3311_s16 = sshll.u32 %s5469_s28, 4 }
 0x1ea   : > { %s6288_s21 = sld [smem:[#allocation55_spill]]  ;;  %s6289_s10 = sld [smem:[#allocation58_spill]] }
 0x1eb   : > { %s5516_s27 = scalar_lea.vmem [#allocation26], %s3311_s16  ;;  %s6290_s14 = sld [smem:[#allocation41_spill]] }
 0x1ef   : > { %p910_p4 = scmp.lt.s32.totalorder %s6287_s0, 1 }
 0x1f1   : > { %s6324_s0 = smov (!%p910_p4, %s6287_s0), 1  ;;  %p3316_p2 = scmp.ne.s32.totalorder %s6290_s14, 0 }
 0x1f2   : > { %s3459_s3 = sshll.u32 %s6324_s0, 6  ;;  %v4813_v10 = vmov (!%p3316_p2), 0.0  }
 0x1f3   : > { %s914_s1 = scalar_lea.vmem %s6288_s21, %s3459_s3  ;;  %s5514_s5 = scalar_lea.vmem %s6289_s10, %s3459_s3  ;;  %973 = vst [vmem:[#allocation3] sm:$0xff] (!%p3316_p2), %v4813_v10  ;;  %974 = vst [vmem:[#allocation3 + $0x8] sm:$0xff] (!%p3316_p2), %v4813_v10 }
 0x1f4   : > { %924 = sbr.rel (%p3316_p2) target bundleno = 511 (0x1ff), region = 148  ;;  %v3467_v0 = vld [vmem:[%s914_s1] sm:$0xff] (!%p3316_p2)   ;;  %v3562_v1 = vld [vmem:[%s914_s1 + $0x8] sm:$0xff] (!%p3316_p2)   ;;  %v3563_v2 = vld [vmem:[%s914_s1 + $0x10] sm:$0xff] (!%p3316_p2)  }
 0x1f5   : > { %v3468_v3 = vunpack.c.l.bf16 (!%p3316_p2), %v3467_v0  ;;  %v3469_v4 = vunpack.c.h.bf16 (!%p3316_p2), %v3467_v0  ;;  %v3472_v5 = vunpack.c.l.bf16 (!%p3316_p2), %v3562_v1  ;;  %v3473_v6 = vunpack.c.h.bf16 (!%p3316_p2), %v3562_v1  ;;  %v3564_v7 = vld [vmem:[%s914_s1 + $0x18] sm:$0xff] (!%p3316_p2)   ;;  %v3565_v8 = vld [vmem:[%s914_s1 + $0x20] sm:$0xff] (!%p3316_p2)   ;;  %v3566_v9 = vld [vmem:[%s914_s1 + $0x28] sm:$0xff] (!%p3316_p2)  }
 0x1f6   : > { %v3476_v11 = vunpack.c.l.bf16 (!%p3316_p2), %v3563_v2  ;;  %v3477_v12 = vunpack.c.h.bf16 (!%p3316_p2), %v3563_v2  ;;  %v3480_v13 = vunpack.c.l.bf16 (!%p3316_p2), %v3564_v7  ;;  %v3481_v14 = vunpack.c.h.bf16 (!%p3316_p2), %v3564_v7  ;;  %v3567_v15 = vld [vmem:[%s914_s1 + $0x30] sm:$0xff] (!%p3316_p2)   ;;  %v3568_v16 = vld [vmem:[%s914_s1 + $0x38] sm:$0xff] (!%p3316_p2)  }
 0x1f7   : > { %957 = vst [vmem:[#allocation2] sm:$0xff] (!%p3316_p2), %v3468_v3  ;;  %958 = vst [vmem:[#allocation2 + $0x8] sm:$0xff] (!%p3316_p2), %v3469_v4  ;;  %v3484_v17 = vunpack.c.l.bf16 (!%p3316_p2), %v3565_v8  ;;  %v3485_v18 = vunpack.c.h.bf16 (!%p3316_p2), %v3565_v8  ;;  %v3488_v19 = vunpack.c.l.bf16 (!%p3316_p2), %v3566_v9  ;;  %v3489_v20 = vunpack.c.h.bf16 (!%p3316_p2), %v3566_v9 }
 0x1f8   : > { %959 = vst [vmem:[#allocation2 + $0x10] sm:$0xff] (!%p3316_p2), %v3472_v5  ;;  %960 = vst [vmem:[#allocation2 + $0x18] sm:$0xff] (!%p3316_p2), %v3473_v6  ;;  %v3492_v21 = vunpack.c.l.bf16 (!%p3316_p2), %v3567_v15  ;;  %v3493_v22 = vunpack.c.h.bf16 (!%p3316_p2), %v3567_v15  ;;  %v3496_v23 = vunpack.c.l.bf16 (!%p3316_p2), %v3568_v16  ;;  %v3497_v24 = vunpack.c.h.bf16 (!%p3316_p2), %v3568_v16 }
 0x1f9   : > { %961 = vst [vmem:[#allocation2 + $0x20] sm:$0xff] (!%p3316_p2), %v3476_v11  ;;  %962 = vst [vmem:[#allocation2 + $0x28] sm:$0xff] (!%p3316_p2), %v3477_v12 }
 0x1fa   : > { %963 = vst [vmem:[#allocation2 + $0x30] sm:$0xff] (!%p3316_p2), %v3480_v13  ;;  %964 = vst [vmem:[#allocation2 + $0x38] sm:$0xff] (!%p3316_p2), %v3481_v14 }
 0x1fb   : > { %965 = vst [vmem:[#allocation2 + $0x40] sm:$0xff] %v3484_v17  ;;  %966 = vst [vmem:[#allocation2 + $0x48] sm:$0xff] %v3485_v18 }
 0x1fc   : > { %967 = vst [vmem:[#allocation2 + $0x50] sm:$0xff] %v3488_v19  ;;  %968 = vst [vmem:[#allocation2 + $0x58] sm:$0xff] %v3489_v20 }
 0x1fd   : > { %969 = vst [vmem:[#allocation2 + $0x60] sm:$0xff] %v3492_v21  ;;  %970 = vst [vmem:[#allocation2 + $0x68] sm:$0xff] %v3493_v22 }
 0x1fe   : > { %971 = vst [vmem:[#allocation2 + $0x70] sm:$0xff] %v3496_v23  ;;  %972 = vst [vmem:[#allocation2 + $0x78] sm:$0xff] %v3497_v24 }
 0x1ff PF: > { %v5519_v25 = vld [vmem:[#allocation3] sm:$0xff]  ;;  %v5521_v26 = vld [vmem:[#allocation3 + $0x8] sm:$0xff]  ;;  %vm1050_vm0 = vcmask 130048   ;;  %v4143_v30 = vld [vmem:[%s5514_s5 + $0x10] sm:$0xff]   ;;  %s6291_s26 = sld [smem:[#allocation41_spill]] }
 0x200   : > { %v1009_v27 = vpack.c.bf16 %v5521_v26, %v5519_v25  ;;  %v4141_v28 = vld [vmem:[%s5514_s5] sm:$0xff]   ;;  %v4142_v29 = vld [vmem:[%s5514_s5 + $0x8] sm:$0xff]   ;;  %v4144_v31 = vld [vmem:[%s5514_s5 + $0x18] sm:$0xff]  }
 0x201   : > { %3796 = vmatprep.mubr.msk.bf16.mxu0 %vm1050_vm0, %v4141_v28  ;;  %v4145_v32 = vld [vmem:[%s5514_s5 + $0x20] sm:$0xff]   ;;  %v4146_v33 = vld [vmem:[%s5514_s5 + $0x28] sm:$0xff]   ;;  %v4147_v34 = vld [vmem:[%s5514_s5 + $0x30] sm:$0xff]  }
 0x202   : > { %3794 = vmatprep.subr.bf16.mxu0 %v1009_v27  ;;  %v4148_v35 = vld [vmem:[%s5514_s5 + $0x38] sm:$0xff]   ;;  %v4149_v36 = vld [vmem:[%s5472_s9] sm:$0xff]   ;;  %v977_v40 = vld [vmem:[#allocation2] sm:$0xff] }
 0x203   : > { %3795 = vmatpush3.bf16.msra.mxu0 %v1009_v27  ;;  %3828 = vmatprep.mubr.bf16.mxu1 %v4149_v36  ;;  %v979_v37 = vld [vmem:[#allocation2 + $0x10] sm:$0xff]  ;;  %v980_v39 = vld [vmem:[#allocation2 + $0x18] sm:$0xff]  ;;  %v978_v42 = vld [vmem:[#allocation2 + $0x8] sm:$0xff] }
 0x204   : > { %v981_v54 = vld [vmem:[#allocation2 + $0x20] sm:$0xff]  ;;  %v982_v56 = vld [vmem:[#allocation2 + $0x28] sm:$0xff]  ;;  %v987_v1 = vld [vmem:[#allocation2 + $0x50] sm:$0xff] }
 0x205   : > { %v983_v51 = vld [vmem:[#allocation2 + $0x30] sm:$0xff]  ;;  %v984_v53 = vld [vmem:[#allocation2 + $0x38] sm:$0xff]  ;;  %v985_v4 = vld [vmem:[#allocation2 + $0x40] sm:$0xff]  ;;  %s5642_s8 = sshll.u32 %s6291_s26, 7  ;;  %s3367_s23 = sshll.u32 %s6291_s26, 1 }
 0x206   : > { %3797 = vmatmul.mubr.msk.bf16.vlgmr.msra.gmra.mrb[0].mxu0 %vm1050_vm0, %v4142_v29  ;;  %v988_v3 = vld [vmem:[#allocation2 + $0x58] sm:$0xff]  ;;  %v986_v6 = vld [vmem:[#allocation2 + $0x48] sm:$0xff]  ;;  %v991_v15 = vld [vmem:[#allocation2 + $0x70] sm:$0xff]  ;;  %s5663_s17 = scalar_lea.vmem [#allocation18], %s5642_s8  ;;  %s1853_s0 = scalar_lea.vmem [#allocation17], %s3367_s23 }
 0x207   : > { %3800 = vmatprep.mubr.msk.bf16.mxu0 %vm1050_vm0, %v4143_v30  ;;  %v992_v17 = vld [vmem:[#allocation2 + $0x78] sm:$0xff]  ;;  %v989_v18 = vld [vmem:[#allocation2 + $0x60] sm:$0xff]  ;;  %v990_v20 = vld [vmem:[#allocation2 + $0x68] sm:$0xff]  ;;  %p2342_p8 = scmp.lt.s32.totalorder %s6291_s26, 2  ;;  %s2141_s3 = scalar_lea.vmem [#allocation20], %s6291_s26 }
 0x208   : > { %v4155_v36 = vld [vmem:[%s5472_s9 + $0x30] sm:$0xff]   ;;  %p3402_p11 = scmp.ge.s32.totalorder %s6291_s26, 2 }
 0x209   : > { %s2359_s16 = scalar_select %p2342_p8, 1, 0 }
 0x20a   : > { %vm4816_vm2 = vmmov (!%p3402_p11), 0   ;;  %s5931_s20 = scalar_lea.vmem (!%p3402_p11), [#allocation21], %s5642_s8  ;;  %s5958_s30 = scalar_lea.vmem (!%p3402_p11), [#allocation24], %s5642_s8 }
 0x20b   : > { %s2465_s21 = scalar_lea.vmem (!%p3402_p11), [#allocation23], %s3367_s23  ;;  %s6295_s18 = sld [smem:[#allocation67_spill]] (!%p3402_p11) }
 0x20e   : > { %3801 = vmatmul.mubr.msk.bf16.gmra.mrb[4].mxu0 %vm1050_vm0, %v4144_v31  ;;  %v4150_v31 = vld [vmem:[%s5472_s9 + $0x8] sm:$0xff]  }
 0x20f   : > { %3804 = vmatprep.mubr.msk.bf16.mxu0 %vm1050_vm0, %v4145_v32  ;;  %v4151_v32 = vld [vmem:[%s5472_s9 + $0x10] sm:$0xff]  }
 0x216   : > { %3805 = vmatmul.mubr.msk.bf16.gmra.mrb[8].mxu0 %vm1050_vm0, %v4146_v33  ;;  %v4152_v33 = vld [vmem:[%s5472_s9 + $0x18] sm:$0xff]  }
 0x217   : > { %3808 = vmatprep.mubr.msk.bf16.mxu0 %vm1050_vm0, %v4147_v34  ;;  %v4153_v34 = vld [vmem:[%s5472_s9 + $0x20] sm:$0xff]  }
 0x21e   : > { %3809 = vmatmul.mubr.msk.bf16.gmra.mrb[12].mxu0 %vm1050_vm0, %v4148_v35  ;;  %v4154_v35 = vld [vmem:[%s5472_s9 + $0x28] sm:$0xff]  }
 0x2d9   : > { %v3798_v38 = vpop.f32.mrb[0].mxu0 }
 0x2da   : > { %v1109_v41 = vpop.f32.mrb[1].mxu0  ;;  %v5542_v44 = vadd.f32 %v3798_v38, %v979_v37  ;;  %v4156_v37 = vld [vmem:[%s5472_s9 + $0x38] sm:$0xff]   ;;  %v4157_v38 = vld [vmem:[%s5472_s9 + $0x40] sm:$0xff]  }
 0x2db   : > { %v3799_v43 = vpop.f32.mrb[2].mxu0  ;;  %v5546_v47 = vadd.f32 %v1109_v41, %v977_v40  ;;  %v4159_v40 = vld [vmem:[%s5472_s9 + $0x50] sm:$0xff]   ;;  %v4160_v41 = vld [vmem:[%s5472_s9 + $0x58] sm:$0xff]  }
 0x2dc   : > { %v5544_v45 = vadd.f32 %v3799_v43, %v980_v39  ;;  %v1112_v46 = vpop.f32.mrb[3].mxu0  ;;  %v4158_v39 = vld [vmem:[%s5472_s9 + $0x48] sm:$0xff]  }
 0x2dd   : > { %v5548_v48 = vadd.f32 %v1112_v46, %v978_v42  ;;  %v4161_v42 = vld [vmem:[%s5472_s9 + $0x60] sm:$0xff]   ;;  %v4162_v43 = vld [vmem:[%s5472_s9 + $0x68] sm:$0xff]   ;;  %v4163_v46 = vld [vmem:[%s5472_s9 + $0x70] sm:$0xff]  }
 0x2de   : > { %v5552_v49 = vpack.c.bf16 %v5544_v45, %v5542_v44 }
 0x2df   : > { %v5556_v50 = vpack.c.bf16 %v5548_v48, %v5546_v47 }
 0x2e1   : > { %v3802_v52 = vpop.f32.mrb[4].mxu0  ;;  %3812 = vmatprep.subr.bf16.mxu1 %v5556_v50 }
 0x2e2   : > { %v1125_v55 = vpop.f32.mrb[5].mxu0  ;;  %3813 = vmatpush3.bf16.msra.mxu1 %v5556_v50  ;;  %v5561_v58 = vadd.f32 %v3802_v52, %v983_v51  ;;  %v4164_v51 = vld [vmem:[%s5472_s9 + $0x78] sm:$0xff]   ;;  %v4167_v52 = vld [vmem:[%s5479_s6 + $0x4] ss:$8 sps:$4 sm:$0xff]   ;;  %s5646_s9 = scalar_lea.vmem [#allocation15], %s5642_s8 }
 0x2e3   : > { %v3803_v57 = vpop.f32.mrb[6].mxu0  ;;  %3814 = vmatprep.subr.bf16.mxu1 %v5552_v49  ;;  %v5565_v61 = vadd.f32 %v1125_v55, %v981_v54  ;;  %1725 = vmatprep.mubr.bf16.mxu0 %v4167_v52  ;;  %v3499_v54 = vld [vmem:[%s5461_s12] sm:$0xff]  }
 0x2e4   : > { %v5563_v59 = vadd.f32 %v3803_v57, %v984_v53  ;;  %v1128_v60 = vpop.f32.mrb[7].mxu0  ;;  %v3569_v53 = vld [vmem:[%s5461_s12 + $0x8] sm:$0xff]  }
 0x2e5   : > { %v5567_v62 = vadd.f32 %v1128_v60, %v982_v56  ;;  %v3504_v55 = vunpack.c.l.bf16 %v3569_v53  ;;  %v3500_v56 = vunpack.c.l.bf16 %v3499_v54  ;;  %v3505_v57 = vunpack.c.h.bf16 %v3569_v53 }
 0x2e6   : > { %v5571_v63 = vpack.c.bf16 %v5563_v59, %v5561_v58  ;;  %3815 = vmatpush3.bf16.msra.mxu1 %v5552_v49 }
 0x2e7   : > { %v5576_v0 = vpack.c.bf16 %v5567_v62, %v5565_v61 }
 0x2e9   : > { %v3806_v2 = vpop.f32.mrb[8].mxu0  ;;  %3816 = vmatprep.subr.bf16.mxu1 %v5576_v0 }
 0x2ea   : > { %v1141_v5 = vpop.f32.mrb[9].mxu0  ;;  %3817 = vmatpush3.bf16.msra.mxu1 %v5576_v0  ;;  %v5581_v8 = vadd.f32 %v3806_v2, %v987_v1  ;;  %v3501_v1 = vunpack.c.h.bf16 %v3499_v54  ;;  %v3572_v54 = vld [vmem:[%s5461_s12 + $0x20] sm:$0xff]  }
 0x2eb   : > { %v3807_v7 = vpop.f32.mrb[10].mxu0  ;;  %3818 = vmatprep.subr.bf16.mxu1 %v5571_v63  ;;  %v5585_v11 = vadd.f32 %v1141_v5, %v985_v4 }
 0x2ec   : > { %v5583_v9 = vadd.f32 %v3807_v7, %v988_v3  ;;  %v1144_v10 = vpop.f32.mrb[11].mxu0 }
 0x2ed   : > { %v5587_v12 = vadd.f32 %v1144_v10, %v986_v6  ;;  %v3571_v6 = vld [vmem:[%s5461_s12 + $0x18] sm:$0xff]  }
 0x2ee   : > { %v5591_v13 = vpack.c.bf16 %v5583_v9, %v5581_v8  ;;  %3819 = vmatpush3.bf16.msra.mxu1 %v5571_v63 }
 0x2ef   : > { %v5596_v14 = vpack.c.bf16 %v5587_v12, %v5585_v11 }
 0x2f1   : > { %v3810_v16 = vpop.f32.mrb[12].mxu0  ;;  %3820 = vmatprep.subr.bf16.mxu1 %v5596_v14 }
 0x2f2   : > { %v1157_v19 = vpop.f32.mrb[13].mxu0  ;;  %3821 = vmatpush3.bf16.msra.mxu1 %v5596_v14  ;;  %v5601_v22 = vadd.f32 %v3810_v16, %v991_v15  ;;  %v3570_v15 = vld [vmem:[%s5461_s12 + $0x10] sm:$0xff]  }
 0x2f3   : > { %v3811_v21 = vpop.f32.mrb[14].mxu0  ;;  %3822 = vmatprep.subr.bf16.mxu1 %v5591_v13  ;;  %v5605_v27 = vadd.f32 %v1157_v19, %v989_v18 }
 0x2f4   : > { %v5603_v23 = vadd.f32 %v3811_v21, %v992_v17  ;;  %v1160_v24 = vpop.f32.mrb[15].mxu0  ;;  %v4189_v17 = vld [vmem:[%s5646_s9] ss:$8 sps:$4 sm:$0xff]   ;;  %v4191_v21 = vld [vmem:[%s5646_s9 + $0x4] ss:$8 sps:$4 sm:$0xff]  }
 0x2f5   : > { %v5607_v28 = vadd.f32 %v1160_v24, %v990_v20  ;;  %v3512_v20 = vunpack.c.l.bf16 %v3571_v6 }
 0x2f6   : > { %v5611_v29 = vpack.c.bf16 %v5603_v23, %v5601_v22  ;;  %3823 = vmatpush3.bf16.msra.mxu1 %v5591_v13 }
 0x2f7   : > { %v5616_v30 = vpack.c.bf16 %v5607_v28, %v5605_v27 }
 0x2f9   : > { %3824 = vmatprep.subr.bf16.mxu1 %v5616_v30 }
 0x2fa   : > { %3825 = vmatpush3.bf16.msra.mxu1 %v5616_v30 }
 0x2fb   : > { %3826 = vmatprep.subr.bf16.mxu1 %v5611_v29 }
 0x2fe   : > { %3827 = vmatpush3.bf16.msra.mxu1 %v5611_v29 }
 0x2ff   : > { %1946 = vmatprep.subr.bf16.mxu1 %v4191_v21 }
 0x301   : > { %3829 = vmatmul.mubr.bf16.vlgmr.msra.gmra.mrb[0].mxu1 %v4150_v31 }
 0x302   : > { %3832 = vmatprep.mubr.bf16.mxu1 %v4151_v32  ;;  %v3508_v32 = vunpack.c.l.bf16 %v3570_v15  ;;  %1947 = vmatpush1.bf16.msra.mxu1 %v4189_v17 }
 0x309   : > { %3833 = vmatmul.mubr.bf16.gmra.mrb[4].mxu1 %v4152_v33  ;;  %v4194_v33 = vld [vmem:[%s5646_s9 + $0x14] ss:$8 sps:$4 sm:$0xff]  }
 0x30a   : > { %3836 = vmatprep.mubr.bf16.mxu1 %v4153_v34  ;;  %1948 = vmatprep.subr.bf16.mxu1 %v4194_v33 }
 0x311   : > { %3837 = vmatmul.mubr.bf16.gmra.mrb[8].mxu1 %v4154_v35  ;;  %v3513_v35 = vunpack.c.h.bf16 %v3571_v6  ;;  %v4198_v6 = vld [vmem:[%s5646_s9 + $0x30] ss:$8 sps:$4 sm:$0xff]  }
 0x312   : > { %3840 = vmatprep.mubr.bf16.mxu1 %v4155_v36 }
 0x319   : > { %3841 = vmatmul.mubr.bf16.gmra.mrb[12].mxu1 %v4156_v37 }
 0x31a   : > { %3844 = vmatprep.mubr.bf16.mxu1 %v4157_v38  ;;  %v3509_v38 = vunpack.c.h.bf16 %v3570_v15  ;;  %v4203_v15 = vld [vmem:[%s5646_s9 + $0x44] ss:$8 sps:$4 sm:$0xff]  }
 0x321   : > { %3845 = vmatmul.mubr.bf16.gmra.mrb[16].mxu1 %v4158_v39  ;;  %v4192_v39 = vld [vmem:[%s5646_s9 + $0x10] ss:$8 sps:$4 sm:$0xff]  }
 0x322   : > { %3848 = vmatprep.mubr.bf16.mxu1 %v4159_v40  ;;  %1949 = vmatpush1.bf16.msra.mxu1 %v4192_v39  ;;  %v4206_v39 = vld [vmem:[%s5646_s9 + $0x54] ss:$8 sps:$4 sm:$0xff]  }
 0x329   : > { %3849 = vmatmul.mubr.bf16.gmra.mrb[20].mxu1 %v4160_v41 }
 0x32a   : > { %3852 = vmatprep.mubr.bf16.mxu1 %v4161_v42  ;;  %v4197_v42 = vld [vmem:[%s5646_s9 + $0x24] ss:$8 sps:$4 sm:$0xff]  }
 0x32b   : > { %1950 = vmatprep.subr.bf16.mxu1 %v4197_v42 }
 0x331   : > { %3853 = vmatmul.mubr.bf16.gmra.mrb[24].mxu1 %v4162_v43 }
 0x332   : > { %3856 = vmatprep.mubr.bf16.mxu1 %v4163_v46 }
 0x339   : > { %3857 = vmatmul.mubr.bf16.gmra.mrb[28].mxu1 %v4164_v51  ;;  %v3573_v51 = vld [vmem:[%s5461_s12 + $0x28] sm:$0xff]  }
 0x3d4   : > { %v3830_v60 = vpop.f32.mrb[0].mxu1 }
 0x3d5   : > { %v1431_v2 = vadd.f32 %v3830_v60, %v3504_v55  ;;  %v1422_v3 = vpop.f32.mrb[1].mxu1 }
 0x3d6   : > { %v1423_v4 = vadd.f32 %v3500_v56, %v1422_v3  ;;  %v3831_v5 = vpop.f32.mrb[2].mxu1  ;;  %v4195_v56 = vld [vmem:[%s5646_s9 + $0x20] ss:$8 sps:$4 sm:$0xff]  }
 0x3d7   : > { %v1434_v7 = vadd.f32 %v3831_v5, %v3505_v57  ;;  %v1425_v10 = vpop.f32.mrb[3].mxu1  ;;  %v1551_v18 = vmax.f32 %v1431_v2, 0.0  ;;  %v4200_v2 = vld [vmem:[%s5646_s9 + $0x34] ss:$8 sps:$4 sm:$0xff]   ;;  %v3516_v5 = vunpack.c.l.bf16 %v3572_v54  ;;  %1951 = vmatpush1.bf16.msra.mxu1 %v4195_v56 }
 0x3d8   : > { %v1426_v16 = vadd.f32 %v3501_v1, %v1425_v10  ;;  %v1549_v24 = vmax.f32 %v1423_v4, 0.0  ;;  %v3520_v1 = vunpack.c.l.bf16 %v3573_v51  ;;  %v3521_v10 = vunpack.c.h.bf16 %v3573_v51  ;;  %1952 = vmatprep.subr.bf16.mxu1 %v4200_v2 }
 0x3d9   : > { %v1552_v19 = vmax.f32 %v1434_v7, 0.0 }
 0x3da   : > { %v1550_v31 = vmax.f32 %v1426_v16, 0.0 }
 0x3db   : > { %v5651_v34 = vpack.c.bf16 %v1552_v19, %v1551_v18  ;;  %v3517_v18 = vunpack.c.h.bf16 %v3572_v54  ;;  %1953 = vmatpush1.bf16.msra.mxu1 %v4198_v6 }
 0x3dc   : > { %v5653_v36 = vpack.c.bf16 %v1550_v31, %v1549_v24  ;;  %v3834_v37 = vpop.f32.mrb[4].mxu1  ;;  %v3575_v31 = vld [vmem:[%s5461_s12 + $0x38] sm:$0xff]   ;;  %1954 = vmatprep.subr.bf16.mxu1 %v4203_v15  ;;  %v3576_v15 = vld [vmem:[%s5461_s12 + $0x40] sm:$0xff]  }
 0x3dd   : > { %v1447_v40 = vadd.f32 %v3834_v37, %v3512_v20  ;;  %v1438_v41 = vpop.f32.mrb[5].mxu1  ;;  %v3574_v37 = vld [vmem:[%s5461_s12 + $0x30] sm:$0xff]   ;;  %v3528_v42 = vunpack.c.l.bf16 %v3575_v31  ;;  %v3529_v54 = vunpack.c.h.bf16 %v3575_v31 }
 0x3de   : > { %v1439_v43 = vadd.f32 %v3508_v32, %v1438_v41  ;;  %v3835_v46 = vpop.f32.mrb[6].mxu1  ;;  %v4201_v32 = vld [vmem:[%s5646_s9 + $0x40] ss:$8 sps:$4 sm:$0xff]   ;;  %v3524_v51 = vunpack.c.l.bf16 %v3574_v37 }
 0x3df   : > { %v1450_v52 = vadd.f32 %v3835_v46, %v3513_v35  ;;  %v1441_v53 = vpop.f32.mrb[7].mxu1  ;;  %v1555_v57 = vmax.f32 %v1447_v40, 0.0  ;;  %1955 = vmatpush1.bf16.msra.mxu1 %v4201_v32  ;;  %v3532_v32 = vunpack.c.l.bf16 %v3576_v15 }
 0x3e0   : > { %v1442_v55 = vadd.f32 %v3509_v38, %v1441_v53  ;;  %v1553_v3 = vmax.f32 %v1439_v43, 0.0  ;;  %1956 = vmatprep.subr.bf16.mxu1 %v4206_v39  ;;  %v3533_v39 = vunpack.c.h.bf16 %v3576_v15 }
 0x3e1   : > { %v1556_v60 = vmax.f32 %v1450_v52, 0.0  ;;  %v4204_v52 = vld [vmem:[%s5646_s9 + $0x50] ss:$8 sps:$4 sm:$0xff]  }
 0x3e2   : > { %v1554_v4 = vmax.f32 %v1442_v55, 0.0  ;;  %v4209_v55 = vld [vmem:[%s5646_s9 + $0x64] ss:$8 sps:$4 sm:$0xff]  }
 0x3e3   : > { %v5665_v7 = vpack.c.bf16 %v1556_v60, %v1555_v57  ;;  %v3525_v60 = vunpack.c.h.bf16 %v3574_v37  ;;  %1957 = vmatpush1.bf16.msra.mxu1 %v4204_v52 }
 0x3e4   : > { %v5668_v16 = vpack.c.bf16 %v1554_v4, %v1553_v3  ;;  %v3838_v17 = vpop.f32.mrb[8].mxu1  ;;  %1958 = vmatprep.subr.bf16.mxu1 %v4209_v55 }
 0x3e5   : > { %v1463_v19 = vadd.f32 %v3838_v17, %v3520_v1  ;;  %v1454_v20 = vpop.f32.mrb[9].mxu1 }
 0x3e6   : > { %v1455_v21 = vadd.f32 %v3516_v5, %v1454_v20  ;;  %v3839_v24 = vpop.f32.mrb[10].mxu1  ;;  %v3577_v5 = vld [vmem:[%s5461_s12 + $0x48] sm:$0xff]  }
 0x3e7   : > { %v1466_v33 = vadd.f32 %v3839_v24, %v3521_v10  ;;  %v1457_v35 = vpop.f32.mrb[11].mxu1  ;;  %v1559_v40 = vmax.f32 %v1463_v19, 0.0 }
 0x3e8   : > { %v1458_v38 = vadd.f32 %v3517_v18, %v1457_v35  ;;  %v1557_v43 = vmax.f32 %v1455_v21, 0.0  ;;  %v4207_v18 = vld [vmem:[%s5646_s9 + $0x60] ss:$8 sps:$4 sm:$0xff]   ;;  %v3536_v21 = vunpack.c.l.bf16 %v3577_v5  ;;  %v3537_v35 = vunpack.c.h.bf16 %v3577_v5 }
 0x3e9   : > { %v1560_v41 = vmax.f32 %v1466_v33, 0.0  ;;  %1959 = vmatpush1.bf16.msra.mxu1 %v4207_v18 }
 0x3ea   : > { %v1558_v46 = vmax.f32 %v1458_v38, 0.0 }
 0x3eb   : > { %v5675_v53 = vpack.c.bf16 %v1560_v41, %v1559_v40 }
 0x3ec   : > { %v5678_v56 = vpack.c.bf16 %v1558_v46, %v1557_v43  ;;  %v3842_v57 = vpop.f32.mrb[12].mxu1  ;;  %v3579_v46 = vld [vmem:[%s5461_s12 + $0x58] sm:$0xff]  }
 0x3ed   : > { %v1479_v1 = vadd.f32 %v3842_v57, %v3528_v42  ;;  %v1470_v2 = vpop.f32.mrb[13].mxu1 }
 0x3ee   : > { %v1471_v3 = vadd.f32 %v3524_v51, %v1470_v2  ;;  %v3843_v4 = vpop.f32.mrb[14].mxu1 }
 0x3ef   : > { %v1482_v6 = vadd.f32 %v3843_v4, %v3529_v54  ;;  %v1473_v10 = vpop.f32.mrb[15].mxu1  ;;  %v1563_v19 = vmax.f32 %v1479_v1, 0.0  ;;  %v3578_v54 = vld [vmem:[%s5461_s12 + $0x50] sm:$0xff]   ;;  %v3544_v1 = vunpack.c.l.bf16 %v3579_v46 }
 0x3f0   : > { %v1474_v17 = vadd.f32 %v3525_v60, %v1473_v10  ;;  %v1561_v24 = vmax.f32 %v1471_v3, 0.0  ;;  %v3540_v4 = vunpack.c.l.bf16 %v3578_v54 }
 0x3f1   : > { %v1564_v20 = vmax.f32 %v1482_v6, 0.0  ;;  %v3545_v6 = vunpack.c.h.bf16 %v3579_v46 }
 0x3f2   : > { %v1562_v31 = vmax.f32 %v1474_v17, 0.0  ;;  %v3541_v17 = vunpack.c.h.bf16 %v3578_v54 }
 0x3f3   : > { %v5683_v33 = vpack.c.bf16 %v1564_v20, %v1563_v19 }
 0x3f4   : > { %v5685_v37 = vpack.c.bf16 %v1562_v31, %v1561_v24  ;;  %v3846_v38 = vpop.f32.mrb[16].mxu1  ;;  %v3581_v24 = vld [vmem:[%s5461_s12 + $0x68] sm:$0xff]  }
 0x3f5   : > { %v1495_v40 = vadd.f32 %v3846_v38, %v3536_v21  ;;  %v1486_v41 = vpop.f32.mrb[17].mxu1 }
 0x3f6   : > { %v1487_v42 = vadd.f32 %v3532_v32, %v1486_v41  ;;  %v3847_v43 = vpop.f32.mrb[18].mxu1  ;;  %v3552_v41 = vunpack.c.l.bf16 %v3581_v24 }
 0x3f7   : > { %v1498_v51 = vadd.f32 %v3847_v43, %v3537_v35  ;;  %v1489_v52 = vpop.f32.mrb[19].mxu1  ;;  %v1567_v57 = vmax.f32 %v1495_v40, 0.0  ;;  %v3580_v35 = vld [vmem:[%s5461_s12 + $0x60] sm:$0xff]  }
 0x3f8   : > { %v1490_v55 = vadd.f32 %v3533_v39, %v1489_v52  ;;  %v1565_v2 = vmax.f32 %v1487_v42, 0.0  ;;  %v3548_v46 = vunpack.c.l.bf16 %v3580_v35  ;;  %v3553_v52 = vunpack.c.h.bf16 %v3581_v24 }
 0x3f9   : > { %v1568_v60 = vmax.f32 %v1498_v51, 0.0 }
 0x3fa   : > { %v1566_v3 = vmax.f32 %v1490_v55, 0.0 }
 0x3fb   : > { %v1606_v5 = vpack.c.bf16 %v1568_v60, %v1567_v57  ;;  %v3549_v57 = vunpack.c.h.bf16 %v3580_v35 }
 0x3fc   : > { %v1605_v10 = vpack.c.bf16 %v1566_v3, %v1565_v2  ;;  %v3850_v15 = vpop.f32.mrb[20].mxu1  ;;  %v3583_v3 = vld [vmem:[%s5461_s12 + $0x78] sm:$0xff]  }
 0x3fd   : > { %v1511_v18 = vadd.f32 %v3850_v15, %v3544_v1  ;;  %v1502_v19 = vpop.f32.mrb[21].mxu1  ;;  %v3561_v24 = vunpack.c.h.bf16 %v3583_v3 }
 0x3fe   : > { %v1503_v20 = vadd.f32 %v3540_v4, %v1502_v19  ;;  %v3851_v21 = vpop.f32.mrb[22].mxu1  ;;  %3617 = vmatprep.subr.bf16.mxu0 %v1605_v10 }
 0x3ff   : > { %v1514_v31 = vadd.f32 %v3851_v21, %v3545_v6  ;;  %v1505_v32 = vpop.f32.mrb[23].mxu1  ;;  %3618 = vmatpush3.bf16.msra.mxu0 %v5653_v36  ;;  %v1571_v39 = vmax.f32 %v1511_v18, 0.0  ;;  %v3582_v6 = vld [vmem:[%s5461_s12 + $0x70] sm:$0xff]   ;;  %s1790_s12 = sld [smem:[#allocation4 + %s6291_s26]] }
 0x400   : > { %v1506_v38 = vadd.f32 %v3541_v17, %v1505_v32  ;;  %3619 = vmatprep.subr.bf16.mxu0 %v1606_v5  ;;  %v1569_v42 = vmax.f32 %v1503_v20, 0.0  ;;  %v3556_v20 = vunpack.c.l.bf16 %v3582_v6  ;;  %v3557_v35 = vunpack.c.h.bf16 %v3582_v6  ;;  %v4185_v6 = vld [vmem:[%s5479_s6 + $0x60] ss:$8 sps:$4 sm:$0xff]  }
 0x401   : > { %v1572_v40 = vmax.f32 %v1514_v31, 0.0 }
 0x402   : > { %v1570_v43 = vmax.f32 %v1506_v38, 0.0 }
 0x403   : > { %v1608_v51 = vpack.c.bf16 %v1572_v40, %v1571_v39  ;;  %3620 = vmatpush3.bf16.msra.mxu0 %v5651_v34  ;;  %v3560_v34 = vunpack.c.l.bf16 %v3583_v3  ;;  %v4180_v3 = vld [vmem:[%s5479_s6 + $0x54] ss:$8 sps:$4 sm:$0xff]  }
 0x404   : > { %v1607_v54 = vpack.c.bf16 %v1570_v43, %v1569_v42  ;;  %v3854_v55 = vpop.f32.mrb[24].mxu1 }
 0x405   : > { %v1527_v60 = vadd.f32 %v3854_v55, %v3552_v41  ;;  %v1518_v36 = vpop.f32.mrb[25].mxu1 }
 0x406   : > { %v1519_v1 = vadd.f32 %v3548_v46, %v1518_v36  ;;  %v3855_v2 = vpop.f32.mrb[26].mxu1  ;;  %3621 = vmatprep.subr.bf16.mxu0 %v1607_v54  ;;  %v4171_v36 = vld [vmem:[%s5479_s6 + $0x24] ss:$8 sps:$4 sm:$0xff]  }
 0x407   : > { %v1530_v4 = vadd.f32 %v3855_v2, %v3553_v52  ;;  %v1521_v5 = vpop.f32.mrb[27].mxu1  ;;  %3622 = vmatpush3.bf16.msra.mxu0 %v5668_v16  ;;  %v1575_v15 = vmax.f32 %v1527_v60, 0.0  ;;  %v4170_v60 = vld [vmem:[%s5479_s6 + $0x10] ss:$8 sps:$4 sm:$0xff]   ;;  %v4179_v2 = vld [vmem:[%s5479_s6 + $0x40] ss:$8 sps:$4 sm:$0xff]  }
 0x408   : > { %v1522_v10 = vadd.f32 %v3549_v57, %v1521_v5  ;;  %3623 = vmatprep.subr.bf16.mxu0 %v1608_v51  ;;  %v1573_v18 = vmax.f32 %v1519_v1, 0.0  ;;  %v4168_v57 = vld [vmem:[%s5479_s6 + $0x14] ss:$8 sps:$4 sm:$0xff]   ;;  %v4183_v5 = vld [vmem:[%s5479_s6 + $0x64] ss:$8 sps:$4 sm:$0xff]  }
 0x409   : > { %v1576_v17 = vmax.f32 %v1530_v4, 0.0  ;;  %v4174_v1 = vld [vmem:[%s5479_s6 + $0x34] ss:$8 sps:$4 sm:$0xff]   ;;  %v4182_v4 = vld [vmem:[%s5479_s6 + $0x50] ss:$8 sps:$4 sm:$0xff]  }
 0x40a   : > { %v1574_v19 = vmax.f32 %v1522_v10, 0.0  ;;  %v4186_v10 = vld [vmem:[%s5479_s6 + $0x74] ss:$8 sps:$4 sm:$0xff]  }
 0x40b   : > { %v1610_v21 = vpack.c.bf16 %v1576_v17, %v1575_v15  ;;  %3624 = vmatpush3.bf16.msra.mxu0 %v5665_v7  ;;  %v4188_v15 = vld [vmem:[%s5479_s6 + $0x70] ss:$8 sps:$4 sm:$0xff]   ;;  %v4210_v17 = vld [vmem:[%s5646_s9 + $0x70] ss:$8 sps:$4 sm:$0xff]  }
 0x40c   : > { %v1609_v31 = vpack.c.bf16 %v1574_v19, %v1573_v18  ;;  %v3858_v32 = vpop.f32.mrb[28].mxu1  ;;  %v4814_v18 = vmov 0   ;;  %v4213_v19 = vld [vmem:[%s5663_s17 + $0x40] sm:$0xff]  }
 0x40d   : > { %v1543_v38 = vadd.f32 %v3858_v32, %v3560_v34  ;;  %v1534_v39 = vpop.f32.mrb[29].mxu1  ;;  %v4212_v34 = vld [vmem:[%s5646_s9 + $0x74] ss:$8 sps:$4 sm:$0xff]   ;;  %1978 = vmatprep.mubr.bf16.mxu1 %v4814_v18 }
 0x40e   : > { %v1535_v40 = vadd.f32 %v3556_v20, %v1534_v39  ;;  %v3859_v16 = vpop.f32.mrb[30].mxu1  ;;  %3625 = vmatprep.subr.bf16.mxu0 %v1609_v31  ;;  %1960 = vmatprep.subr.bf16.mxu1 %v4212_v34  ;;  %v4214_v20 = vld [vmem:[%s5663_s17] sm:$0xff]   ;;  %v4217_v31 = vld [vmem:[%s5663_s17 + $0x50] sm:$0xff]  }
 0x40f   : > { %v1546_v41 = vadd.f32 %v3859_v16, %v3561_v24  ;;  %v1537_v42 = vpop.f32.mrb[31].mxu1  ;;  %3626 = vmatpush3.bf16.msra.mxu0 %v5678_v56  ;;  %v1579_v46 = vmax.f32 %v1543_v38, 0.0  ;;  %v4165_v56 = vld [vmem:[%s5479_s6] ss:$8 sps:$4 sm:$0xff]   ;;  %1961 = vmatpush1.bf16.msra.mxu1 %v4210_v17  ;;  %v4216_v24 = vld [vmem:[%s5663_s17 + $0x8] sm:$0xff]   ;;  %v4221_v39 = vld [vmem:[%s5663_s17 + $0x60] sm:$0xff]  }
 0x410   : > { %v1538_v43 = vadd.f32 %v3557_v35, %v1537_v42  ;;  %3627 = vmatprep.subr.bf16.mxu0 %v1610_v21  ;;  %v1577_v51 = vmax.f32 %v1535_v40, 0.0  ;;  %v4215_v21 = vld [vmem:[%s5663_s17 + $0x48] sm:$0xff]   ;;  %v4218_v32 = vld [vmem:[%s5663_s17 + $0x10] sm:$0xff]   ;;  %v4219_v35 = vld [vmem:[%s5663_s17 + $0x58] sm:$0xff]  }
 0x411   : > { %v1580_v7 = vmax.f32 %v1546_v41, 0.0  ;;  %v4220_v38 = vld [vmem:[%s5663_s17 + $0x18] sm:$0xff]   ;;  %v4222_v40 = vld [vmem:[%s5663_s17 + $0x20] sm:$0xff]   ;;  %v4223_v16 = vld [vmem:[%s5663_s17 + $0x68] sm:$0xff]  }
 0x412   : > { %v1578_v52 = vmax.f32 %v1538_v43, 0.0  ;;  %v4224_v41 = vld [vmem:[%s5663_s17 + $0x28] sm:$0xff]   ;;  %v4225_v42 = vld [vmem:[%s5663_s17 + $0x70] sm:$0xff]  }
 0x413   : > { %v1612_v54 = vpack.c.bf16 %v1580_v7, %v1579_v46  ;;  %3628 = vmatpush3.bf16.msra.mxu0 %v5675_v53  ;;  %v4173_v53 = vld [vmem:[%s5479_s6 + $0x20] ss:$8 sps:$4 sm:$0xff]  }
 0x414   : > { %v1611_v55 = vpack.c.bf16 %v1578_v52, %v1577_v51  ;;  %v4226_v43 = vld [vmem:[%s5663_s17 + $0x30] sm:$0xff]  }
 0x416   : > { %3629 = vmatprep.subr.bf16.mxu0 %v1611_v55 }
 0x417   : > { %3630 = vmatpush3.bf16.msra.mxu0 %v5685_v37  ;;  %v4176_v37 = vld [vmem:[%s5479_s6 + $0x30] ss:$8 sps:$4 sm:$0xff]  }
 0x418   : > { %3631 = vmatprep.subr.bf16.mxu0 %v1612_v54 }
 0x41b   : > { %3632 = vmatpush3.bf16.msra.mxu0 %v5683_v33  ;;  %v4177_v33 = vld [vmem:[%s5479_s6 + $0x44] ss:$8 sps:$4 sm:$0xff]   ;;  %s1791_s6 = sadd.f32 1.0, %s1790_s12 }
 0x41c   : > { %3681 = vmatprep.subr.bf16.mxu0 %v4213_v19 }
 0x41d   : > { %v5734_v46 = vstv %s1791_s6 }
 0x41e   : > { %1726 = vmatmul.mubr.bf16.vlgmr.msra.gmra.mrb[16].mxu0 %v4165_v56  ;;  %v1793_v52 = vmul.f32 %v5734_v46, %v5546_v47  ;;  %v1796_v47 = vmul.f32 %v5734_v46, %v5544_v45  ;;  %v1797_v19 = vmul.f32 %v5734_v46, %v5565_v61 }
 0x41f   : > { %1733 = vmatprep.mubr.bf16.mxu0 %v4168_v57  ;;  %3682 = vmatpush3.bf16.msra.mxu0 %v4214_v20  ;;  %v1794_v57 = vmul.f32 %v5734_v46, %v5548_v48 }
 0x420   : > { %3683 = vmatprep.subr.bf16.mxu0 %v4215_v21 }
 0x423   : > { %3684 = vmatpush3.bf16.msra.mxu0 %v4216_v24  ;;  %v1798_v24 = vmul.f32 %v5734_v46, %v5567_v62 }
 0x424   : > { %3685 = vmatprep.subr.bf16.mxu0 %v4217_v31 }
 0x426   : > { %1734 = vmatmul.mubr.bf16.gmra.mrb[20].mxu0 %v4170_v60 }
 0x427   : > { %1741 = vmatprep.mubr.bf16.mxu0 %v4171_v36  ;;  %3686 = vmatpush3.bf16.msra.mxu0 %v4218_v32 }
 0x428   : > { %3687 = vmatprep.subr.bf16.mxu0 %v4219_v35 }
 0x42b   : > { %3688 = vmatpush3.bf16.msra.mxu0 %v4220_v38 }
 0x42c   : > { %3689 = vmatprep.subr.bf16.mxu0 %v4221_v39 }
 0x42e   : > { %1742 = vmatmul.mubr.bf16.gmra.mrb[24].mxu0 %v4173_v53 }
 0x42f   : > { %1749 = vmatprep.mubr.bf16.mxu0 %v4174_v1  ;;  %3690 = vmatpush3.bf16.msra.mxu0 %v4222_v40  ;;  %v1799_v40 = vmul.f32 %v5734_v46, %v5561_v58 }
 0x430   : > { %3691 = vmatprep.subr.bf16.mxu0 %v4223_v16 }
 0x433   : > { %3692 = vmatpush3.bf16.msra.mxu0 %v4224_v41 }
 0x434   : > { %3693 = vmatprep.subr.bf16.mxu0 %v4225_v42  ;;  %v1800_v42 = vmul.f32 %v5734_v46, %v5563_v59 }
 0x436   : > { %1750 = vmatmul.mubr.bf16.gmra.mrb[28].mxu0 %v4176_v37 }
 0x437   : > { %1757 = vmatprep.mubr.bf16.mxu0 %v4177_v33  ;;  %3694 = vmatpush3.bf16.msra.mxu0 %v4226_v43 }
 0x43e   : > { %1758 = vmatmul.mubr.bf16.gmra.mrb[32].mxu0 %v4179_v2  ;;  %v1795_v2 = vmul.f32 %v5734_v46, %v5542_v44 }
 0x43f   : > { %1765 = vmatprep.mubr.bf16.mxu0 %v4180_v3 }
 0x446   : > { %1766 = vmatmul.mubr.bf16.gmra.mrb[36].mxu0 %v4182_v4 }
 0x447   : > { %1773 = vmatprep.mubr.bf16.mxu0 %v4183_v5 }
 0x44e   : > { %1774 = vmatmul.mubr.bf16.gmra.mrb[40].mxu0 %v4185_v6 }
 0x44f   : > { %1781 = vmatprep.mubr.bf16.mxu0 %v4186_v10 }
 0x456   : > { %1782 = vmatmul.mubr.bf16.gmra.mrb[44].mxu0 %v4188_v15 }
 0x4f1   : > { %v3633_v7 = vpop.f32.mrb[16].mxu0 }
 0x4f2   : > { %v3634_v51 = vpop.f32.mrb[17].mxu0 }
 0x4f3   : > { %v3635_v54 = vadd.f32 %v3634_v51, %v3633_v7  ;;  %v3636_v55 = vpop.f32.mrb[18].mxu0 }
 0x4f4   : > { %v3637_v56 = vpop.f32.mrb[19].mxu0 }
 0x4f5   : > { %v1809_v60 = vadd.f32 %v3635_v54, %v1793_v52  ;;  %v3638_v36 = vadd.f32 %v3637_v56, %v3636_v55  ;;  %v1801_v55 = vmul.f32 %v5734_v46, %v5585_v11 }
 0x4f7   : > { %v1810_v53 = vadd.f32 %v3638_v36, %v1794_v57 }
 0x4f9   : > { %v1825_v1 = vpack.c.bf16 %v1810_v53, %v1809_v60  ;;  %v3639_v37 = vpop.f32.mrb[20].mxu0  ;;  %v1802_v60 = vmul.f32 %v5734_v46, %v5587_v12 }
 0x4fa   : > { %v3640_v33 = vpop.f32.mrb[21].mxu0 }
 0x4fb   : > { %v3641_v3 = vadd.f32 %v3640_v33, %v3639_v37  ;;  %v3642_v4 = vpop.f32.mrb[22].mxu0  ;;  %1979 = vmatmul.mubr.bf16.vlgmr.msra.gmra.mrb[32].mxu1 %v1825_v1 }
 0x4fc   : > { %v3643_v5 = vpop.f32.mrb[23].mxu0  ;;  %1988 = vmatprep.mubr.bf16.mxu1 %v4814_v18 }
 0x4fd   : > { %v1811_v6 = vadd.f32 %v3641_v3, %v1795_v2  ;;  %v3644_v48 = vadd.f32 %v3643_v5, %v3642_v4  ;;  %v1803_v2 = vmul.f32 %v5734_v46, %v5581_v8  ;;  %v1804_v5 = vmul.f32 %v5734_v46, %v5583_v9 }
 0x4ff   : > { %v1812_v10 = vadd.f32 %v3644_v48, %v1796_v47 }
 0x501   : > { %v3645_v15 = vpop.f32.mrb[24].mxu0  ;;  %v1826_v17 = vpack.c.bf16 %v1812_v10, %v1811_v6 }
 0x502   : > { %v3646_v34 = vpop.f32.mrb[25].mxu0 }
 0x503   : > { %v3647_v20 = vadd.f32 %v3646_v34, %v3645_v15  ;;  %v3648_v44 = vpop.f32.mrb[26].mxu0  ;;  %1989 = vmatmul.mubr.bf16.gmra.mrb[36].mxu1 %v1826_v17  ;;  %v1805_v17 = vmul.f32 %v5734_v46, %v5605_v27  ;;  %v1807_v27 = vmul.f32 %v5734_v46, %v5601_v22  ;;  %v1856_v22 = vlaneseq }
 0x504   : > { %v3649_v21 = vpop.f32.mrb[27].mxu0  ;;  %1998 = vmatprep.mubr.bf16.mxu1 %v4814_v18 }
 0x505   : > { %v1813_v31 = vadd.f32 %v3647_v20, %v1797_v19  ;;  %v3650_v45 = vadd.f32 %v3649_v21, %v3648_v44  ;;  %v1806_v20 = vmul.f32 %v5734_v46, %v5607_v28  ;;  %v1808_v28 = vmul.f32 %v5734_v46, %v5603_v23 }
 0x507   : > { %v1814_v32 = vadd.f32 %v3650_v45, %v1798_v24 }
 0x509   : > { %v3651_v35 = vpop.f32.mrb[28].mxu0  ;;  %v1827_v38 = vpack.c.bf16 %v1814_v32, %v1813_v31 }
 0x50a   : > { %v3652_v39 = vpop.f32.mrb[29].mxu0 }
 0x50b   : > { %v3653_v16 = vadd.f32 %v3652_v39, %v3651_v35  ;;  %v3654_v61 = vpop.f32.mrb[30].mxu0  ;;  %1999 = vmatmul.mubr.bf16.gmra.mrb[40].mxu1 %v1827_v38 }
 0x50c   : > { %v3655_v41 = vpop.f32.mrb[31].mxu0  ;;  %2008 = vmatprep.mubr.bf16.mxu1 %v4814_v18 }
 0x50d   : > { %v1815_v43 = vadd.f32 %v3653_v16, %v1799_v40  ;;  %v3656_v62 = vadd.f32 %v3655_v41, %v3654_v61  ;;  %v4227_v41 = vld [vmem:[%s5663_s17 + $0x78] sm:$0xff]  }
 0x50e   : > { %3695 = vmatprep.subr.bf16.mxu0 %v4227_v41 }
 0x50f   : > { %v1816_v7 = vadd.f32 %v3656_v62, %v1800_v42  ;;  %v4228_v42 = vld [vmem:[%s5663_s17 + $0x38] sm:$0xff]  }
 0x510   : > { %3696 = vmatpush3.bf16.msra.mxu0 %v4228_v42 }
 0x511   : > { %v3657_v51 = vpop.f32.mrb[32].mxu0  ;;  %v1828_v52 = vpack.c.bf16 %v1816_v7, %v1815_v43  ;;  %v5778_v43 = vshrl.u32 %v1856_v22, 7 }
 0x512   : > { %v3658_v54 = vpop.f32.mrb[33].mxu0 }
 0x513   : > { %v3659_v56 = vadd.f32 %v3658_v54, %v3657_v51  ;;  %v3660_v58 = vpop.f32.mrb[34].mxu0  ;;  %2009 = vmatmul.mubr.bf16.gmra.mrb[44].mxu1 %v1828_v52  ;;  %v1858_v62 = vsub.s32 0, %v5778_v43  ;;  %v1862_v23 = vsub.s32 1, %v5778_v43 }
 0x514   : > { %v3661_v57 = vpop.f32.mrb[35].mxu0  ;;  %2018 = vmatprep.mubr.bf16.mxu1 %v4814_v18 }
 0x515   : > { %v1817_v36 = vadd.f32 %v3659_v56, %v1801_v55  ;;  %v3662_v59 = vadd.f32 %v3661_v57, %v3660_v58 }
 0x517   : > { %v1818_v53 = vadd.f32 %v3662_v59, %v1802_v60 }
 0x519   : > { %v3663_v1 = vpop.f32.mrb[36].mxu0  ;;  %v1829_v37 = vpack.c.bf16 %v1818_v53, %v1817_v36 }
 0x51a   : > { %v3664_v33 = vpop.f32.mrb[37].mxu0 }
 0x51b   : > { %v3665_v3 = vadd.f32 %v3664_v33, %v3663_v1  ;;  %v3666_v11 = vpop.f32.mrb[38].mxu0  ;;  %2019 = vmatmul.mubr.bf16.gmra.mrb[48].mxu1 %v1829_v37 }
 0x51c   : > { %v3667_v4 = vpop.f32.mrb[39].mxu0  ;;  %2028 = vmatprep.mubr.bf16.mxu1 %v4814_v18 }
 0x51d   : > { %v1819_v47 = vadd.f32 %v3665_v3, %v1803_v2  ;;  %v3668_v12 = vadd.f32 %v3667_v4, %v3666_v11 }
 0x51f   : > { %v1820_v6 = vadd.f32 %v3668_v12, %v1804_v5 }
 0x521   : > { %v3669_v48 = vpop.f32.mrb[40].mxu0  ;;  %v1830_v10 = vpack.c.bf16 %v1820_v6, %v1819_v47 }
 0x522   : > { %v3670_v15 = vpop.f32.mrb[41].mxu0 }
 0x523   : > { %v3671_v34 = vadd.f32 %v3670_v15, %v3669_v48  ;;  %v3672_v8 = vpop.f32.mrb[42].mxu0  ;;  %2029 = vmatmul.mubr.bf16.gmra.mrb[52].mxu1 %v1830_v10 }
 0x524   : > { %v3673_v19 = vpop.f32.mrb[43].mxu0  ;;  %2038 = vmatprep.mubr.bf16.mxu1 %v4814_v18 }
 0x525   : > { %v1821_v44 = vadd.f32 %v3671_v34, %v1805_v17  ;;  %v3674_v9 = vadd.f32 %v3673_v19, %v3672_v8 }
 0x527   : > { %v1822_v21 = vadd.f32 %v3674_v9, %v1806_v20 }
 0x529   : > { %v3675_v24 = vpop.f32.mrb[44].mxu0  ;;  %v1831_v31 = vpack.c.bf16 %v1822_v21, %v1821_v44 }
 0x52a   : > { %v3676_v45 = vpop.f32.mrb[45].mxu0 }
 0x52b   : > { %v3677_v32 = vadd.f32 %v3676_v45, %v3675_v24  ;;  %v3678_v35 = vpop.f32.mrb[46].mxu0  ;;  %2039 = vmatmul.mubr.bf16.gmra.mrb[56].mxu1 %v1831_v31 }
 0x52c   : > { %v3679_v38 = vpop.f32.mrb[47].mxu0  ;;  %2048 = vmatprep.mubr.bf16.mxu1 %v4814_v18  ;;  %v1854_v18 = vld [vmem:[%s1853_s0] sm:$0x3] }
 0x52d   : > { %v1823_v39 = vadd.f32 %v3677_v32, %v1807_v27  ;;  %v3680_v40 = vadd.f32 %v3679_v38, %v3678_v35  ;;  %v5786_v46 = vrot.slane %v1854_v18, %v1858_v62  ;;  %v5790_v7 = vrot.slane %v1854_v18, %v1862_v23 }
 0x52f   : > { %v1824_v16 = vadd.f32 %v3680_v40, %v1808_v28 }
 0x531   : > { %v1832_v61 = vpack.c.bf16 %v1824_v16, %v1823_v39 }
 0x533   : > { %2049 = vmatmul.mubr.bf16.gmra.mrb[60].mxu1 %v1832_v61 }
 0x5ce   : > { %v1980_v51 = vpop.f32.mrb[32].mxu1 }
 0x5cf   : > { %v1981_v52 = vadd.f32 %v1980_v51, %v5786_v46  ;;  %v1982_v54 = vpop.f32.mrb[33].mxu1 }
 0x5d0   : > { %v1983_v55 = vadd.f32 %v1982_v54, %v5790_v7  ;;  %v1984_v56 = vpop.f32.mrb[34].mxu1 }
 0x5d1   : > { %v1985_v58 = vadd.f32 %v1984_v56, %v5786_v46  ;;  %v1986_v57 = vpop.f32.mrb[35].mxu1  ;;  %v2059_v36 = vmax.f32 %v1981_v52, 0.0 }
 0x5d2   : > { %v1987_v60 = vadd.f32 %v1986_v57, %v5790_v7  ;;  %v2060_v53 = vmax.f32 %v1983_v55, 0.0 }
 0x5d3   : > { %v2061_v59 = vmax.f32 %v1985_v58, 0.0 }
 0x5d4   : > { %v2062_v1 = vmax.f32 %v1987_v60, 0.0 }
 0x5d5   : > { %v2091_v37 = vpack.c.bf16 %v2061_v59, %v2059_v36 }
 0x5d6   : > { %v2092_v33 = vpack.c.bf16 %v2062_v1, %v2060_v53  ;;  %v1990_v2 = vpop.f32.mrb[36].mxu1 }
 0x5d7   : > { %v1991_v3 = vadd.f32 %v1990_v2, %v5786_v46  ;;  %v1992_v11 = vpop.f32.mrb[37].mxu1 }
 0x5d8   : > { %v1993_v4 = vadd.f32 %v1992_v11, %v5790_v7  ;;  %v1994_v5 = vpop.f32.mrb[38].mxu1  ;;  %2277 = vmatprep.mubr.bf16.mxu0 %v2092_v33 }
 0x5d9   : > { %v1995_v47 = vadd.f32 %v1994_v5, %v5786_v46  ;;  %v1996_v12 = vpop.f32.mrb[39].mxu1  ;;  %2278 = vmatmul.mubr.bf16.vlgmr.msra.gmra.mrb[48].mxu0 %v2091_v37  ;;  %v2063_v48 = vmax.f32 %v1991_v3, 0.0 }
 0x5da   : > { %v1997_v6 = vadd.f32 %v1996_v12, %v5790_v7  ;;  %v2064_v15 = vmax.f32 %v1993_v4, 0.0 }
 0x5db   : > { %v2065_v10 = vmax.f32 %v1995_v47, 0.0 }
 0x5dc   : > { %v2066_v17 = vmax.f32 %v1997_v6, 0.0 }
 0x5dd   : > { %v2093_v34 = vpack.c.bf16 %v2065_v10, %v2063_v48 }
 0x5de   : > { %v2094_v8 = vpack.c.bf16 %v2066_v17, %v2064_v15  ;;  %v2000_v19 = vpop.f32.mrb[40].mxu1 }
 0x5df   : > { %v2001_v20 = vadd.f32 %v2000_v19, %v5786_v46  ;;  %v2002_v44 = vpop.f32.mrb[41].mxu1 }
 0x5e0   : > { %v2003_v9 = vadd.f32 %v2002_v44, %v5790_v7  ;;  %v2004_v21 = vpop.f32.mrb[42].mxu1  ;;  %2285 = vmatprep.mubr.bf16.mxu0 %v2094_v8 }
 0x5e1   : > { %v2005_v24 = vadd.f32 %v2004_v21, %v5786_v46  ;;  %v2006_v31 = vpop.f32.mrb[43].mxu1  ;;  %2286 = vmatmul.mubr.bf16.gmra.mrb[52].mxu0 %v2093_v34  ;;  %v2067_v27 = vmax.f32 %v2001_v20, 0.0 }
 0x5e2   : > { %v2007_v45 = vadd.f32 %v2006_v31, %v5790_v7  ;;  %v2068_v35 = vmax.f32 %v2003_v9, 0.0 }
 0x5e3   : > { %v2069_v32 = vmax.f32 %v2005_v24, 0.0 }
 0x5e4   : > { %v2070_v38 = vmax.f32 %v2007_v45, 0.0 }
 0x5e5   : > { %v2095_v28 = vpack.c.bf16 %v2069_v32, %v2067_v27 }
 0x5e6   : > { %v2096_v39 = vpack.c.bf16 %v2070_v38, %v2068_v35  ;;  %v2010_v40 = vpop.f32.mrb[44].mxu1 }
 0x5e7   : > { %v2011_v16 = vadd.f32 %v2010_v40, %v5786_v46  ;;  %v2012_v61 = vpop.f32.mrb[45].mxu1 }
 0x5e8   : > { %v2013_v41 = vadd.f32 %v2012_v61, %v5790_v7  ;;  %v2014_v42 = vpop.f32.mrb[46].mxu1  ;;  %2293 = vmatprep.mubr.bf16.mxu0 %v2096_v39 }
 0x5e9   : > { %v2015_v22 = vadd.f32 %v2014_v42, %v5786_v46  ;;  %v2016_v18 = vpop.f32.mrb[47].mxu1  ;;  %2294 = vmatmul.mubr.bf16.gmra.mrb[56].mxu0 %v2095_v28  ;;  %v2071_v52 = vmax.f32 %v2011_v16, 0.0 }
 0x5ea   : > { %v2017_v51 = vadd.f32 %v2016_v18, %v5790_v7  ;;  %v2072_v55 = vmax.f32 %v2013_v41, 0.0 }
 0x5eb   : > { %v2073_v54 = vmax.f32 %v2015_v22, 0.0 }
 0x5ec   : > { %v2074_v56 = vmax.f32 %v2017_v51, 0.0 }
 0x5ed   : > { %v2097_v58 = vpack.c.bf16 %v2073_v54, %v2071_v52 }
 0x5ee   : > { %v2098_v57 = vpack.c.bf16 %v2074_v56, %v2072_v55  ;;  %v2020_v60 = vpop.f32.mrb[48].mxu1 }
 0x5ef   : > { %v2021_v36 = vadd.f32 %v2020_v60, %v5786_v46  ;;  %v2022_v59 = vpop.f32.mrb[49].mxu1 }
 0x5f0   : > { %v2023_v53 = vadd.f32 %v2022_v59, %v5790_v7  ;;  %v2024_v1 = vpop.f32.mrb[50].mxu1  ;;  %2301 = vmatprep.mubr.bf16.mxu0 %v2098_v57 }
 0x5f1   : > { %v2025_v37 = vadd.f32 %v2024_v1, %v5786_v46  ;;  %v2026_v33 = vpop.f32.mrb[51].mxu1  ;;  %2302 = vmatmul.mubr.bf16.gmra.mrb[60].mxu0 %v2097_v58  ;;  %v2075_v3 = vmax.f32 %v2021_v36, 0.0 }
 0x5f2   : > { %v2027_v2 = vadd.f32 %v2026_v33, %v5790_v7  ;;  %v2076_v4 = vmax.f32 %v2023_v53, 0.0 }
 0x5f3   : > { %v2077_v11 = vmax.f32 %v2025_v37, 0.0 }
 0x5f4   : > { %v2078_v5 = vmax.f32 %v2027_v2, 0.0 }
 0x5f5   : > { %v2099_v47 = vpack.c.bf16 %v2077_v11, %v2075_v3  ;;  %v5826_v3 = vld [vmem:[%s2141_s3] ss:$0 sm:$0xff] }
 0x5f6   : > { %v2100_v12 = vpack.c.bf16 %v2078_v5, %v2076_v4  ;;  %v2030_v6 = vpop.f32.mrb[52].mxu1  ;;  %v2360_v4 = vstv %s2359_s16 }
 0x5f7   : > { %v2031_v48 = vadd.f32 %v2030_v6, %v5786_v46  ;;  %v2032_v10 = vpop.f32.mrb[53].mxu1  ;;  %vm5829_vm1 = vcmp.eq.s32.totalorder %v2360_v4, 1  ;;  %v4232_v6 = vld [vmem:[%s5931_s20] ss:$8 sps:$4 sm:$0xff] (!%p3402_p11)  }
 0x5f8   : > { %v2033_v15 = vadd.f32 %v2032_v10, %v5790_v7  ;;  %v2034_v17 = vpop.f32.mrb[54].mxu1  ;;  %2309 = vmatprep.mubr.bf16.mxu0 %v2100_v12 }
 0x5f9   : > { %v2035_v34 = vadd.f32 %v2034_v17, %v5786_v46  ;;  %v2036_v8 = vpop.f32.mrb[55].mxu1  ;;  %2310 = vmatmul.mubr.bf16.gmra.mrb[64].mxu0 %v2099_v47  ;;  %v2079_v20 = vmax.f32 %v2031_v48, 0.0 }
 0x5fa   : > { %v2037_v19 = vadd.f32 %v2036_v8, %v5790_v7  ;;  %v2080_v9 = vmax.f32 %v2033_v15, 0.0 }
 0x5fb   : > { %v2081_v44 = vmax.f32 %v2035_v34, 0.0 }
 0x5fc   : > { %v2082_v21 = vmax.f32 %v2037_v19, 0.0 }
 0x5fd   : > { %v2101_v24 = vpack.c.bf16 %v2081_v44, %v2079_v20 }
 0x5fe   : > { %v2102_v31 = vpack.c.bf16 %v2082_v21, %v2080_v9  ;;  %v2040_v45 = vpop.f32.mrb[56].mxu1 }
 0x5ff   : > { %v2041_v27 = vadd.f32 %v2040_v45, %v5786_v46  ;;  %v2042_v32 = vpop.f32.mrb[57].mxu1 }
 0x600   : > { %v2043_v35 = vadd.f32 %v2042_v32, %v5790_v7  ;;  %v2044_v38 = vpop.f32.mrb[58].mxu1  ;;  %2317 = vmatprep.mubr.bf16.mxu0 %v2102_v31 }
 0x601   : > { %v2045_v28 = vadd.f32 %v2044_v38, %v5786_v46  ;;  %v2046_v39 = vpop.f32.mrb[59].mxu1  ;;  %2318 = vmatmul.mubr.bf16.gmra.mrb[68].mxu0 %v2101_v24  ;;  %v2083_v16 = vmax.f32 %v2041_v27, 0.0 }
 0x602   : > { %v2047_v40 = vadd.f32 %v2046_v39, %v5790_v7  ;;  %v2084_v41 = vmax.f32 %v2043_v35, 0.0 }
 0x603   : > { %v2085_v61 = vmax.f32 %v2045_v28, 0.0 }
 0x604   : > { %v2086_v42 = vmax.f32 %v2047_v40, 0.0 }
 0x605   : > { %v2103_v22 = vpack.c.bf16 %v2085_v61, %v2083_v16 }
 0x606   : > { %v2104_v18 = vpack.c.bf16 %v2086_v42, %v2084_v41  ;;  %v2050_v51 = vpop.f32.mrb[60].mxu1 }
 0x607   : > { %v2051_v52 = vadd.f32 %v2050_v51, %v5786_v46  ;;  %v2052_v54 = vpop.f32.mrb[61].mxu1 }
 0x608   : > { %v2053_v55 = vadd.f32 %v2052_v54, %v5790_v7  ;;  %v2054_v56 = vpop.f32.mrb[62].mxu1  ;;  %2325 = vmatprep.mubr.bf16.mxu0 %v2104_v18 }
 0x609   : > { %v2055_v58 = vadd.f32 %v2054_v56, %v5786_v46  ;;  %v2056_v57 = vpop.f32.mrb[63].mxu1  ;;  %2326 = vmatmul.mubr.bf16.gmra.mrb[72].mxu0 %v2103_v22  ;;  %v2087_v36 = vmax.f32 %v2051_v52, 0.0 }
 0x60a   : > { %v2057_v60 = vadd.f32 %v2056_v57, %v5790_v7  ;;  %v2088_v53 = vmax.f32 %v2053_v55, 0.0 }
 0x60b   : > { %v2089_v59 = vmax.f32 %v2055_v58, 0.0 }
 0x60c   : > { %v2090_v1 = vmax.f32 %v2057_v60, 0.0 }
 0x60d   : > { %v2105_v37 = vpack.c.bf16 %v2089_v59, %v2087_v36 }
 0x60e   : > { %v2106_v33 = vpack.c.bf16 %v2090_v1, %v2088_v53 }
 0x610   : > { %2333 = vmatprep.mubr.bf16.mxu0 %v2106_v33 }
 0x611   : > { %2334 = vmatmul.mubr.bf16.gmra.mrb[76].mxu0 %v2105_v37 }
 0x6ac   : > { %v3697_v2 = vpop.f32.mrb[48].mxu0 }
 0x6ad   : > { %v3698_v11 = vpop.f32.mrb[49].mxu0 }
 0x6ae   : > { %v3699_v46 = vadd.f32 %v3698_v11, %v3697_v2  ;;  %v3700_v5 = vpop.f32.mrb[50].mxu0 }
 0x6af   : > { %v3701_v47 = vpop.f32.mrb[51].mxu0 }
 0x6b0   : > { %v2280_v7 = vadd.f32 %v3699_v46, %v5826_v3  ;;  %v3702_v12 = vadd.f32 %v3701_v47, %v3700_v5 }
 0x6b2   : > { %v2343_v48 = vmax.f32 %v2280_v7, 0.0  ;;  %v2283_v10 = vadd.f32 %v3702_v12, %v5826_v3 }
 0x6b4   : > { %v5836_v15 = vsel %vm5829_vm1, %v2343_v48, %v2280_v7  ;;  %v2344_v17 = vmax.f32 %v2283_v10, 0.0  ;;  %v3703_v34 = vpop.f32.mrb[52].mxu0 }
 0x6b5   : > { %2378 = vst [vmem:[#allocation2] sm:$0xff] %v5836_v15  ;;  %v3704_v8 = vpop.f32.mrb[53].mxu0 }
 0x6b6   : > { %v5841_v19 = vsel %vm5829_vm1, %v2344_v17, %v2283_v10  ;;  %v3705_v20 = vadd.f32 %v3704_v8, %v3703_v34  ;;  %v3706_v44 = vpop.f32.mrb[54].mxu0 }
 0x6b7   : > { %2379 = vst [vmem:[#allocation2 + $0x8] sm:$0xff] %v5841_v19  ;;  %v3707_v9 = vpop.f32.mrb[55].mxu0 }
 0x6b8   : > { %v2288_v21 = vadd.f32 %v3705_v20, %v5826_v3  ;;  %v3708_v24 = vadd.f32 %v3707_v9, %v3706_v44 }
 0x6ba   : > { %v2345_v31 = vmax.f32 %v2288_v21, 0.0  ;;  %v2291_v45 = vadd.f32 %v3708_v24, %v5826_v3 }
 0x6bc   : > { %v5848_v27 = vsel %vm5829_vm1, %v2345_v31, %v2288_v21  ;;  %v2346_v32 = vmax.f32 %v2291_v45, 0.0  ;;  %v3709_v35 = vpop.f32.mrb[56].mxu0 }
 0x6bd   : > { %2380 = vst [vmem:[#allocation2 + $0x10] sm:$0xff] %v5848_v27  ;;  %v3710_v38 = vpop.f32.mrb[57].mxu0 }
 0x6be   : > { %v5853_v28 = vsel %vm5829_vm1, %v2346_v32, %v2291_v45  ;;  %v3711_v39 = vadd.f32 %v3710_v38, %v3709_v35  ;;  %v3712_v40 = vpop.f32.mrb[58].mxu0 }
 0x6bf   : > { %2381 = vst [vmem:[#allocation2 + $0x18] sm:$0xff] %v5853_v28  ;;  %v3713_v16 = vpop.f32.mrb[59].mxu0 }
 0x6c0   : > { %v2296_v61 = vadd.f32 %v3711_v39, %v5826_v3  ;;  %v3714_v41 = vadd.f32 %v3713_v16, %v3712_v40 }
 0x6c2   : > { %v2347_v42 = vmax.f32 %v2296_v61, 0.0  ;;  %v2299_v22 = vadd.f32 %v3714_v41, %v5826_v3 }
 0x6c4   : > { %v5860_v18 = vsel %vm5829_vm1, %v2347_v42, %v2296_v61  ;;  %v2348_v51 = vmax.f32 %v2299_v22, 0.0  ;;  %v3715_v52 = vpop.f32.mrb[60].mxu0 }
 0x6c5   : > { %2382 = vst [vmem:[#allocation2 + $0x20] sm:$0xff] %v5860_v18  ;;  %v3716_v54 = vpop.f32.mrb[61].mxu0 }
 0x6c6   : > { %v5865_v55 = vsel %vm5829_vm1, %v2348_v51, %v2299_v22  ;;  %v3717_v56 = vadd.f32 %v3716_v54, %v3715_v52  ;;  %v3718_v58 = vpop.f32.mrb[62].mxu0 }
 0x6c7   : > { %2383 = vst [vmem:[#allocation2 + $0x28] sm:$0xff] %v5865_v55  ;;  %v3719_v57 = vpop.f32.mrb[63].mxu0 }
 0x6c8   : > { %v2304_v60 = vadd.f32 %v3717_v56, %v5826_v3  ;;  %v3720_v36 = vadd.f32 %v3719_v57, %v3718_v58 }
 0x6ca   : > { %v2349_v59 = vmax.f32 %v2304_v60, 0.0  ;;  %v2307_v53 = vadd.f32 %v3720_v36, %v5826_v3 }
 0x6cc   : > { %v5872_v1 = vsel %vm5829_vm1, %v2349_v59, %v2304_v60  ;;  %v2350_v37 = vmax.f32 %v2307_v53, 0.0  ;;  %v3721_v33 = vpop.f32.mrb[64].mxu0 }
 0x6cd   : > { %2384 = vst [vmem:[#allocation2 + $0x30] sm:$0xff] %v5872_v1  ;;  %v3722_v2 = vpop.f32.mrb[65].mxu0 }
 0x6ce   : > { %v5877_v11 = vsel %vm5829_vm1, %v2350_v37, %v2307_v53  ;;  %v3723_v46 = vadd.f32 %v3722_v2, %v3721_v33  ;;  %v3724_v4 = vpop.f32.mrb[66].mxu0 }
 0x6cf   : > { %2385 = vst [vmem:[#allocation2 + $0x38] sm:$0xff] %v5877_v11  ;;  %v3725_v5 = vpop.f32.mrb[67].mxu0 }
 0x6d0   : > { %v2312_v47 = vadd.f32 %v3723_v46, %v5826_v3  ;;  %v3726_v7 = vadd.f32 %v3725_v5, %v3724_v4 }
 0x6d2   : > { %v2351_v12 = vmax.f32 %v2312_v47, 0.0  ;;  %v2315_v48 = vadd.f32 %v3726_v7, %v5826_v3 }
 0x6d4   : > { %v5884_v10 = vsel %vm5829_vm1, %v2351_v12, %v2312_v47  ;;  %v2352_v17 = vmax.f32 %v2315_v48, 0.0  ;;  %v3727_v34 = vpop.f32.mrb[68].mxu0  ;;  %v4815_v12 = vmov (!%p3402_p11), 0.0  }
 0x6d5   : > { %2386 = vst [vmem:[#allocation2 + $0x40] sm:$0xff] %v5884_v10  ;;  %v3728_v8 = vpop.f32.mrb[69].mxu0  ;;  %3860 = vmatprep.subr.bf16.mxu0 (!%p3402_p11), %v4815_v12  ;;  %3876 = vmatprep.mubr.msk.bf16.mxu0 (!%p3402_p11), %vm4816_vm2, %v4815_v12 }
 0x6d6   : > { %v5889_v20 = vsel %vm5829_vm1, %v2352_v17, %v2315_v48  ;;  %v3729_v44 = vadd.f32 %v3728_v8, %v3727_v34  ;;  %v3730_v9 = vpop.f32.mrb[70].mxu0  ;;  %3861 = vmatpush3.bf16.msra.mxu0 (!%p3402_p11), %v5556_v50  ;;  %v4233_v48 = vld [vmem:[%s5931_s20 + $0x14] ss:$8 sps:$4 sm:$0xff] (!%p3402_p11)   ;;  %v4235_v17 = vld [vmem:[%s5931_s20 + $0x10] ss:$8 sps:$4 sm:$0xff] (!%p3402_p11)  }
 0x6d7   : > { %2387 = vst [vmem:[#allocation2 + $0x48] sm:$0xff] %v5889_v20  ;;  %v3731_v21 = vpop.f32.mrb[71].mxu0  ;;  %3862 = vmatprep.subr.bf16.mxu0 (!%p3402_p11), %v4815_v12  ;;  %v4236_v50 = vld [vmem:[%s5931_s20 + $0x24] ss:$8 sps:$4 sm:$0xff] (!%p3402_p11)   ;;  %v4238_v34 = vld [vmem:[%s5931_s20 + $0x20] ss:$8 sps:$4 sm:$0xff] (!%p3402_p11)  }
 0x6d8   : > { %v2320_v24 = vadd.f32 %v3729_v44, %v5826_v3  ;;  %v3732_v31 = vadd.f32 %v3731_v21, %v3730_v9  ;;  %v4239_v8 = vld [vmem:[%s5931_s20 + $0x34] ss:$8 sps:$4 sm:$0xff] (!%p3402_p11)   ;;  %v4241_v44 = vld [vmem:[%s5931_s20 + $0x30] ss:$8 sps:$4 sm:$0xff] (!%p3402_p11)   ;;  %v4244_v9 = vld [vmem:[%s5931_s20 + $0x40] ss:$8 sps:$4 sm:$0xff] (!%p3402_p11)  }
 0x6d9   : > { %v4247_v21 = vld [vmem:[%s5931_s20 + $0x50] ss:$8 sps:$4 sm:$0xff] (!%p3402_p11)  }
 0x6da   : > { %v2353_v45 = vmax.f32 %v2320_v24, 0.0  ;;  %v2323_v32 = vadd.f32 %v3732_v31, %v5826_v3  ;;  %3863 = vmatpush3.bf16.msra.mxu0 (!%p3402_p11), %v5552_v49  ;;  %v4242_v49 = vld [vmem:[%s5931_s20 + $0x44] ss:$8 sps:$4 sm:$0xff] (!%p3402_p11)   ;;  %v4251_v31 = vld [vmem:[%s5931_s20 + $0x74] ss:$8 sps:$4 sm:$0xff] (!%p3402_p11)  }
 0x6db   : > { %3864 = vmatprep.subr.bf16.mxu0 (!%p3402_p11), %v4815_v12 }
 0x6dc   : > { %v5896_v35 = vsel %vm5829_vm1, %v2353_v45, %v2320_v24  ;;  %v2354_v38 = vmax.f32 %v2323_v32, 0.0  ;;  %v3733_v39 = vpop.f32.mrb[72].mxu0  ;;  %v4250_v24 = vld [vmem:[%s5931_s20 + $0x60] ss:$8 sps:$4 sm:$0xff] (!%p3402_p11)   ;;  %v4253_v45 = vld [vmem:[%s5931_s20 + $0x70] ss:$8 sps:$4 sm:$0xff] (!%p3402_p11)  }
 0x6dd   : > { %2388 = vst [vmem:[#allocation2 + $0x50] sm:$0xff] %v5896_v35  ;;  %v3734_v40 = vpop.f32.mrb[73].mxu0 }
 0x6de   : > { %v5901_v16 = vsel %vm5829_vm1, %v2354_v38, %v2323_v32  ;;  %v3735_v61 = vadd.f32 %v3734_v40, %v3733_v39  ;;  %v3736_v41 = vpop.f32.mrb[74].mxu0  ;;  %3865 = vmatpush3.bf16.msra.mxu0 (!%p3402_p11), %v5576_v0  ;;  %v4245_v0 = vld [vmem:[%s5931_s20 + $0x54] ss:$8 sps:$4 sm:$0xff] (!%p3402_p11)   ;;  %v4256_v32 = vld [vmem:[%s5958_s30 + $0x48] sm:$0xff] (!%p3402_p11)  }
 0x6df   : > { %2389 = vst [vmem:[#allocation2 + $0x58] sm:$0xff] %v5901_v16  ;;  %v3737_v42 = vpop.f32.mrb[75].mxu0  ;;  %3866 = vmatprep.subr.bf16.mxu0 (!%p3402_p11), %v4815_v12  ;;  %v4257_v38 = vld [vmem:[%s5958_s30 + $0x8] sm:$0xff] (!%p3402_p11)   ;;  %v4258_v39 = vld [vmem:[%s5958_s30 + $0x50] sm:$0xff] (!%p3402_p11)  }
 0x6e0   : > { %v2328_v22 = vadd.f32 %v3735_v61, %v5826_v3  ;;  %v3738_v51 = vadd.f32 %v3737_v42, %v3736_v41  ;;  %v4259_v40 = vld [vmem:[%s5958_s30 + $0x10] sm:$0xff] (!%p3402_p11)   ;;  %v4260_v61 = vld [vmem:[%s5958_s30 + $0x58] sm:$0xff] (!%p3402_p11)   ;;  %v4262_v42 = vld [vmem:[%s5958_s30 + $0x60] sm:$0xff] (!%p3402_p11)  }
 0x6e1   : > { %v4261_v41 = vld [vmem:[%s5958_s30 + $0x18] sm:$0xff] (!%p3402_p11)  }
 0x6e2   : > { %v2355_v52 = vmax.f32 %v2328_v22, 0.0  ;;  %v2331_v54 = vadd.f32 %v3738_v51, %v5826_v3  ;;  %3867 = vmatpush3.bf16.msra.mxu0 (!%p3402_p11), %v5571_v63  ;;  %v4248_v63 = vld [vmem:[%s5931_s20 + $0x64] ss:$8 sps:$4 sm:$0xff] (!%p3402_p11)  }
 0x6e3   : > { %3868 = vmatprep.subr.bf16.mxu0 (!%p3402_p11), %v4815_v12  ;;  %v4264_v51 = vld [vmem:[%s5958_s30 + $0x68] sm:$0xff] (!%p3402_p11)  }
 0x6e4   : > { %v5908_v56 = vsel %vm5829_vm1, %v2355_v52, %v2328_v22  ;;  %v2356_v58 = vmax.f32 %v2331_v54, 0.0  ;;  %v3739_v57 = vpop.f32.mrb[76].mxu0  ;;  %v4263_v22 = vld [vmem:[%s5958_s30 + $0x20] sm:$0xff] (!%p3402_p11)  }
 0x6e5   : > { %2390 = vst [vmem:[#allocation2 + $0x60] sm:$0xff] %v5908_v56  ;;  %v3740_v60 = vpop.f32.mrb[77].mxu0 }
 0x6e6   : > { %v5913_v36 = vsel %vm5829_vm1, %v2356_v58, %v2331_v54  ;;  %v3741_v59 = vadd.f32 %v3740_v60, %v3739_v57  ;;  %v3742_v53 = vpop.f32.mrb[78].mxu0  ;;  %3869 = vmatpush3.bf16.msra.mxu0 (!%p3402_p11), %v5596_v14  ;;  %v4229_v14 = vld [vmem:[%s5481_s19] sm:$0xff] (!%p3402_p11)   ;;  %s6294_s19 = sld [smem:[#allocation41_spill]] (!%p3402_p11) }
 0x6e7   : > { %2391 = vst [vmem:[#allocation2 + $0x68] sm:$0xff] %v5913_v36  ;;  %v3743_v37 = vpop.f32.mrb[79].mxu0  ;;  %3870 = vmatprep.subr.bf16.mxu0 (!%p3402_p11), %v4815_v12 }
 0x6e8   : > { %v2336_v33 = vadd.f32 %v3741_v59, %v5826_v3  ;;  %v3744_v2 = vadd.f32 %v3743_v37, %v3742_v53  ;;  %v4265_v37 = vld [vmem:[%s5958_s30 + $0x28] sm:$0xff] (!%p3402_p11)  }
 0x6e9   : > { %2396 = sbr.rel (%p3402_p11) target bundleno = 2443 (0x98b), region = 152 }
 0x6ea   : > { %v2357_v46 = vmax.f32 %v2336_v33, 0.0  ;;  %v2339_v4 = vadd.f32 %v3744_v2, %v5826_v3  ;;  %v4230_v3 = vld [vmem:[%s5931_s20 + $0x4] ss:$8 sps:$4 sm:$0xff] (!%p3402_p11)   ;;  %3871 = vmatpush3.bf16.msra.mxu0 (!%p3402_p11), %v5591_v13  ;;  %v4817_v13 = vmov (!%p3402_p11), 0   ;;  %v4267_v2 = vld [vmem:[%s5958_s30 + $0x30] sm:$0xff] (!%p3402_p11)  }
 0x6eb   : > { %2558 = vmatprep.subr.bf16.mxu1 (!%p3402_p11), %v4230_v3  ;;  %3872 = vmatprep.subr.bf16.mxu0 (!%p3402_p11), %v4815_v12 }
 0x6ec   : > { %v5920_v5 = vsel %vm5829_vm1, %v2357_v46, %v2336_v33  ;;  %v2358_v47 = vmax.f32 %v2339_v4, 0.0  ;;  %2559 = vmatpush1.bf16.msra.mxu1 (!%p3402_p11), %v4232_v6  ;;  %2590 = vmatprep.mubr.bf16.mxu1 (!%p3402_p11), %v4817_v13  ;;  %v4266_v33 = vld [vmem:[%s5958_s30 + $0x70] sm:$0xff] (!%p3402_p11)   ;;  %v4268_v46 = vld [vmem:[%s5958_s30 + $0x78] sm:$0xff] (!%p3402_p11)   ;;  %s2641_s10 = scalar_lea.vmem (!%p3402_p11), %s6295_s18, %s6294_s19 }
 0x6ed   : > { %2392 = vst [vmem:[#allocation2 + $0x70] sm:$0xff] %v5920_v5  ;;  %2560 = vmatprep.subr.bf16.mxu1 (!%p3402_p11), %v4233_v48 }
 0x6ee   : > { %v5925_v7 = vsel %vm5829_vm1, %v2358_v47, %v2339_v4  ;;  %3873 = vmatpush3.bf16.msra.mxu0 (!%p3402_p11), %v5616_v30  ;;  %v4255_v30 = vld [vmem:[%s5958_s30] sm:$0xff] (!%p3402_p11)   ;;  %v4269_v4 = vld [vmem:[%s5958_s30 + $0x38] sm:$0xff] (!%p3402_p11)  }
 0x6ef   : > { %2393 = vst [vmem:[#allocation2 + $0x78] sm:$0xff] %v5925_v7  ;;  %3874 = vmatprep.subr.bf16.mxu0 (!%p3402_p11), %v4815_v12  ;;  %v2466_v47 = vld [vmem:[%s2465_s21] sm:$0x3] (!%p3402_p11) }
 0x6f0   : > { %2561 = vmatpush1.bf16.msra.mxu1 %v4235_v17 }
 0x6f1   : > { %2562 = vmatprep.subr.bf16.mxu1 %v4236_v50 }
 0x6f2   : > { %3875 = vmatpush3.bf16.msra.mxu0 %v5611_v29  ;;  %v4254_v29 = vld [vmem:[%s5958_s30 + $0x40] sm:$0xff]  }
 0x6f3   : > { %3754 = vmatprep.subr.bf16.mxu0 %v4254_v29 }
 0x6f4   : > { %2563 = vmatpush1.bf16.msra.mxu1 %v4238_v34 }
 0x6f5   : > { %2564 = vmatprep.subr.bf16.mxu1 %v4239_v8  ;;  %3877 = vmatmul.mubr.bf16.vlgmr.msra.gmra.mrb[0].mxu0 %v4229_v14 }
 0x6f6   : > { %3755 = vmatpush3.bf16.msra.mxu0 %v4255_v30 }
 0x6f7   : > { %3756 = vmatprep.subr.bf16.mxu0 %v4256_v32 }
 0x6f8   : > { %2565 = vmatpush1.bf16.msra.mxu1 %v4241_v44 }
 0x6f9   : > { %2566 = vmatprep.subr.bf16.mxu1 %v4242_v49 }
 0x6fa   : > { %3757 = vmatpush3.bf16.msra.mxu0 %v4257_v38 }
 0x6fb   : > { %3758 = vmatprep.subr.bf16.mxu0 %v4258_v39 }
 0x6fc   : > { %2567 = vmatpush1.bf16.msra.mxu1 %v4244_v9 }
 0x6fd   : > { %2568 = vmatprep.subr.bf16.mxu1 %v4245_v0 }
 0x6fe   : > { %3759 = vmatpush3.bf16.msra.mxu0 %v4259_v40 }
 0x6ff   : > { %3760 = vmatprep.subr.bf16.mxu0 %v4260_v61 }
 0x700   : > { %2569 = vmatpush1.bf16.msra.mxu1 %v4247_v21 }
 0x701   : > { %2570 = vmatprep.subr.bf16.mxu1 %v4248_v63 }
 0x702   : > { %3761 = vmatpush3.bf16.msra.mxu0 %v4261_v41 }
 0x703   : > { %3762 = vmatprep.subr.bf16.mxu0 %v4262_v42 }
 0x704   : > { %2571 = vmatpush1.bf16.msra.mxu1 %v4250_v24 }
 0x705   : > { %2572 = vmatprep.subr.bf16.mxu1 %v4251_v31 }
 0x706   : > { %3763 = vmatpush3.bf16.msra.mxu0 %v4263_v22 }
 0x707   : > { %3764 = vmatprep.subr.bf16.mxu0 %v4264_v51 }
 0x708   : > { %2573 = vmatpush1.bf16.msra.mxu1 %v4253_v45 }
 0x70a   : > { %3765 = vmatpush3.bf16.msra.mxu0 %v4265_v37 }
 0x70b   : > { %3766 = vmatprep.subr.bf16.mxu0 %v4266_v33 }
 0x70e   : > { %3767 = vmatpush3.bf16.msra.mxu0 %v4267_v2 }
 0x70f   : > { %3768 = vmatprep.subr.bf16.mxu0 %v4268_v46 }
 0x712   : > { %3769 = vmatpush3.bf16.msra.mxu0 %v4269_v4 }
 0x7c8   : > { %v2439_v52 = vpop.f32.mrb[0].mxu0 }
 0x7c9   : > { %v3878_v54 = vpop.f32.mrb[1].mxu0  ;;  %v2440_v57 = vadd.f32 %v2439_v52, %v5519_v25  ;;  %v2471_v25 = vrot.slane %v2466_v47, %v1858_v62  ;;  %v3422_v62 = vld [vmem:[%s2641_s10] ss:$0 sm:$0xff] }
 0x7ca   : > { %v2442_v58 = vpop.f32.mrb[2].mxu0 }
 0x7cb   : > { %v2443_v60 = vadd.f32 %v2442_v58, %v5521_v26  ;;  %v3879_v59 = vpop.f32.mrb[3].mxu0  ;;  %v2475_v26 = vrot.slane %v2466_v47, %v1862_v23 }
 0x7cd   : > { %v2446_v53 = vpack.c.bf16 %v2443_v60, %v2440_v57 }
 0x7cf   : > { %2591 = vmatmul.mubr.bf16.vlgmr.msra.gmra.mrb[0].mxu1 %v2446_v53 }
 0x8a2   : > { %v2592_v12 = vpop.f32.mrb[0].mxu1 }
 0x8a3   : > { %v2593_v3 = vadd.f32 %v2592_v12, %v2471_v25  ;;  %v2594_v6 = vpop.f32.mrb[1].mxu1 }
 0x8a4   : > { %v2595_v48 = vadd.f32 %v2594_v6, %v2475_v26  ;;  %v2596_v17 = vpop.f32.mrb[2].mxu1 }
 0x8a5   : > { %v2597_v50 = vadd.f32 %v2596_v17, %v2471_v25  ;;  %v2598_v34 = vpop.f32.mrb[3].mxu1  ;;  %v2601_v44 = vmax.f32 %v2593_v3, 0.0 }
 0x8a6   : > { %v2599_v8 = vadd.f32 %v2598_v34, %v2475_v26  ;;  %v2602_v9 = vmax.f32 %v2595_v48, 0.0 }
 0x8a7   : > { %v2603_v49 = vmax.f32 %v2597_v50, 0.0 }
 0x8a8   : > { %v2604_v0 = vmax.f32 %v2599_v8, 0.0 }
 0x8a9   : > { %v2605_v21 = vpack.c.bf16 %v2603_v49, %v2601_v44 }
 0x8aa   : > { %v2606_v63 = vpack.c.bf16 %v2604_v0, %v2602_v9 }
 0x8ac   : > { %2777 = vmatprep.mubr.bf16.mxu0 %v2606_v63 }
 0x8ad   : > { %2778 = vmatmul.mubr.bf16.vlgmr.msra.gmra.mrb[4].mxu0 %v2605_v21 }
 0x980   : > { %v3770_v43 = vpop.f32.mrb[4].mxu0 }
 0x981   : > { %v3771_v23 = vpop.f32.mrb[5].mxu0 }
 0x982   : > { %v3772_v14 = vadd.f32 %v3771_v23, %v3770_v43  ;;  %v3773_v24 = vpop.f32.mrb[6].mxu0 }
 0x983   : > { %v3774_v31 = vpop.f32.mrb[7].mxu0 }
 0x984   : > { %v2780_v45 = vadd.f32 %v3772_v14, %v3422_v62  ;;  %v3775_v13 = vadd.f32 %v3774_v31, %v3773_v24 }
 0x986   : > { %v2786_v29 = vmax.f32 %v2780_v45, 0.0  ;;  %v2783_v30 = vadd.f32 %v3775_v13, %v3422_v62 }
 0x988   : > { %2788 = vst [vmem:[#allocation3] sm:$0xff] %v2786_v29  ;;  %v2787_v32 = vmax.f32 %v2783_v30, 0.0 }
 0x98a   : > { %2789 = vst [vmem:[#allocation3 + $0x8] sm:$0xff] %v2787_v32 }
 0x98b PF: > { %s6296_s5 = sld [smem:[#allocation41_spill]] }
 0x991   : > { %p3439_p7 = scmp.ne.s32.totalorder %s6296_s5, 2 }
 0x992   : > { %v2796_v38 = vpack.c.bf16 (!%p3439_p7), %v5841_v19, %v5836_v15  ;;  %v4818_v39 = vmov (!%p3439_p7), 0.0   ;;  %s6297_s8 = sld [smem:[#allocation68_spill]] (!%p3439_p7)  ;;  %v2797_v61 = vpack.c.bf16 (!%p3439_p7), %v5853_v28, %v5848_v27  ;;  %vm4819_vm3 = vmmov (!%p3439_p7), 0   ;;  %s6298_s5 = sld [smem:[#allocation69_spill]] (!%p3439_p7) }
 0x993   : > { %2793 = sbr.rel (%p3439_p7) target bundleno = 2916 (0xb64), region = 156  ;;  %3880 = vmatprep.subr.bf16.mxu0 (!%p3439_p7), %v4818_v39  ;;  %3900 = vmatprep.subr.bf16.mxu1 (!%p3439_p7), %v4818_v39  ;;  %v2798_v15 = vpack.c.bf16 (!%p3439_p7), %v5865_v55, %v5860_v18  ;;  %v2799_v27 = vpack.c.bf16 (!%p3439_p7), %v5877_v11, %v5872_v1  ;;  %v2800_v18 = vpack.c.bf16 (!%p3439_p7), %v5889_v20, %v5884_v10 }
 0x994   : > { %3881 = vmatpush3.bf16.msra.mxu0 (!%p3439_p7), %v2796_v38  ;;  %3896 = vmatprep.mubr.msk.bf16.mxu0 (!%p3439_p7), %vm4819_vm3, %v4818_v39  ;;  %v2801_v1 = vpack.c.bf16 (!%p3439_p7), %v5901_v16, %v5896_v35  ;;  %v2802_v10 = vpack.c.bf16 (!%p3439_p7), %v5913_v36, %v5908_v56  ;;  %v2803_v35 = vpack.c.bf16 (!%p3439_p7), %v5925_v7, %v5920_v5  ;;  %v4270_v16 = vld [vmem:[%s5487_s15] sm:$0xff] (!%p3439_p7)  }
 0x995   : > { %3882 = vmatprep.subr.bf16.mxu0 (!%p3439_p7), %v4818_v39  ;;  %3916 = vmatprep.mubr.msk.bf16.mxu1 (!%p3439_p7), %vm4819_vm3, %v4818_v39 }
 0x998   : > { %v4271_v40 = vld [vmem:[%s6297_s8] sm:$0xff] (!%p3439_p7)   ;;  %v4272_v41 = vld [vmem:[%s6297_s8 + $0x8] sm:$0xff] (!%p3439_p7)   ;;  %3883 = vmatpush3.bf16.msra.mxu0 (!%p3439_p7), %v2797_v61  ;;  %v4273_v19 = vld [vmem:[%s6297_s8 + $0x10] sm:$0xff] (!%p3439_p7)  }
 0x999   : > { %3901 = vmatpush3.bf16.msra.mxu1 (!%p3439_p7), %v4271_v40  ;;  %3884 = vmatprep.subr.bf16.mxu0 (!%p3439_p7), %v4818_v39  ;;  %v4274_v28 = vld [vmem:[%s6297_s8 + $0x18] sm:$0xff] (!%p3439_p7)   ;;  %v4275_v55 = vld [vmem:[%s6297_s8 + $0x20] sm:$0xff] (!%p3439_p7)   ;;  %v4276_v11 = vld [vmem:[%s6297_s8 + $0x28] sm:$0xff] (!%p3439_p7)  }
 0x99a   : > { %3902 = vmatprep.subr.bf16.mxu1 %v4818_v39  ;;  %v4277_v20 = vld [vmem:[%s6297_s8 + $0x30] sm:$0xff]   ;;  %v4278_v56 = vld [vmem:[%s6297_s8 + $0x38] sm:$0xff]   ;;  %v3441_v5 = vld [vmem:[%s6298_s5] ss:$0 sm:$0xff] }
 0x99c   : > { %3885 = vmatpush3.bf16.msra.mxu0 %v2798_v15 }
 0x99d   : > { %3903 = vmatpush3.bf16.msra.mxu1 %v4272_v41  ;;  %3886 = vmatprep.subr.bf16.mxu0 %v4818_v39 }
 0x99e   : > { %3904 = vmatprep.subr.bf16.mxu1 %v4818_v39 }
 0x9a0   : > { %3887 = vmatpush3.bf16.msra.mxu0 %v2799_v27 }
 0x9a1   : > { %3905 = vmatpush3.bf16.msra.mxu1 %v4273_v19  ;;  %3888 = vmatprep.subr.bf16.mxu0 %v4818_v39 }
 0x9a2   : > { %3906 = vmatprep.subr.bf16.mxu1 %v4818_v39 }
 0x9a4   : > { %3889 = vmatpush3.bf16.msra.mxu0 %v2800_v18 }
 0x9a5   : > { %3907 = vmatpush3.bf16.msra.mxu1 %v4274_v28  ;;  %3890 = vmatprep.subr.bf16.mxu0 %v4818_v39 }
 0x9a6   : > { %3908 = vmatprep.subr.bf16.mxu1 %v4818_v39 }
 0x9a8   : > { %3891 = vmatpush3.bf16.msra.mxu0 %v2801_v1 }
 0x9a9   : > { %3909 = vmatpush3.bf16.msra.mxu1 %v4275_v55  ;;  %3892 = vmatprep.subr.bf16.mxu0 %v4818_v39 }
 0x9aa   : > { %3910 = vmatprep.subr.bf16.mxu1 %v4818_v39 }
 0x9ac   : > { %3893 = vmatpush3.bf16.msra.mxu0 %v2802_v10 }
 0x9ad   : > { %3911 = vmatpush3.bf16.msra.mxu1 %v4276_v11  ;;  %3894 = vmatprep.subr.bf16.mxu0 %v4818_v39 }
 0x9ae   : > { %3912 = vmatprep.subr.bf16.mxu1 %v4818_v39 }
 0x9b0   : > { %3895 = vmatpush3.bf16.msra.mxu0 %v2803_v35 }
 0x9b1   : > { %3913 = vmatpush3.bf16.msra.mxu1 %v4277_v20 }
 0x9b2   : > { %3914 = vmatprep.subr.bf16.mxu1 %v4818_v39 }
 0x9b3   : > { %3897 = vmatmul.mubr.bf16.vlgmr.msra.gmra.mrb[0].mxu0 %v4270_v16 }
 0x9b5   : > { %3915 = vmatpush3.bf16.msra.mxu1 %v4278_v56 }
 0xa86   : > { %v2844_v36 = vpop.f32.mrb[0].mxu0 }
 0xa87   : > { %v3898_v42 = vpop.f32.mrb[1].mxu0 }
 0xa88   : > { %v2847_v22 = vpop.f32.mrb[2].mxu0 }
 0xa89   : > { %v2851_v51 = vpack.c.bf16 %v2847_v22, %v2844_v36  ;;  %v3899_v52 = vpop.f32.mrb[3].mxu0 }
 0xa8b   : > { %3917 = vmatmul.mubr.bf16.vlgmr.msra.gmra.mrb[0].mxu1 %v2851_v51 }
 0xb5e   : > { %v2957_v7 = vpop.f32.mrb[0].mxu1 }
 0xb5f   : > { %v2958_v54 = vadd.f32 %v3441_v5, %v2957_v7  ;;  %v3918_v58 = vpop.f32.mrb[1].mxu1 }
 0xb60   : > { %v2960_v57 = vpop.f32.mrb[2].mxu1 }
 0xb61   : > { %2964 = vst [vmem:[%s5516_s27] sm:$0xff] %v2958_v54  ;;  %v2961_v60 = vadd.f32 %v3441_v5, %v2960_v57  ;;  %v3919_v59 = vpop.f32.mrb[3].mxu1 }
 0xb63   : > { %2965 = vst [vmem:[%s5516_s27 + $0x8] sm:$0xff] %v2961_v60 }
 0xb64 PF: > { %s6299_s15 = sld [smem:[#allocation42_spill]]  ;;  %s6300_s14 = sld [smem:[#allocation47_spill]] }
 0xb65   : > { %s6301_s12 = sld [smem:[#allocation70_spill]]  ;;  %s2980_s23 = sshll.u32 %s5516_s27, 4  ;;  %s6042_s23 = int_to_ptr.vmem [resolvable:$true] %s2980_s23 }
 0xb66   : > { %s2967_s0 = scalar_lea.sflag [#allocation6], %s5469_s28  ;;  %s4640_s16 = scalar_lea.vmem %s6042_s23, 256 }
 0xb67   : > { %p4641_p1 = scmp.ne.s32.totalorder %s6042_s23, %s4640_s16  ;;  %s4820_s3 = smov [#allocation26]  }
 0xb68   : > { %s4644_s20 = sshll.u32 %s4820_s3, 4  ;;  %s4645_s20 = int_to_ptr.vmem [resolvable:$false] %s4644_s20 }
 0xb69   : > { %s4646_s30 = scalar_lea.vmem %s4645_s20, 512  ;;  %p4647_p13 = scmp.lt.s32.totalorder %s6042_s23, %s4645_s20 }
 0xb6a   : > { %s3465_s26 = sshll.u32 %s6299_s15, 8  ;;  %p6302_p6 = scmp.ne.s32.totalorder %s6300_s14, 0 }
 0xb6b   : > { %s6039_s6 = scalar_lea.hbm %s6301_s12, %s3465_s26  ;;  %p4648_p3 = scmp.lt.s32.totalorder %s4646_s30, %s4640_s16 }
 0xb6c   : > { %p4642_p12 = pnand %p4641_p1, %p6302_p6 }
 0xb6d   : > { %p4649_p5 = por %p4648_p3, %p4647_p13 }
 0xb6e   : > { %p4643_p9 = pneg %p4642_p12 }
 0xb70   : > { %p4650_p10 = pnand %p4649_p5, %p4643_p9 }
 0xb72   : > { %4653 = shalt.err (!%p4650_p10)
}
 0xb73   : > { %s4654_s27 = scalar_lea.hbm %s6039_s6, 256  ;;  %s4658_s1 = scalar_lea.hbm %s6301_s12, 512 }
 0xb74   : > { %p4655_p0 = scmp.ne.s32.totalorder %s6039_s6, %s4654_s27  ;;  %p4659_p8 = scmp.lt.u32.totalorder %s6039_s6, %s6301_s12 }
 0xb75   : > { %p4660_p11 = scmp.lt.u32.totalorder %s4658_s1, %s4654_s27  ;;  %p4662_p1 = scmp.lt.u32.totalorder %s4654_s27, %s6039_s6 }
 0xb76   : > { %p4656_p4 = pnand %p4655_p0, %p6302_p6 }
 0xb77   : > { %p4661_p7 = por %p4660_p11, %p4659_p8 }
 0xb78   : > { %p4657_p2 = pneg %p4656_p4 }
 0xb79   : > { %p4663_p12 = por %p4662_p1, %p4661_p7 }
 0xb7b   : > { %p4664_p9 = pnand %p4663_p12, %p4657_p2 }
 0xb7d   : > { %4667 = shalt.err (!%p4664_p9)
}
 0xb7e   : > { %s4821_s10 = smov 128   ;;  %s4822_s5 = smov 8  }
 0xb7f   : > { %3963 = dma.vmem_to_hbm [thread:$0]  (%p6302_p6), %s6042_s23, 256, %s6039_s6, %s2967_s0, %s4821_s10, %s4821_s10, %s4822_s5  }
 0xb80 PF: > { %s6303_s15 = sld [smem:[#allocation36_spill]]  ;;  %p4027_p13 = scmp.ge.s32.totalorder %s4790_s2, 2 }
 0xb81   : > { %s6304_s26 = sld [smem:[#allocation48_spill]] }
 0xb86   : > { %s2995_s9 = sand.u32 1, %s6303_s15  }
 0xb87   : > { %p6305_p3 = scmp.ne.s32.totalorder %s6304_s26, 0  ;;  %s2996_s17 = scalar_lea.sflag [#allocation6], %s2995_s9 }
 0xb89   : > { %p4007_p5 = pnand %p4027_p13, %p6305_p3 }
 0xb8b   : > { %4745 = dma.done.wait (!%p4007_p5), %s2996_s17, 256  }
 0xb8c   : > { %4747 = vsyncadd (!%p4007_p5), %s2996_s17, 4294967040  ;;  %s45_s2 = sadd.s32 1, %s4790_s2   ;;  %s6306_s27 = sld [smem:[#allocation37_spill]] }
 0xb8d   : > { %p42_p10 = scmp.ge.s32.totalorder %s45_s2, 8   ;;  %s6307_s30 = sld [smem:[#allocation39_spill]] }
 0xb8e   : > { %s6308_s0 = sld [smem:[#allocation40_spill]]  ;;  %s6309_s1 = sld [smem:[#allocation43_spill]] }
 0xb8f   : > { %s6310_s21 = sld [smem:[#allocation52_spill]]  ;;  %s6311_s14 = sld [smem:[#allocation53_spill]] }
 0xb90   : > { %s6312_s28 = smov %s4758_s29  ;;  %s6313_s29 = smov %s5351_s11 }
 0xb91   : > { %s6314_s19 = smov %s5354_s24  ;;  %s6315_s20 = smov %s4786_s22 }
 0xb92   :  { %44 = sbr.rel (!%p42_p10) target bundleno = 36 (0x24), region = 244 }
 0xb95   : > { %s6316_s22 = smov %s6311_s14 }
 0xb99   :  { %3001 = vsyncpa [#allocation5], 1 }
 0xb9a   :  { %3003 = vsyncpa [#allocation5 + $0x1], 1 }
 0xb9b   :  { %3004 = vsyncpa [#allocation10], 1 }
 0xb9c   :  { %3006 = vsyncpa [#allocation10 + $0x1], 1 }
 0xb9d   :  { %3007 = vsyncpa [#allocation13], 1 }
 0xb9e   :  { %3009 = vsyncpa [#allocation13 + $0x1], 1 }
 0xb9f   :  { %3010 = vsyncpa [#allocation16], 1 }
 0xba0   :  { %3011 = vsyncpa [#allocation19], 1 }
 0xba1   :  { %3012 = vsyncpa [#allocation22], 1 }
 0xba2   :  { %3013 = vsyncpa [#allocation25], 1 }
 0xba3   :  { %3014 = vsyncpa [#allocation6], 1 }
 0xba4   :  { %3016 = vsyncpa [#allocation6 + $0x1], 1 }
 0xba5   :  { %3017 = vsyncpa [#allocation7], 1 }
 0xba6   :  { %3019 = vsyncpa [#allocation7 + $0x1], 1 }

</bundles_post_ra>
